<compile_context>
chip_gen: v7x
topology: tpu7x:2x2x1
jax: 0.10.0
libtpu: 0.0.40
codegen_flags: <defaults>
</compile_context>

<pallas_src>
import functools

import numpy as np
import jax
import jax.numpy as jnp
from jax.experimental import pallas as pl
from jax.experimental.pallas import tpu as pltpu


def _vmem_limit_bytes():
    """~96 MiB scoped VMEM on v5e/v6e (128 MiB physical), ~48 MiB otherwise (v7x: 64 MiB)."""
    try:
        cap = int(pltpu.get_tpu_info().vmem_capacity_bytes)
        if cap >= 100 * 1024 * 1024:
            return 96 * 1024 * 1024
    except Exception:
        pass
    return 48 * 1024 * 1024


# ----------------------------------------------------------------------------
# Pallas kernels
# ----------------------------------------------------------------------------
def _attn_kernel(x_ref, bm_ref, g_ref, b_ref, wqkv_ref, bqkv_ref,
                 wproj_ref, bproj_ref, o_ref, *,
                 WR, ws, nWx, C, num_heads, n_mask):
    """One block of WR window-rows (WT = WR*nWx windows) read from the NHWC image.

    LN1 -> fused QKV matmul -> head-batched attention (+resident bias/mask) ->
    single output-projection matmul -> fused attention residual.  The window
    partition / reverse are pure in-VMEM major-dim transposes."""
    N = ws * ws
    WT = WR * nWx
    hd = C // num_heads
    NH = num_heads

    x_img = x_ref[...].reshape(WR * ws, nWx * ws, C)            # (rows, W, C) f32
    # in-VMEM window partition (major-dim permutation only)
    xw = (x_img.reshape(WR, ws, nWx, ws, C)
               .transpose(0, 2, 1, 3, 4)
               .reshape(WT * N, C))

    # LayerNorm (eps=1e-5, biased variance), f32 elementwise.
    mu = jnp.mean(xw, axis=-1, keepdims=True)
    var = jnp.mean((xw - mu) ** 2, axis=-1, keepdims=True)
    xn = ((xw - mu) * jax.lax.rsqrt(var + 1e-5) * g_ref[0] + b_ref[0]).astype(jnp.bfloat16)

    # Fused QKV projection: one (WT*N, C) x (C, 3C) MXU matmul (q columns pre-scaled).
    qkv = jnp.dot(xn, wqkv_ref[...], preferred_element_type=jnp.float32) + bqkv_ref[0]

    def heads(col0):
        # (WT*N, hd) lane slices stacked on a new leading (head) axis -> (NH*WT, N, hd).
        # Only lane slices + major reshapes (no second-minor transposes).
        t = jnp.stack([qkv[:, col0 + h * hd: col0 + (h + 1) * hd] for h in range(NH)],
                      axis=0)                                   # (NH, WT*N, hd)
        return t.reshape(NH * WT, N, hd).astype(jnp.bfloat16)

    qh = heads(0)
    kh = heads(C)
    vh = heads(2 * C)

    # scores, batched over (head, window)
    s = jnp.einsum('bnd,bmd->bnm', qh, kh,
                   preferred_element_type=jnp.float32)          # (NH*WT, N, N)
    s = s.reshape(NH, WT, N, N)

    if n_mask == 1:                                             # non-shifted block
        s = s + bm_ref[...]                                     # (NH, 1, N, N) broadcast
    else:                                                       # shifted: slice resident mask
        start = pl.program_id(1) * WT
        s = s + bm_ref[:, pl.ds(start, WT), :, :]               # (NH, WT, N, N)

    s = s - jnp.max(s, axis=-1, keepdims=True)
    e = jnp.exp(s)
    p = e * pl.reciprocal(jnp.sum(e, axis=-1, keepdims=True), approx=True)

    o = jnp.einsum('bnm,bmd->bnd',
                   p.reshape(NH * WT, N, N).astype(jnp.bfloat16), vh,
                   preferred_element_type=jnp.float32)          # (NH*WT, N, hd)
    o = o.reshape(NH, WT * N, hd)
    o = jnp.concatenate([o[h] for h in range(NH)], axis=-1).astype(jnp.bfloat16)  # (WT*N, C)

    # single K=C output-projection matmul (no per-head K=hd matmuls)
    out = jnp.dot(o, wproj_ref[...], preferred_element_type=jnp.float32) + bproj_ref[0]

    # in-VMEM window reverse + fused attention residual (roll/partition are bijections)
    attn_img = (out.reshape(WR, nWx, ws, ws, C)
                   .transpose(0, 2, 1, 3, 4)
                   .reshape(WR * ws, nWx * ws, C))
    o_ref[...] = (x_img + attn_img).reshape(1, WR * ws, nWx * ws, C).astype(o_ref.dtype)


def _mlp_kernel(x_ref, g_ref, b_ref, w1_ref, b1_ref, w2_ref, b2_ref, o_ref):
    """Token tile: y = x + fc2(gelu(fc1(LN2(x)))); bf16 matmuls, f32 elementwise."""
    x = x_ref[...]                                              # (TM, C) f32
    mu = jnp.mean(x, axis=-1, keepdims=True)
    var = jnp.mean((x - mu) ** 2, axis=-1, keepdims=True)
    xn = ((x - mu) * jax.lax.rsqrt(var + 1e-5) * g_ref[0] + b_ref[0]).astype(jnp.bfloat16)

    h = jnp.dot(xn, w1_ref[...], preferred_element_type=jnp.float32) + b1_ref[0]
    # tanh-approximate GELU: one EUP tanh instead of a ~15-op VPU rational-erf chain.
    # TODO(synk): deviates from PyTorch's exact erf-GELU by <~1e-3 max abs.
    h = 0.5 * h * (1.0 + jnp.tanh(0.7978845608028654 * (h + 0.044715 * h * h * h)))
    y = jnp.dot(h.astype(jnp.bfloat16), w2_ref[...],
                preferred_element_type=jnp.float32) + b2_ref[0]
    o_ref[...] = (x + y).astype(o_ref.dtype)


def _conv3x3_kernel(xpad_ref, res_ref, w_ref, b_ref, o_ref, *, RT, W, C):
    """RT output rows per grid step: 9 accumulated (RT*W, C) x (C, C) matmuls
    (no im2col buffer) + bias + fused RSTB residual."""
    r0 = pl.program_id(1) * RT
    acc = jnp.zeros((RT * W, C), jnp.float32)
    for kh in range(3):
        for kw in range(3):
            patch = xpad_ref[:, pl.ds(r0 + kh, RT), pl.ds(kw, W), :]        # (1, RT, W, C)
            acc = acc + jnp.dot(patch.reshape(RT * W, C).astype(jnp.bfloat16),
                                w_ref[kh * 3 + kw],
                                preferred_element_type=jnp.float32)
    out = acc + b_ref[0] + res_ref[...].reshape(RT * W, C)
    o_ref[...] = out.reshape(1, RT, W, C).astype(o_ref.dtype)


# ----------------------------------------------------------------------------
# Tile-size selection (large MXU tiles, divisor-safe, >=2 grid steps where possible)
# ----------------------------------------------------------------------------
def _choose_window_rows(nWy, nWx, N, target_rows=512):
    want = max(1, min(nWy, target_rows // max(1, nWx * N)))
    if nWy >= 2:
        want = min(want, max(1, nWy // 2))
    best = 1
    for d in range(1, want + 1):
        if nWy % d == 0:
            best = d
    return best


def _choose_token_tile(total_tokens, target_rows=1024):
    if total_tokens <= target_rows:
        return total_tokens
    best = None
    for d in range(8, target_rows + 1, 8):
        if total_tokens % d == 0:
            best = d
    if best is None:
        for d in range(min(target_rows, total_tokens), 0, -1):
            if total_tokens % d == 0:
                best = d
                break
    return best


def _choose_conv_rows(H, W, target_rows=512):
    want = max(1, min(H, target_rows // max(1, W)))
    if H >= 2:
        want = min(want, max(1, H // 2))
    best = 1
    for d in range(1, want + 1):
        if H % d == 0:
            best = d
    return best


# ----------------------------------------------------------------------------
# Pallas wrappers
# ----------------------------------------------------------------------------
def window_attention_image(x_img, bias_mask, gamma, beta, wqkv, bqkv, wproj, bproj,
                           num_heads, ws):
    B, H, W, C = x_img.shape
    assert H % ws == 0 and W % ws == 0 and C % num_heads == 0
    nWy, nWx = H // ws, W // ws
    N = ws * ws
    WR = _choose_window_rows(nWy, nWx, N)
    n_mask = bias_mask.shape[1]
    kernel = functools.partial(_attn_kernel, WR=WR, ws=ws, nWx=nWx, C=C,
                               num_heads=num_heads, n_mask=n_mask)
    return pl.pallas_call(
        kernel,
        out_shape=jax.ShapeDtypeStruct((B, H, W, C), x_img.dtype),
        grid=(B, nWy // WR),
        in_specs=[
            pl.BlockSpec((1, WR * ws, W, C), lambda b, r: (b, r, 0, 0)),
            pl.BlockSpec((num_heads, n_mask, N, N), lambda b, r: (0, 0, 0, 0)),  # resident
            pl.BlockSpec((1, C), lambda b, r: (0, 0)),
            pl.BlockSpec((1, C), lambda b, r: (0, 0)),
            pl.BlockSpec((C, 3 * C), lambda b, r: (0, 0)),
            pl.BlockSpec((1, 3 * C), lambda b, r: (0, 0)),
            pl.BlockSpec((C, C), lambda b, r: (0, 0)),
            pl.BlockSpec((1, C), lambda b, r: (0, 0)),
        ],
        out_specs=pl.BlockSpec((1, WR * ws, W, C), lambda b, r: (b, r, 0, 0)),
        compiler_params=pltpu.CompilerParams(
            dimension_semantics=("parallel", "parallel"),
            vmem_limit_bytes=_vmem_limit_bytes()),
    )(x_img, bias_mask, gamma[None, :], beta[None, :], wqkv, bqkv[None, :],
      wproj, bproj[None, :])


def mlp_block(x_tok, gamma, beta, w1, b1, w2, b2):
    T, C = x_tok.shape
    Hh = w1.shape[1]
    TM = _choose_token_tile(T)
    return pl.pallas_call(
        _mlp_kernel,
        out_shape=jax.ShapeDtypeStruct((T, C), x_tok.dtype),
        grid=(T // TM,),
        in_specs=[
            pl.BlockSpec((TM, C), lambda i: (i, 0)),
            pl.BlockSpec((1, C), lambda i: (0, 0)),
            pl.BlockSpec((1, C), lambda i: (0, 0)),
            pl.BlockSpec((C, Hh), lambda i: (0, 0)),
            pl.BlockSpec((1, Hh), lambda i: (0, 0)),
            pl.BlockSpec((Hh, C), lambda i: (0, 0)),
            pl.BlockSpec((1, C), lambda i: (0, 0)),
        ],
        out_specs=pl.BlockSpec((TM, C), lambda i: (i, 0)),
        compiler_params=pltpu.CompilerParams(
            dimension_semantics=("parallel",),
            vmem_limit_bytes=_vmem_limit_bytes()),
    )(x_tok, gamma[None, :], beta[None, :], w1, b1[None, :], w2, b2[None, :])


def conv3x3_residual(x_img, x_res, w9, bias):
    """y = conv3x3(x_img) + x_res, row-tiled; the padded image stays VMEM-resident per b."""
    B, H, W, C = x_img.shape
    xpad = jnp.pad(x_img, ((0, 0), (1, 1), (1, 1), (0, 0)))
    RT = _choose_conv_rows(H, W)
    kernel = functools.partial(_conv3x3_kernel, RT=RT, W=W, C=C)
    return pl.pallas_call(
        kernel,
        out_shape=jax.ShapeDtypeStruct((B, H, W, C), x_img.dtype),
        grid=(B, H // RT),
        in_specs=[
            pl.BlockSpec((1, H + 2, W + 2, C), lambda b, r: (b, 0, 0, 0)),  # resident per b
            pl.BlockSpec((1, RT, W, C), lambda b, r: (b, r, 0, 0)),
            pl.BlockSpec((9, C, C), lambda b, r: (0, 0, 0)),
            pl.BlockSpec((1, C), lambda b, r: (0, 0)),
        ],
        out_specs=pl.BlockSpec((1, RT, W, C), lambda b, r: (b, r, 0, 0)),
        compiler_params=pltpu.CompilerParams(
            dimension_semantics=("parallel", "parallel"),
            vmem_limit_bytes=_vmem_limit_bytes()),
    )(xpad, x_res, w9, bias[None, :])


# ----------------------------------------------------------------------------
# Glue: masks, relative-position index, parameter init / prepare
# ----------------------------------------------------------------------------
def calculate_mask_np(H, W, ws, shift):
    img_mask = np.zeros((1, H, W, 1), np.float32)
    h_slices = (slice(0, -ws), slice(-ws, -shift), slice(-shift, None))
    w_slices = (slice(0, -ws), slice(-ws, -shift), slice(-shift, None))
    cnt = 0
    for hs in h_slices:
        for wsl in w_slices:
            img_mask[:, hs, wsl, :] = cnt
            cnt += 1
    mw = img_mask.reshape(1, H // ws, ws, W // ws, ws, 1)
    mw = mw.transpose(0, 1, 3, 2, 4, 5).reshape(-1, ws * ws)
    attn_mask = mw[:, None, :] - mw[:, :, None]
    attn_mask = np.where(attn_mask != 0, -100.0, 0.0).astype(np.float32)
    return jnp.asarray(attn_mask)                               # (nW, N, N)


def relative_position_index_np(ws):
    coords = np.stack(np.meshgrid(np.arange(ws), np.arange(ws), indexing='ij'))
    cf = coords.reshape(2, -1)
    rel = cf[:, :, None] - cf[:, None, :]
    rel = rel.transpose(1, 2, 0).astype(np.int64)
    rel[..., 0] += ws - 1
    rel[..., 1] += ws - 1
    rel[..., 0] *= 2 * ws - 1
    return rel.sum(-1)                                          # (N, N)


def init_params(key, dim, depth, num_heads, window_size, mlp_ratio):
    hidden = int(dim * mlp_ratio)
    blocks = []
    for _ in range(depth):
        key, *ks = jax.random.split(key, 9)
        blocks.append(dict(
            ln1_g=jnp.ones((dim,), jnp.float32),
            ln1_b=jnp.zeros((dim,), jnp.float32),
            wqkv=0.02 * jax.random.normal(ks[0], (dim, 3 * dim), jnp.float32),
            bqkv=0.02 * jax.random.normal(ks[1], (3 * dim,), jnp.float32),
            rpb_table=0.02 * jax.random.normal(
                ks[2], ((2 * window_size - 1) ** 2, num_heads), jnp.float32),
            wproj=0.02 * jax.random.normal(ks[3], (dim, dim), jnp.float32),
            bproj=0.02 * jax.random.normal(ks[4], (dim,), jnp.float32),
            ln2_g=jnp.ones((dim,), jnp.float32),
            ln2_b=jnp.zeros((dim,), jnp.float32),
            w1=0.02 * jax.random.normal(ks[5], (dim, hidden), jnp.float32),
            b1=0.02 * jax.random.normal(ks[6], (hidden,), jnp.float32),
            w2=0.02 * jax.random.normal(ks[7], (hidden, dim), jnp.float32),
            b2=jnp.zeros((dim,), jnp.float32),
        ))
    key, k1, k2 = jax.random.split(key, 3)
    conv_w = 0.02 * jax.random.normal(k1, (3, 3, dim, dim), jnp.float32)    # HWIO
    conv_b = 0.02 * jax.random.normal(k2, (dim,), jnp.float32)
    return dict(blocks=blocks, conv_w=conv_w, conv_b=conv_b)


def prepare_inference_params(params, x_size, window_size, num_heads):
    """Hoist input-independent work: rel-pos-bias gather + shift masks folded into one
    head-major (NH, nW_or_1, N, N) tensor per block, qk scale folded into the QKV
    weights, bf16 weight casts, conv-weight reshape."""
    H, W = x_size
    ws = min(window_size, min(H, W))          # PyTorch: shrink window if resolution small
    use_shift = min(H, W) > window_size
    assert H % ws == 0 and W % ws == 0
    N = ws * ws
    rpi = relative_position_index_np(ws).reshape(-1)
    dim = params['conv_w'].shape[-1]
    hd = dim // num_heads
    scale = hd ** -0.5
    qscale = jnp.concatenate([jnp.full((dim,), scale, jnp.float32),
                              jnp.ones((2 * dim,), jnp.float32)])
    blocks = []
    for i, blk in enumerate(params['blocks']):
        shift = (ws // 2) if (use_shift and i % 2 == 1) else 0
        rel = blk['rpb_table'][rpi].reshape(N, N, num_heads)
        rel = jnp.transpose(rel, (2, 0, 1)).astype(jnp.float32)             # (NH, N, N)
        if shift > 0:
            mask = calculate_mask_np(H, W, ws, shift)                        # (nW, N, N)
            bias_mask = rel[:, None, :, :] + mask[None, :, :, :]             # (NH, nW, N, N)
        else:
            bias_mask = rel[:, None, :, :]                                   # (NH, 1, N, N)
        blocks.append(dict(
            shift=shift, ws=ws,
            bias_mask=bias_mask,
            ln1_g=blk['ln1_g'], ln1_b=blk['ln1_b'],
            wqkv=(blk['wqkv'] * qscale[None, :]).astype(jnp.bfloat16),
            bqkv=blk['bqkv'] * qscale,
            wproj=blk['wproj'].astype(jnp.bfloat16), bproj=blk['bproj'],
            ln2_g=blk['ln2_g'], ln2_b=blk['ln2_b'],
            w1=blk['w1'].astype(jnp.bfloat16), b1=blk['b1'],
            w2=blk['w2'].astype(jnp.bfloat16), b2=blk['b2'],
        ))
    conv_w9 = params['conv_w'].reshape(9, dim, dim).astype(jnp.bfloat16)     # (9, C, C)
    return dict(blocks=blocks, ws=ws, conv_w9=conv_w9, conv_b=params['conv_b'])


# ----------------------------------------------------------------------------
# RSTB forward
# ----------------------------------------------------------------------------
def swin_block_forward_image(x_img, blk, num_heads):
    ws = blk['ws']
    shift = blk['shift']
    if shift > 0:
        x_roll = jnp.roll(x_img, (-shift, -shift), axis=(1, 2))
    else:
        x_roll = x_img
    # attention kernel also adds the (pre-LN) residual internally
    attn = window_attention_image(x_roll, blk['bias_mask'], blk['ln1_g'], blk['ln1_b'],
                                  blk['wqkv'], blk['bqkv'], blk['wproj'], blk['bproj'],
                                  num_heads, ws)
    if shift > 0:
        x_img = jnp.roll(attn, (shift, shift), axis=(1, 2))
    else:
        x_img = attn
    B, H, W, C = x_img.shape
    tok = mlp_block(x_img.reshape(B * H * W, C), blk['ln2_g'], blk['ln2_b'],
                    blk['w1'], blk['b1'], blk['w2'], blk['b2'])
    return tok.reshape(B, H, W, C)


def rstb_forward(x, x_size, inf_params, num_heads):
    H, W = x_size
    B, L, C = x.shape
    x_img_in = x.reshape(B, H, W, C)
    out = x_img_in
    for blk in inf_params['blocks']:
        out = swin_block_forward_image(out, blk, num_heads)
    # patch_unembed -> 3x3 conv -> patch_embed, with the RSTB residual fused in-kernel
    y = conv3x3_residual(out, x_img_in, inf_params['conv_w9'], inf_params['conv_b'])
    return y.reshape(B, L, C)


# ----------------------------------------------------------------------------
if __name__ == "__main__":
    B, C, H, W = 2, 32, 16, 16
    window_size, num_heads, depth, mlp_ratio = 8, 4, 2, 2.0

    key = jax.random.PRNGKey(0)
    kx, kp = jax.random.split(key)
    x = jax.random.normal(kx, (B, H * W, C), jnp.float32)
    params = init_params(kp, C, depth, num_heads, window_size, mlp_ratio)
    inf_params = prepare_inference_params(params, (H, W), window_size, num_heads)

    y = rstb_forward(x, (H, W), inf_params, num_heads)
    jax.block_until_ready(y)
    assert y.shape == (B, H * W, C)
    assert bool(jnp.all(jnp.isfinite(y)))
    print("KERNEL_OK")
</pallas_src>

<mosaic_0001>
module attributes {stable_mosaic.version = 11 : i64} {
  func.func @_attn_kernel(%arg0: i32, %arg1: i32, %arg2: memref<1x8x16x32xf32, #tpu.memory_space<vmem>>, %arg3: memref<4x1x64x64xf32, #tpu.memory_space<vmem>>, %arg4: memref<1x32xf32, #tpu.memory_space<vmem>>, %arg5: memref<1x32xf32, #tpu.memory_space<vmem>>, %arg6: memref<32x96xbf16, #tpu.memory_space<vmem>>, %arg7: memref<1x96xf32, #tpu.memory_space<vmem>>, %arg8: memref<32x32xbf16, #tpu.memory_space<vmem>>, %arg9: memref<1x32xf32, #tpu.memory_space<vmem>>, %arg10: memref<1x8x16x32xf32, #tpu.memory_space<vmem>>) attributes {dimension_semantics = [#tpu.dimension_semantics<parallel>, #tpu.dimension_semantics<parallel>], iteration_bounds = array<i64: 2, 2>, scalar_prefetch = 0 : i64, scratch_operands = 0 : i64, tpu.core_type = #tpu.core_type<tc>, window_params = [{transform_indices = @transform_0, window_bounds = array<i64: 1, 8, 16, 32>}, {pipeline_mode = #tpu.pipeline_mode<synchronous>, transform_indices = @transform_1, window_bounds = array<i64: 4, 1, 64, 64>}, {pipeline_mode = #tpu.pipeline_mode<synchronous>, transform_indices = @transform_2, window_bounds = array<i64: 1, 32>}, {pipeline_mode = #tpu.pipeline_mode<synchronous>, transform_indices = @transform_3, window_bounds = array<i64: 1, 32>}, {pipeline_mode = #tpu.pipeline_mode<synchronous>, transform_indices = @transform_4, window_bounds = array<i64: 32, 96>}, {pipeline_mode = #tpu.pipeline_mode<synchronous>, transform_indices = @transform_5, window_bounds = array<i64: 1, 96>}, {pipeline_mode = #tpu.pipeline_mode<synchronous>, transform_indices = @transform_6, window_bounds = array<i64: 32, 32>}, {pipeline_mode = #tpu.pipeline_mode<synchronous>, transform_indices = @transform_7, window_bounds = array<i64: 1, 32>}, {transform_indices = @transform_8, window_bounds = array<i64: 1, 8, 16, 32>}]} {
    %c0 = arith.constant 0 : index
    %c0_0 = arith.constant 0 : index
    %c0_1 = arith.constant 0 : index
    %c0_2 = arith.constant 0 : index
    %0 = vector.load %arg2[%c0, %c0_0, %c0_1, %c0_2] : memref<1x8x16x32xf32, #tpu.memory_space<vmem>>, vector<1x8x16x32xf32>
    %1 = vector.shape_cast %0 : vector<1x8x16x32xf32> to vector<8x16x32xf32>
    %2 = vector.shape_cast %1 : vector<8x16x32xf32> to vector<1x8x2x8x32xf32>
    %3 = tpu.transpose %2, [0, 2, 1, 3, 4] : vector<1x8x2x8x32xf32> -> vector<1x2x8x8x32xf32>
    %4 = vector.shape_cast %3 : vector<1x2x8x8x32xf32> to vector<128x32xf32>
    %cst = arith.constant dense<0.000000e+00> : vector<128xf32>
    %5 = vector.multi_reduction <add>, %4, %cst [1] : vector<128x32xf32> to vector<128xf32>
    %6 = vector.shape_cast %5 : vector<128xf32> to vector<128x1xf32>
    %cst_3 = arith.constant 3.200000e+01 : f32
    %7 = vector.broadcast %cst_3 : f32 to vector<128x1xf32>
    %8 = arith.divf %6, %7 : vector<128x1xf32>
    %9 = vector.broadcast %8 : vector<128x1xf32> to vector<128x32xf32>
    %10 = arith.subf %4, %9 : vector<128x32xf32>
    %11 = arith.mulf %10, %10 : vector<128x32xf32>
    %cst_4 = arith.constant dense<0.000000e+00> : vector<128xf32>
    %12 = vector.multi_reduction <add>, %11, %cst_4 [1] : vector<128x32xf32> to vector<128xf32>
    %13 = vector.shape_cast %12 : vector<128xf32> to vector<128x1xf32>
    %cst_5 = arith.constant 3.200000e+01 : f32
    %14 = vector.broadcast %cst_5 : f32 to vector<128x1xf32>
    %15 = arith.divf %13, %14 : vector<128x1xf32>
    %16 = vector.broadcast %8 : vector<128x1xf32> to vector<128x32xf32>
    %17 = arith.subf %4, %16 : vector<128x32xf32>
    %cst_6 = arith.constant 9.99999974E-6 : f32
    %18 = vector.broadcast %cst_6 : f32 to vector<128x1xf32>
    %19 = arith.addf %15, %18 : vector<128x1xf32>
    %20 = math.rsqrt %19 : vector<128x1xf32>
    %21 = vector.broadcast %20 : vector<128x1xf32> to vector<128x32xf32>
    %22 = arith.mulf %17, %21 : vector<128x32xf32>
    %c0_7 = arith.constant 0 : index
    %c0_8 = arith.constant 0 : index
    %23 = vector.load %arg4[%c0_7, %c0_8] : memref<1x32xf32, #tpu.memory_space<vmem>>, vector<1x32xf32>
    %24 = vector.shape_cast %23 : vector<1x32xf32> to vector<32xf32>
    %25 = vector.shape_cast %24 : vector<32xf32> to vector<1x32xf32>
    %26 = vector.broadcast %25 : vector<1x32xf32> to vector<128x32xf32>
    %27 = arith.mulf %22, %26 : vector<128x32xf32>
    %c0_9 = arith.constant 0 : index
    %c0_10 = arith.constant 0 : index
    %28 = vector.load %arg5[%c0_9, %c0_10] : memref<1x32xf32, #tpu.memory_space<vmem>>, vector<1x32xf32>
    %29 = vector.shape_cast %28 : vector<1x32xf32> to vector<32xf32>
    %30 = vector.shape_cast %29 : vector<32xf32> to vector<1x32xf32>
    %31 = vector.broadcast %30 : vector<1x32xf32> to vector<128x32xf32>
    %32 = arith.addf %27, %31 : vector<128x32xf32>
    %33 = arith.truncf %32 : vector<128x32xf32> to vector<128x32xbf16>
    %c0_11 = arith.constant 0 : index
    %c0_12 = arith.constant 0 : index
    %34 = vector.load %arg6[%c0_11, %c0_12] : memref<32x96xbf16, #tpu.memory_space<vmem>>, vector<32x96xbf16>
    %cst_13 = arith.constant dense<0.000000e+00> : vector<128x96xf32>
    %35 = tpu.matmul %33, %34, %cst_13 {dimension_numbers = #tpu.dot_dimension_numbers<[1], [0], [0], [1], [0, 0, 1, 1], [], []>} : vector<128x32xbf16>, vector<32x96xbf16>, vector<128x96xf32> -> vector<128x96xf32>
    %c0_14 = arith.constant 0 : index
    %c0_15 = arith.constant 0 : index
    %36 = vector.load %arg7[%c0_14, %c0_15] : memref<1x96xf32, #tpu.memory_space<vmem>>, vector<1x96xf32>
    %37 = vector.shape_cast %36 : vector<1x96xf32> to vector<96xf32>
    %38 = vector.shape_cast %37 : vector<96xf32> to vector<1x96xf32>
    %39 = vector.broadcast %38 : vector<1x96xf32> to vector<128x96xf32>
    %40 = arith.addf %35, %39 : vector<128x96xf32>
    %41 = vector.extract_strided_slice %40 {offsets = [0, 0], sizes = [128, 8], strides = [1, 1]} : vector<128x96xf32> to vector<128x8xf32>
    %42 = vector.extract_strided_slice %40 {offsets = [0, 8], sizes = [128, 8], strides = [1, 1]} : vector<128x96xf32> to vector<128x8xf32>
    %43 = vector.extract_strided_slice %40 {offsets = [0, 16], sizes = [128, 8], strides = [1, 1]} : vector<128x96xf32> to vector<128x8xf32>
    %44 = vector.extract_strided_slice %40 {offsets = [0, 24], sizes = [128, 8], strides = [1, 1]} : vector<128x96xf32> to vector<128x8xf32>
    %45 = vector.shape_cast %41 : vector<128x8xf32> to vector<1x128x8xf32>
    %46 = vector.shape_cast %42 : vector<128x8xf32> to vector<1x128x8xf32>
    %47 = vector.shape_cast %43 : vector<128x8xf32> to vector<1x128x8xf32>
    %48 = vector.shape_cast %44 : vector<128x8xf32> to vector<1x128x8xf32>
    %49 = tpu.concatenate %45, %46, %47, %48 in 0 : vector<1x128x8xf32>, vector<1x128x8xf32>, vector<1x128x8xf32>, vector<1x128x8xf32> -> vector<4x128x8xf32>
    %50 = vector.shape_cast %49 : vector<4x128x8xf32> to vector<8x64x8xf32>
    %51 = arith.truncf %50 : vector<8x64x8xf32> to vector<8x64x8xbf16>
    %52 = vector.extract_strided_slice %40 {offsets = [0, 32], sizes = [128, 8], strides = [1, 1]} : vector<128x96xf32> to vector<128x8xf32>
    %53 = vector.extract_strided_slice %40 {offsets = [0, 40], sizes = [128, 8], strides = [1, 1]} : vector<128x96xf32> to vector<128x8xf32>
    %54 = vector.extract_strided_slice %40 {offsets = [0, 48], sizes = [128, 8], strides = [1, 1]} : vector<128x96xf32> to vector<128x8xf32>
    %55 = vector.extract_strided_slice %40 {offsets = [0, 56], sizes = [128, 8], strides = [1, 1]} : vector<128x96xf32> to vector<128x8xf32>
    %56 = vector.shape_cast %52 : vector<128x8xf32> to vector<1x128x8xf32>
    %57 = vector.shape_cast %53 : vector<128x8xf32> to vector<1x128x8xf32>
    %58 = vector.shape_cast %54 : vector<128x8xf32> to vector<1x128x8xf32>
    %59 = vector.shape_cast %55 : vector<128x8xf32> to vector<1x128x8xf32>
    %60 = tpu.concatenate %56, %57, %58, %59 in 0 : vector<1x128x8xf32>, vector<1x128x8xf32>, vector<1x128x8xf32>, vector<1x128x8xf32> -> vector<4x128x8xf32>
    %61 = vector.shape_cast %60 : vector<4x128x8xf32> to vector<8x64x8xf32>
    %62 = arith.truncf %61 : vector<8x64x8xf32> to vector<8x64x8xbf16>
    %63 = vector.extract_strided_slice %40 {offsets = [0, 64], sizes = [128, 8], strides = [1, 1]} : vector<128x96xf32> to vector<128x8xf32>
    %64 = vector.extract_strided_slice %40 {offsets = [0, 72], sizes = [128, 8], strides = [1, 1]} : vector<128x96xf32> to vector<128x8xf32>
    %65 = vector.extract_strided_slice %40 {offsets = [0, 80], sizes = [128, 8], strides = [1, 1]} : vector<128x96xf32> to vector<128x8xf32>
    %66 = vector.extract_strided_slice %40 {offsets = [0, 88], sizes = [128, 8], strides = [1, 1]} : vector<128x96xf32> to vector<128x8xf32>
    %67 = vector.shape_cast %63 : vector<128x8xf32> to vector<1x128x8xf32>
    %68 = vector.shape_cast %64 : vector<128x8xf32> to vector<1x128x8xf32>
    %69 = vector.shape_cast %65 : vector<128x8xf32> to vector<1x128x8xf32>
    %70 = vector.shape_cast %66 : vector<128x8xf32> to vector<1x128x8xf32>
    %71 = tpu.concatenate %67, %68, %69, %70 in 0 : vector<1x128x8xf32>, vector<1x128x8xf32>, vector<1x128x8xf32>, vector<1x128x8xf32> -> vector<4x128x8xf32>
    %72 = vector.shape_cast %71 : vector<4x128x8xf32> to vector<8x64x8xf32>
    %73 = arith.truncf %72 : vector<8x64x8xf32> to vector<8x64x8xbf16>
    "tpu.trace_start"() <{level = 10 : i32, message = "bnd,bmd->bnm"}> : () -> ()
    %cst_16 = arith.constant dense<0.000000e+00> : vector<8x64x64xf32>
    %74 = tpu.matmul %51, %62, %cst_16 {dimension_numbers = #tpu.dot_dimension_numbers<[2], [2], [1], [1], [0, 0, 0, 1, 1, 1], [0], [0]>} : vector<8x64x8xbf16>, vector<8x64x8xbf16>, vector<8x64x64xf32> -> vector<8x64x64xf32>
    "tpu.trace_stop"() : () -> ()
    %75 = vector.shape_cast %74 : vector<8x64x64xf32> to vector<4x2x64x64xf32>
    %c0_17 = arith.constant 0 : index
    %c0_18 = arith.constant 0 : index
    %c0_19 = arith.constant 0 : index
    %c0_20 = arith.constant 0 : index
    %76 = vector.load %arg3[%c0_17, %c0_18, %c0_19, %c0_20] : memref<4x1x64x64xf32, #tpu.memory_space<vmem>>, vector<4x1x64x64xf32>
    %77 = vector.broadcast %76 : vector<4x1x64x64xf32> to vector<4x2x64x64xf32>
    %78 = arith.addf %75, %77 : vector<4x2x64x64xf32>
    %cst_21 = arith.constant dense<0xFF800000> : vector<4x2x64xf32>
    %79 = vector.multi_reduction <maximumf>, %78, %cst_21 [3] : vector<4x2x64x64xf32> to vector<4x2x64xf32>
    %80 = vector.shape_cast %79 : vector<4x2x64xf32> to vector<4x2x64x1xf32>
    %81 = vector.broadcast %80 : vector<4x2x64x1xf32> to vector<4x2x64x64xf32>
    %82 = arith.subf %78, %81 : vector<4x2x64x64xf32>
    %83 = math.exp %82 : vector<4x2x64x64xf32>
    %cst_22 = arith.constant dense<0.000000e+00> : vector<4x2x64xf32>
    %84 = vector.multi_reduction <add>, %83, %cst_22 [3] : vector<4x2x64x64xf32> to vector<4x2x64xf32>
    %85 = vector.shape_cast %84 : vector<4x2x64xf32> to vector<4x2x64x1xf32>
    %86 = tpu.reciprocal %85 {approx = true} : vector<4x2x64x1xf32> -> vector<4x2x64x1xf32>
    %87 = vector.broadcast %86 : vector<4x2x64x1xf32> to vector<4x2x64x64xf32>
    %88 = arith.mulf %83, %87 : vector<4x2x64x64xf32>
    %89 = vector.shape_cast %88 : vector<4x2x64x64xf32> to vector<8x64x64xf32>
    %90 = arith.truncf %89 : vector<8x64x64xf32> to vector<8x64x64xbf16>
    "tpu.trace_start"() <{level = 10 : i32, message = "bnm,bmd->bnd"}> : () -> ()
    %cst_23 = arith.constant dense<0.000000e+00> : vector<8x64x8xf32>
    %91 = tpu.matmul %90, %73, %cst_23 {dimension_numbers = #tpu.dot_dimension_numbers<[2], [1], [1], [2], [0, 0, 0, 1, 1, 2], [0], [0]>} : vector<8x64x64xbf16>, vector<8x64x8xbf16>, vector<8x64x8xf32> -> vector<8x64x8xf32>
    "tpu.trace_stop"() : () -> ()
    %92 = vector.shape_cast %91 : vector<8x64x8xf32> to vector<4x128x8xf32>
    %93 = vector.extract_strided_slice %92 {offsets = [0, 0, 0], sizes = [1, 128, 8], strides = [1, 1, 1]} : vector<4x128x8xf32> to vector<1x128x8xf32>
    %94 = vector.shape_cast %93 : vector<1x128x8xf32> to vector<128x8xf32>
    %95 = vector.extract_strided_slice %92 {offsets = [1, 0, 0], sizes = [1, 128, 8], strides = [1, 1, 1]} : vector<4x128x8xf32> to vector<1x128x8xf32>
    %96 = vector.shape_cast %95 : vector<1x128x8xf32> to vector<128x8xf32>
    %97 = vector.extract_strided_slice %92 {offsets = [2, 0, 0], sizes = [1, 128, 8], strides = [1, 1, 1]} : vector<4x128x8xf32> to vector<1x128x8xf32>
    %98 = vector.shape_cast %97 : vector<1x128x8xf32> to vector<128x8xf32>
    %99 = vector.extract_strided_slice %92 {offsets = [3, 0, 0], sizes = [1, 128, 8], strides = [1, 1, 1]} : vector<4x128x8xf32> to vector<1x128x8xf32>
    %100 = vector.shape_cast %99 : vector<1x128x8xf32> to vector<128x8xf32>
    %101 = tpu.concatenate %94, %96, %98, %100 in 1 : vector<128x8xf32>, vector<128x8xf32>, vector<128x8xf32>, vector<128x8xf32> -> vector<128x32xf32>
    %102 = arith.truncf %101 : vector<128x32xf32> to vector<128x32xbf16>
    %c0_24 = arith.constant 0 : index
    %c0_25 = arith.constant 0 : index
    %103 = vector.load %arg8[%c0_24, %c0_25] : memref<32x32xbf16, #tpu.memory_space<vmem>>, vector<32x32xbf16>
    %cst_26 = arith.constant dense<0.000000e+00> : vector<128x32xf32>
    %104 = tpu.matmul %102, %103, %cst_26 {dimension_numbers = #tpu.dot_dimension_numbers<[1], [0], [0], [1], [0, 0, 1, 1], [], []>} : vector<128x32xbf16>, vector<32x32xbf16>, vector<128x32xf32> -> vector<128x32xf32>
    %c0_27 = arith.constant 0 : index
    %c0_28 = arith.constant 0 : index
    %105 = vector.load %arg9[%c0_27, %c0_28] : memref<1x32xf32, #tpu.memory_space<vmem>>, vector<1x32xf32>
    %106 = vector.shape_cast %105 : vector<1x32xf32> to vector<32xf32>
    %107 = vector.shape_cast %106 : vector<32xf32> to vector<1x32xf32>
    %108 = vector.broadcast %107 : vector<1x32xf32> to vector<128x32xf32>
    %109 = arith.addf %104, %108 : vector<128x32xf32>
    %110 = vector.shape_cast %109 : vector<128x32xf32> to vector<1x2x8x8x32xf32>
    %111 = tpu.transpose %110, [0, 2, 1, 3, 4] : vector<1x2x8x8x32xf32> -> vector<1x8x2x8x32xf32>
    %112 = vector.shape_cast %111 : vector<1x8x2x8x32xf32> to vector<8x16x32xf32>
    %113 = arith.addf %1, %112 : vector<8x16x32xf32>
    %114 = vector.shape_cast %113 : vector<8x16x32xf32> to vector<1x8x16x32xf32>
    %c0_29 = arith.constant 0 : index
    %c0_30 = arith.constant 0 : index
    %c0_31 = arith.constant 0 : index
    %c0_32 = arith.constant 0 : index
    %115 = vector.load %arg10[%c0_29, %c0_30, %c0_31, %c0_32] : memref<1x8x16x32xf32, #tpu.memory_space<vmem>>, vector<1x8x16x32xf32>
    tpu.vector_store %arg10[%c0_29, %c0_30, %c0_31, %c0_32], %114 {strides = array<i32>} : memref<1x8x16x32xf32, #tpu.memory_space<vmem>>, vector<1x8x16x32xf32>,
    return
  }
  func.func @transform_0(%arg0: i32, %arg1: i32) -> (i32, i32, i32, i32) {
    %c0_i32 = arith.constant 0 : i32
    %c0_i32_0 = arith.constant 0 : i32
    %c0_i32_1 = arith.constant 0 : i32
    return %arg0, %arg1, %c0_i32, %c0_i32_0 : i32, i32, i32, i32
  }
  func.func @transform_1(%arg0: i32, %arg1: i32) -> (i32, i32, i32, i32) {
    %c0_i32 = arith.constant 0 : i32
    %c0_i32_0 = arith.constant 0 : i32
    %c0_i32_1 = arith.constant 0 : i32
    %c0_i32_2 = arith.constant 0 : i32
    %c0_i32_3 = arith.constant 0 : i32
    return %c0_i32, %c0_i32_0, %c0_i32_1, %c0_i32_2 : i32, i32, i32, i32
  }
  func.func @transform_2(%arg0: i32, %arg1: i32) -> (i32, i32) {
    %c0_i32 = arith.constant 0 : i32
    %c0_i32_0 = arith.constant 0 : i32
    %c0_i32_1 = arith.constant 0 : i32
    return %c0_i32, %c0_i32_0 : i32, i32
  }
  func.func @transform_3(%arg0: i32, %arg1: i32) -> (i32, i32) {
    %c0_i32 = arith.constant 0 : i32
    %c0_i32_0 = arith.constant 0 : i32
    %c0_i32_1 = arith.constant 0 : i32
    return %c0_i32, %c0_i32_0 : i32, i32
  }
  func.func @transform_4(%arg0: i32, %arg1: i32) -> (i32, i32) {
    %c0_i32 = arith.constant 0 : i32
    %c0_i32_0 = arith.constant 0 : i32
    %c0_i32_1 = arith.constant 0 : i32
    return %c0_i32, %c0_i32_0 : i32, i32
  }
  func.func @transform_5(%arg0: i32, %arg1: i32) -> (i32, i32) {
    %c0_i32 = arith.constant 0 : i32
    %c0_i32_0 = arith.constant 0 : i32
    %c0_i32_1 = arith.constant 0 : i32
    return %c0_i32, %c0_i32_0 : i32, i32
  }
  func.func @transform_6(%arg0: i32, %arg1: i32) -> (i32, i32) {
    %c0_i32 = arith.constant 0 : i32
    %c0_i32_0 = arith.constant 0 : i32
    %c0_i32_1 = arith.constant 0 : i32
    return %c0_i32, %c0_i32_0 : i32, i32
  }
  func.func @transform_7(%arg0: i32, %arg1: i32) -> (i32, i32) {
    %c0_i32 = arith.constant 0 : i32
    %c0_i32_0 = arith.constant 0 : i32
    %c0_i32_1 = arith.constant 0 : i32
    return %c0_i32, %c0_i32_0 : i32, i32
  }
  func.func @transform_8(%arg0: i32, %arg1: i32) -> (i32, i32, i32, i32) {
    %c0_i32 = arith.constant 0 : i32
    %c0_i32_0 = arith.constant 0 : i32
    %c0_i32_1 = arith.constant 0 : i32
    return %arg0, %arg1, %c0_i32, %c0_i32_0 : i32, i32, i32, i32
  }
}

</mosaic_0001>

<bundles_post_ra>
// kernel: tpu_custom_call.1
= control target key start
LH: loop header
LB: loop body
LE: loop exit
PB: predicated region body
PF: predicated region fallthrough
CT: control target
= control target key end

     0   :  { %s7350_s0 = inlined_call_operand.hbm [shape: f32[2,16,16,32], index: 0, kind: input, shape index: {}]   ;;  %s7351_s1 = inlined_call_operand.hbm [shape: f32[4,1,64,64], index: 1, kind: input, shape index: {}]   ;;  %s7352_s2 = inlined_call_operand.vmem [shape: f32[1,32], index: 2, kind: input, shape index: {}]   ;;  %s7353_s3 = inlined_call_operand.vmem [shape: f32[1,32], index: 3, kind: input, shape index: {}]   ;;  %s7354_s4 = inlined_call_operand.hbm [shape: bf16[32,96], index: 4, kind: input, shape index: {}]   ;;  %s7355_s5 = inlined_call_operand.vmem [shape: f32[1,96], index: 5, kind: input, shape index: {}]   ;;  %s7356_s6 = inlined_call_operand.vmem [shape: bf16[32,32], index: 6, kind: input, shape index: {}]   ;;  %s7357_s7 = inlined_call_operand.vmem [shape: f32[1,32], index: 7, kind: input, shape index: {}]   ;;  %s7358_s8 = inlined_call_operand.hbm [shape: f32[2,16,16,32], index: 8, kind: output, shape index: {}]  }
   0x1   :  { %7422 = sst [smem:[#allocation59_spill]] %s7351_s1 }
   0x2   :  { %7423 = sst [smem:[#allocation60_spill]] %s7354_s4 }
   0x3   :  { %7424 = sst [smem:[#allocation61_spill]] %s7357_s7 }
   0x4   :  { %7425 = sst [smem:[#allocation62_spill]] %s7358_s8 }
   0x5   :  { %13 = vsyncpa [#allocation3], 0 }
   0x6   :  { %15 = vsyncpa [#allocation3 + $0x1], 0 }
   0x7   :  { %16 = vsyncpa [#allocation6], 0 }
   0x8   :  { %17 = vsyncpa [#allocation4], 0 }
   0x9   :  { %19 = vsyncpa [#allocation4 + $0x1], 0  ;;  %s5398_s27 = smov 0   ;;  %s5400_s28 = smov 0  }
   0xa   :  { %s5402_s29 = smov 0   ;;  %s5404_s30 = smov 0  }
   0xb   :  { %s5406_s9 = smov 0   ;;  %s5408_s10 = smov 0  }
   0xc   :  { %s5410_s11 = smov 0   ;;  %s5412_s12 = smov 0  }
   0xd LB: > { %7426 = sst [smem:[#allocation12_spill]] %s5306_s27  ;;  %s3897_s13 = sadd.s32 4294967295, %s5334_s12   ;;  %s5334_s12 = sphi %s5412_s12, %s25_s12   ;;  %s5330_s11 = sphi %s5410_s11, %s7566_s11   ;;  %s5326_s10 = sphi %s5408_s10, %s7565_s10   ;;  %s5322_s9 = sphi %s5406_s9, %s7564_s9   ;;  %s5318_s30 = sphi %s5404_s30, %s7563_s30   ;;  %s5314_s29 = sphi %s5402_s29, %s7562_s29   ;;  %s5310_s28 = sphi %s5400_s28, %s7561_s28   ;;  %s5306_s27 = sphi %s5398_s27, %s7560_s27  }
   0xe   : > { %7427 = sst [smem:[#allocation13_spill]] %s5318_s30  ;;  %s3898_s14 = sadd.s32 4294967294, %s5334_s12  }
   0xf   : > { %7428 = sst [smem:[#allocation14_spill]] %s5322_s9  ;;  %p59_p0 = scmp.ne.s32.totalorder %s5310_s28, %s5306_s27 }
  0x10   : > { %p5442_p1 = scmp.eq.s32.totalorder %s3897_s13, 0  ;;  %p5446_p2 = scmp.eq.s32.totalorder %s3897_s13, 3 }
  0x11   : > { %p238_p3 = scmp.eq.s32.totalorder %s3898_s14, 3  ;;  %p3899_p5 = scmp.ge.s32.totalorder %s5334_s12, 1 }
  0x12   : > { %s7429_s15 = scalar_select %p5442_p1, 1, 0 }
  0x13   : > { %s7430_s16 = scalar_select %p5446_p2, 1, 0 }
  0x14   : > { %p5452_p4 = por %p5442_p1, %p59_p0  ;;  %p5457_p6 = por %p238_p3, %p59_p0 }
  0x15   : > { %p245_p7 = scmp.lt.s32.totalorder %s5334_s12, 5  ;;  %s5336_s20 = smov [#allocation5]  }
  0x16   : > { %s7431_s17 = scalar_select %p5452_p4, 1, 0 }
  0x17   : > { %s7432_s18 = scalar_select %p5457_p6, 1, 0 }
  0x18   : > { %p5462_p8 = pnand %p3899_p5, %p245_p7  ;;  %s257_s21 = sshll.u32 %s5336_s20, 4  ;;  %s258_s21 = int_to_ptr.vmem [resolvable:$true] %s257_s21 }
  0x19   : > { %7433 = sst [smem:[#allocation15_spill]] %s7432_s18  ;;  %s5337_s23 = smov [#allocation7]  }
  0x1a   : > { %s7434_s19 = scalar_select %p5462_p8, 1, 0 }
  0x1b   : > { %p4498_p9 = pneg %p5462_p8  ;;  %s276_s24 = sshll.u32 %s5337_s23, 4  ;;  %s5474_s24 = int_to_ptr.vmem [resolvable:$true] %s276_s24 }
  0x1c   : > { %s7436_s1 = sld [smem:[#allocation59_spill]] }
  0x1d   : > { %p5470_p10 = pnand %p4498_p9, %p5442_p1 }
  0x1f   : > { %p5148_p12 = pneg %p5470_p10 }
  0x22   : > { %s5146_s13 = scalar_lea.hbm %s7436_s1, 4096 }
  0x23   : > { %p5147_p11 = scmp.ne.s32.totalorder %s7436_s1, %s5146_s13  ;;  %p5153_p3 = scmp.lt.u32.totalorder %s5146_s13, %s7436_s1 }
  0x25   : > { %p5149_p13 = pnand %p5148_p12, %p5147_p11 }
  0x27   : > { %p5150_p0 = pneg %p5149_p13 }
  0x29   : > { %p5155_p5 = pnand %p5153_p3, %p5150_p0 }
  0x2b   : > { %5158 = shalt.err (!%p5155_p5)
}
  0x2c   : > { %s5159_s23 = scalar_lea.vmem %s258_s21, 4096  ;;  %p5167_p1 = scmp.lt.s32.totalorder %s258_s21, %s258_s21 }
  0x2d   : > { %p5160_p7 = scmp.ne.s32.totalorder %s258_s21, %s5159_s23  ;;  %p5168_p4 = scmp.lt.s32.totalorder %s5159_s23, %s5159_s23 }
  0x2f   : > { %p5162_p9 = pnand %p5160_p7, %p5148_p12  ;;  %p5169_p8 = por %p5168_p4, %p5167_p1 }
  0x31   : > { %p5163_p6 = pneg %p5162_p9 }
  0x33   : > { %p5170_p2 = pnand %p5169_p8, %p5163_p6 }
  0x35   : > { %5173 = shalt.err (!%p5170_p2)
}
  0x36   : > { %s7366_s25 = smov 128   ;;  %s7367_s26 = smov 8  }
  0x37   : > { %4501 = dma.hbm_to_vmem [thread:$0]  (!%p5470_p10), %s7436_s1, 4096, %s258_s21, [#allocation6], %s7366_s25, %s7366_s25, %s7367_s26  }
  0x38   : > { %s7437_s4 = sld [smem:[#allocation60_spill]] }
  0x3e   : > { %s5174_s20 = scalar_lea.hbm %s7437_s4, 256 }
  0x3f   : > { %p5175_p1 = scmp.ne.s32.totalorder %s7437_s4, %s5174_s20  ;;  %p5181_p6 = scmp.lt.u32.totalorder %s5174_s20, %s7437_s4 }
  0x41   : > { %p5177_p2 = pnand %p5175_p1, %p5148_p12 }
  0x43   : > { %p5178_p4 = pneg %p5177_p2 }
  0x45   : > { %p5183_p8 = pnand %p5181_p6, %p5178_p4 }
  0x47   : > { %5186 = shalt.err (!%p5183_p8)
}
  0x48   : > { %s5187_s21 = scalar_lea.vmem %s5474_s24, 256  ;;  %p5195_p3 = scmp.lt.s32.totalorder %s5474_s24, %s5474_s24 }
  0x49   : > { %p5188_p11 = scmp.ne.s32.totalorder %s5474_s24, %s5187_s21  ;;  %p5196_p5 = scmp.lt.s32.totalorder %s5187_s21, %s5187_s21 }
  0x4b   : > { %p5190_p13 = pnand %p5188_p11, %p5148_p12  ;;  %p5197_p7 = por %p5196_p5, %p5195_p3 }
  0x4d   : > { %p5191_p0 = pneg %p5190_p13 }
  0x4f   : > { %p5198_p9 = pnand %p5197_p7, %p5191_p0 }
  0x51   : > { %5201 = shalt.err (!%p5198_p9)
}
  0x52   : > { %s5340_s8 = smov 64   ;;  %s5341_s30 = smov 4  }
  0x53   : > { %4504 = dma.hbm_to_vmem [thread:$0]  (!%p5470_p10), %s7437_s4, 256, %s5474_s24, [#allocation6], %s5340_s8, %s5340_s8, %s5341_s30  }
  0x54   : > { %s34_s18 = sadd.s32 1, %s5326_s10  ;;  %s37_s13 = sadd.s32 1, %s5330_s11 }
  0x55   : > { %p35_p12 = scmp.ge.s32.totalorder %s34_s18, 2  ;;  %s46_s14 = sadd.s32 1, %s5314_s29 }
  0x56   : > { %p53_p1 = scmp.ne.s32.totalorder %s5314_s29, %s5310_s28  ;;  %p54_p2 = scmp.eq.s32.totalorder %s5334_s12, 0 }
  0x57   : > { %s7568_s18 = smov (%p35_p12, %s34_s18), 0  ;;  %s7570_s13 = smov (!%p35_p12, %s37_s13), %s5330_s11 }
  0x58   : > { %7438 = sst [smem:[#allocation16_spill]] %s7568_s18  ;;  %s42_s20 = ssub.s32 %s5326_s10, %s7568_s18 }
  0x59   : > { %p5537_p4 = por %p54_p2, %p53_p1  ;;  %p39_p10 = scmp.ge.s32.totalorder %s7570_s13, 2 }
  0x5a   : > { %p7440_p6 = scmp.ne.s32.totalorder %s7430_s16, 0  ;;  %p4515_p11 = scmp.lt.s32.totalorder %s5334_s12, 4 }
  0x5b   : > { %s299_s23 = sand.u32 1, %s5314_s29   ;;  %s7572_s13 = smov (%p39_p10, %s7570_s13), 0 }
  0x5c   : > { %p5543_p8 = por %p7440_p6, %p53_p1  ;;  %s3903_s21 = sshll.u32 %s299_s23, 7 }
  0x5d   : > { %s41_s8 = ssub.s32 %s5330_s11, %s7572_s13  ;;  %s4008_s9 = sshll.u32 %s5326_s10, 4 }
  0x5e   : > { %s7441_s24 = scalar_select %p5543_p8, 1, 0 }
  0x5f   : > { %s43_s30 = sor.u32 %s42_s20, %s41_s8  ;;  %s3906_s27 = sshll.u32 %s5330_s11, 5 }
  0x60   : > { %7442 = sst [smem:[#allocation17_spill]] %s7441_s24  ;;  %p44_p13 = scmp.eq.s32.totalorder %s43_s30, 0 }
  0x61   : > { %s310_s25 = sadd.s32 %s4008_s9, %s3906_s27  ;;  %s303_s26 = scalar_lea.vmem [#allocation2], %s3903_s21 }
  0x62   : > { %s313_s16 = sshll.u32 %s303_s26, 4  ;;  %s3907_s4 = sshll.u32 %s310_s25, 7  ;;  %s5558_s16 = int_to_ptr.vmem [resolvable:$true] %s313_s16 }
  0x63   : > { %s5556_s1 = scalar_select %p44_p13, %s5314_s29, %s46_s14  }
  0x64   : > { %s5563_s7 = scalar_lea.hbm %s7350_s0, %s3907_s4  ;;  %p5569_p0 = pnand %p4515_p11, %p5537_p4 }
  0x65   : > { %s5573_s25 = scalar_lea.sflag [#allocation3], %s299_s23  ;;  %s5202_s26 = scalar_lea.hbm %s5563_s7, 2048 }
  0x66   : > { %p5203_p3 = scmp.ne.s32.totalorder %s5563_s7, %s5202_s26  ;;  %p5204_p5 = pneg %p5569_p0 }
  0x67   : > { %s5207_s14 = scalar_lea.hbm %s7350_s0, 8192  ;;  %p5208_p12 = scmp.lt.u32.totalorder %s5563_s7, %s7350_s0 }
  0x68   : > { %p5205_p7 = pnand %p5204_p5, %p5203_p3  ;;  %p5209_p1 = scmp.lt.u32.totalorder %s5207_s14, %s5202_s26 }
  0x69   : > { %p5211_p4 = scmp.lt.u32.totalorder %s5202_s26, %s5563_s7 }
  0x6a   : > { %p5206_p9 = pneg %p5205_p7  ;;  %p5210_p2 = por %p5209_p1, %p5208_p12 }
  0x6c   : > { %p5212_p10 = por %p5211_p4, %p5210_p2 }
  0x6e   : > { %p5213_p6 = pnand %p5212_p10, %p5206_p9 }
  0x70   : > { %5216 = shalt.err (!%p5213_p6)
}
  0x71   : > { %s5217_s23 = scalar_lea.vmem %s5558_s16, 2048  ;;  %s5342_s21 = smov [#allocation2]  }
  0x72   : > { %p5218_p11 = scmp.ne.s32.totalorder %s5558_s16, %s5217_s23  ;;  %s5222_s8 = sshll.u32 %s5342_s21, 4  ;;  %s5223_s8 = int_to_ptr.vmem [resolvable:$false] %s5222_s8 }
  0x73   : > { %s5224_s30 = scalar_lea.vmem %s5223_s8, 4096  ;;  %p5225_p7 = scmp.lt.s32.totalorder %s5558_s16, %s5223_s8 }
  0x74   : > { %p5220_p13 = pnand %p5218_p11, %p5204_p5  ;;  %p5226_p12 = scmp.lt.s32.totalorder %s5224_s30, %s5217_s23 }
  0x76   : > { %p5221_p3 = pneg %p5220_p13  ;;  %p5227_p1 = por %p5226_p12, %p5225_p7 }
  0x78   : > { %p5228_p2 = pnand %p5227_p1, %p5221_p3 }
  0x7a   : > { %5231 = shalt.err (!%p5228_p2)
}
  0x7b   : > { %s7444_s9 = smov 8   ;;  %s7445_s27 = smov 128  }
  0x7c   : > { %4508 = dma.hbm_to_vmem [thread:$0]  (!%p5569_p0), %s5563_s7, 2048, %s5558_s16, %s5573_s25, %s7445_s27, %s7445_s27, %s7444_s9  }
  0x7d   : > { %p7446_p5 = scmp.ne.s32.totalorder %s7434_s19, 0 }
  0x7f   : > { %325 = sbr.rel (%p7446_p5) target bundleno = 2233 (0x8b9), region = 52 }
  0x86   : > { %s5607_s26 = sand.u32 1, %s5310_s28   ;;  %p7447_p9 = scmp.ne.s32.totalorder %s7431_s17, 0 }
  0x87   : > { %s3909_s4 = sshll.u32 %s5607_s26, 7  ;;  %s328_s18 = scalar_lea.sflag [#allocation3], %s5607_s26 }
  0x88   : > { %s5613_s20 = scalar_lea.vmem [#allocation2], %s3909_s4 }
  0x89   : > { %5293 = dma.done.wait (%p7447_p9), %s328_s18, 2048  }
  0x8a   : > { %5295 = vsyncadd (%p7447_p9), %s328_s18, 4294965248  ;;  %p7448_p0 = scmp.ne.s32.totalorder %s7429_s15, 0 }
  0x8c   : > { %5297 = dma.done.wait (%p7448_p0), [#allocation6], 4352  }
  0x8d   : > { %5299 = vsyncadd (%p7448_p0), [#allocation6], 4294962944  ;;  %vm391_vm0 = vcmask 261120   ;;  %v375_v0 = vld [vmem:[%s5613_s20] sm:$0xff]  ;;  %v377_v2 = vld [vmem:[%s5613_s20 + $0x10] sm:$0xff]  ;;  %vm1003_vm1 = vcmask 64512  }
  0x8e   : > { %v379_v1 = vld [vmem:[%s5613_s20 + $0x20] sm:$0xff]  ;;  %v392_v3 = vsel %vm391_vm0, %v375_v0, 0.0  ;;  %v381_v5 = vld [vmem:[%s5613_s20 + $0x30] sm:$0xff]  ;;  %v395_v7 = vsel %vm391_vm0, %v377_v2, 0.0  ;;  %v5649_v16 = vld [vmem:[%s5613_s20 + $0x8] sm:$0xff]  ;;  %s5343_s14 = smov 120  }
  0x8f   : > { %v398_v4 = vsel %vm391_vm0, %v379_v1, 0.0  ;;  %393 = vadd.xlane.f32.xlu0 %v392_v3  ;;  %v5630_v6 = vld [vmem:[%s5613_s20 + $0x40] sm:$0xff]  ;;  %v401_v8 = vsel %vm391_vm0, %v381_v5, 0.0  ;;  %v385_v9 = vld [vmem:[%s5613_s20 + $0x50] sm:$0xff]  ;;  %v5652_v17 = vld [vmem:[%s5613_s20 + $0x18] sm:$0xff]  ;;  %v416_v18 = vsel %vm391_vm0, %v5649_v16, 0.0 }
  0x90   : > { %399 = vadd.xlane.f32.xlu1 %v398_v4  ;;  %v404_v10 = vsel %vm391_vm0, %v5630_v6, 0.0  ;;  %v407_v11 = vsel %vm391_vm0, %v385_v9, 0.0  ;;  %v5639_v12 = vld [vmem:[%s5613_s20 + $0x60] sm:$0xff]  ;;  %v5642_v13 = vld [vmem:[%s5613_s20 + $0x70] sm:$0xff]  ;;  %v419_v19 = vsel %vm391_vm0, %v5652_v17, 0.0  ;;  %v5659_v20 = vld [vmem:[%s5613_s20 + $0x28] sm:$0xff] }
  0x91   : > { %v410_v14 = vsel %vm391_vm0, %v5639_v12, 0.0  ;;  %v413_v15 = vsel %vm391_vm0, %v5642_v13, 0.0  ;;  %v5662_v21 = vld [vmem:[%s5613_s20 + $0x38] sm:$0xff]  ;;  %v422_v22 = vsel %vm391_vm0, %v5659_v20, 0.0  ;;  %v5669_v24 = vld [vmem:[%s5613_s20 + $0x48] sm:$0xff]  ;;  %s5344_s22 = smov 96  }
  0x92   : > { %v425_v23 = vsel %vm391_vm0, %v5662_v21, 0.0  ;;  %v5672_v25 = vld [vmem:[%s5613_s20 + $0x58] sm:$0xff]  ;;  %v428_v26 = vsel %vm391_vm0, %v5669_v24, 0.0  ;;  %v5679_v28 = vld [vmem:[%s5613_s20 + $0x68] sm:$0xff]  ;;  %s5345_s24 = smov 112   ;;  %s5346_s23 = smov 104  }
  0x93   : > { %396 = vadd.xlane.f32.xlu0 %v395_v7  ;;  %v431_v27 = vsel %vm391_vm0, %v5672_v25, 0.0  ;;  %v5682_v29 = vld [vmem:[%s5613_s20 + $0x78] sm:$0xff]  ;;  %v434_v30 = vsel %vm391_vm0, %v5679_v28, 0.0  ;;  %s5347_s21 = smov 64   ;;  %vm1896_vm2 = vcmask 523264   ;;  %s5348_s8 = smov 8  }
  0x94   : > { %402 = vadd.xlane.f32.xlu1 %v401_v8  ;;  %v437_v31 = vsel %vm391_vm0, %v5682_v29, 0.0  ;;  %s5349_s27 = smov 16   ;;  %s5350_s15 = smov 24   ;;  %vm3553_vm3 = vcmask 130048   ;;  %vm3570_vm4 = vcmask 195584  }
  0x95   : > { %s7551_s16 = sld [smem:[#allocation61_spill]]  ;;  %s7227_s25 = scalar_lea.vmem [#allocation8], %s3909_s4 }
  0x96   : > { %s7552_s4 = sld [smem:[#allocation13_spill]]  ;;  %s3788_s30 = sshll.u32 %s7227_s25, 4  ;;  %s7291_s30 = int_to_ptr.vmem [resolvable:$true] %s3788_s30 }
  0x97   : > { %405 = vadd.xlane.f32.xlu0 %v404_v10  ;;  %s7555_s7 = sld [smem:[#allocation62_spill]]  ;;  %s3772_s17 = scalar_lea.sflag [#allocation4], %s5607_s26 }
  0x98   : > { %408 = vadd.xlane.f32.xlu1 %v407_v11  ;;  %s5232_s19 = scalar_lea.vmem %s7291_s30, 2048 }
  0x99   : > { %p5233_p4 = scmp.ne.s32.totalorder %s7291_s30, %s5232_s19 }
  0x9b   : > { %411 = vadd.xlane.f32.xlu0 %v410_v14  ;;  %p5234_p10 = pnand %p5233_p4, %p5543_p8 }
  0x9c   : > { %414 = vadd.xlane.f32.xlu1 %v413_v15 }
  0x9d   : > { %p5235_p6 = pneg %p5234_p10 }
  0x9f   : > { %417 = vadd.xlane.f32.xlu0 %v416_v18 }
  0xa0   : > { %420 = vadd.xlane.f32.xlu1 %v419_v19 }
  0xa3   : > { %423 = vadd.xlane.f32.xlu0 %v422_v22 }
  0xa4   : > { %426 = vadd.xlane.f32.xlu1 %v425_v23 }
  0xa7   : > { %429 = vadd.xlane.f32.xlu0 %v428_v26 }
  0xa8   : > { %432 = vadd.xlane.f32.xlu1 %v431_v27 }
  0xab   : > { %435 = vadd.xlane.f32.xlu0 %v434_v30 }
  0xac   : > { %438 = vadd.xlane.f32.xlu1 %v437_v31 }
 0x11c   : > { %v394_v32 = vpop.xlane.xlu0 %393 }
 0x11d   : > { %v400_v33 = vpop.xlane.xlu1 %399  ;;  %v441_v34 = vmul.f32 0.03125, %v394_v32 }
 0x11e   : > { %v443_v35 = vmul.f32 0.03125, %v400_v33 }
 0x11f   : > { %v5688_v36 = vsub.f32 %v375_v0, %v441_v34 }
 0x120   : > { %v5690_v37 = vsub.f32 %v379_v1, %v443_v35  ;;  %v397_v38 = vpop.xlane.xlu0 %396 }
 0x121   : > { %v403_v39 = vpop.xlane.xlu1 %402  ;;  %v442_v40 = vmul.f32 0.03125, %v397_v38  ;;  %v473_v42 = vmul.f32 %v5688_v36, %v5688_v36 }
 0x122   : > { %v444_v41 = vmul.f32 0.03125, %v403_v39  ;;  %v475_v43 = vmul.f32 %v5690_v37, %v5690_v37 }
 0x123   : > { %v5696_v44 = vsub.f32 %v377_v2, %v442_v40  ;;  %v489_v46 = vsel %vm391_vm0, %v473_v42, 0.0 }
 0x124   : > { %v5698_v45 = vsub.f32 %v381_v5, %v444_v41  ;;  %490 = vadd.xlane.f32.xlu0 %v489_v46  ;;  %v406_v47 = vpop.xlane.xlu0 %405  ;;  %v495_v49 = vsel %vm391_vm0, %v475_v43, 0.0 }
 0x125   : > { %v409_v48 = vpop.xlane.xlu1 %408  ;;  %v445_v50 = vmul.f32 0.03125, %v406_v47  ;;  %v474_v52 = vmul.f32 %v5696_v44, %v5696_v44 }
 0x126   : > { %v446_v51 = vmul.f32 0.03125, %v409_v48  ;;  %v476_v53 = vmul.f32 %v5698_v45, %v5698_v45 }
 0x127   : > { %v5707_v54 = vsub.f32 %v5630_v6, %v445_v50  ;;  %v492_v56 = vsel %vm391_vm0, %v474_v52, 0.0 }
 0x128   : > { %v5709_v55 = vsub.f32 %v385_v9, %v446_v51  ;;  %496 = vadd.xlane.f32.xlu0 %v495_v49  ;;  %493 = vadd.xlane.f32.xlu1 %v492_v56  ;;  %v412_v57 = vpop.xlane.xlu0 %411  ;;  %v498_v59 = vsel %vm391_vm0, %v476_v53, 0.0  ;;  %v4839_v53 = vld [vmem:[#allocation7 + $0x8] sm:$0xff]  }
 0x129   : > { %v415_v58 = vpop.xlane.xlu1 %414  ;;  %v447_v60 = vmul.f32 0.03125, %v412_v57  ;;  %v477_v62 = vmul.f32 %v5707_v54, %v5707_v54 }
 0x12a   : > { %v448_v61 = vmul.f32 0.03125, %v415_v58  ;;  %v478_v63 = vmul.f32 %v5709_v55, %v5709_v55 }
 0x12b   : > { %v5718_v0 = vsub.f32 %v5639_v12, %v447_v60  ;;  %v501_v2 = vsel %vm391_vm0, %v477_v62, 0.0 }
 0x12c   : > { %v5721_v1 = vsub.f32 %v5642_v13, %v448_v61  ;;  %499 = vadd.xlane.f32.xlu1 %v498_v59  ;;  %502 = vadd.xlane.f32.xlu0 %v501_v2  ;;  %v418_v3 = vpop.xlane.xlu0 %417  ;;  %v504_v5 = vsel %vm391_vm0, %v478_v63, 0.0 }
 0x12d   : > { %v421_v4 = vpop.xlane.xlu1 %420  ;;  %v449_v6 = vmul.f32 0.03125, %v418_v3  ;;  %v479_v8 = vmul.f32 %v5718_v0, %v5718_v0 }
 0x12e   : > { %v450_v7 = vmul.f32 0.03125, %v421_v4  ;;  %v480_v9 = vmul.f32 %v5721_v1, %v5721_v1 }
 0x12f   : > { %v5730_v10 = vsub.f32 %v5649_v16, %v449_v6  ;;  %v507_v12 = vsel %vm391_vm0, %v479_v8, 0.0 }
 0x130   : > { %v5733_v11 = vsub.f32 %v5652_v17, %v450_v7  ;;  %505 = vadd.xlane.f32.xlu1 %v504_v5  ;;  %508 = vadd.xlane.f32.xlu0 %v507_v12  ;;  %v424_v13 = vpop.xlane.xlu0 %423  ;;  %v510_v15 = vsel %vm391_vm0, %v480_v9, 0.0 }
 0x131   : > { %v427_v14 = vpop.xlane.xlu1 %426  ;;  %v451_v18 = vmul.f32 0.03125, %v424_v13  ;;  %v481_v22 = vmul.f32 %v5730_v10, %v5730_v10 }
 0x132   : > { %v452_v19 = vmul.f32 0.03125, %v427_v14  ;;  %v482_v16 = vmul.f32 %v5733_v11, %v5733_v11 }
 0x133   : > { %v5742_v23 = vsub.f32 %v5659_v20, %v451_v18  ;;  %v513_v26 = vsel %vm391_vm0, %v481_v22, 0.0 }
 0x134   : > { %v5745_v17 = vsub.f32 %v5662_v21, %v452_v19  ;;  %511 = vadd.xlane.f32.xlu1 %v510_v15  ;;  %514 = vadd.xlane.f32.xlu0 %v513_v26  ;;  %v430_v27 = vpop.xlane.xlu0 %429  ;;  %v516_v31 = vsel %vm391_vm0, %v482_v16, 0.0 }
 0x135   : > { %v433_v30 = vpop.xlane.xlu1 %432  ;;  %v453_v32 = vmul.f32 0.03125, %v430_v27  ;;  %v483_v34 = vmul.f32 %v5742_v23, %v5742_v23 }
 0x136   : > { %v454_v33 = vmul.f32 0.03125, %v433_v30  ;;  %v484_v20 = vmul.f32 %v5745_v17, %v5745_v17 }
 0x137   : > { %v5754_v35 = vsub.f32 %v5669_v24, %v453_v32  ;;  %v519_v38 = vsel %vm391_vm0, %v483_v34, 0.0 }
 0x138   : > { %v5757_v21 = vsub.f32 %v5672_v25, %v454_v33  ;;  %517 = vadd.xlane.f32.xlu1 %v516_v31  ;;  %520 = vadd.xlane.f32.xlu0 %v519_v38  ;;  %v436_v39 = vpop.xlane.xlu0 %435  ;;  %v522_v41 = vsel %vm391_vm0, %v484_v20, 0.0  ;;  %v5783_v31 = vld [vmem:[%s7352_s2] ss:$0 sm:$0xff] }
 0x139   : > { %v439_v40 = vpop.xlane.xlu1 %438  ;;  %v455_v42 = vmul.f32 0.03125, %v436_v39  ;;  %v485_v46 = vmul.f32 %v5754_v35, %v5754_v35 }
 0x13a   : > { %v456_v43 = vmul.f32 0.03125, %v439_v40  ;;  %v486_v24 = vmul.f32 %v5757_v21, %v5757_v21 }
 0x13b   : > { %v5766_v47 = vsub.f32 %v5679_v28, %v455_v42  ;;  %v525_v48 = vsel %vm391_vm0, %v485_v46, 0.0 }
 0x13c   : > { %v5769_v25 = vsub.f32 %v5682_v29, %v456_v43  ;;  %523 = vadd.xlane.f32.xlu1 %v522_v41  ;;  %526 = vadd.xlane.f32.xlu0 %v525_v48  ;;  %v528_v49 = vsel %vm391_vm0, %v486_v24, 0.0  ;;  %v4838_v29 = vld [vmem:[#allocation7] sm:$0xff]  }
 0x13d   : > { %v487_v50 = vmul.f32 %v5766_v47, %v5766_v47  ;;  %4158 = vmatprep.subr.bf16.mxu0 %v4838_v29  ;;  %v5790_v43 = vld [vmem:[%s7353_s3] ss:$0 sm:$0xff] }
 0x13e   : > { %v488_v51 = vmul.f32 %v5769_v25, %v5769_v25  ;;  %4159 = vmatpush3.bf16.msra.mxu0 %v4838_v29 }
 0x13f   : > { %v531_v52 = vsel %vm391_vm0, %v487_v50, 0.0  ;;  %4160 = vmatprep.subr.bf16.mxu0 %v4839_v53 }
 0x140   : > { %529 = vadd.xlane.f32.xlu1 %v528_v49  ;;  %532 = vadd.xlane.f32.xlu0 %v531_v52  ;;  %v534_v28 = vsel %vm391_vm0, %v488_v51, 0.0 }
 0x142   : > { %4161 = vmatpush3.bf16.msra.mxu0 %v4839_v53 }
 0x144   : > { %535 = vadd.xlane.f32.xlu1 %v534_v28 }
 0x1b1   : > { %v491_v56 = vpop.xlane.xlu0 %490 }
 0x1b2   : > { %v537_v57 = vmul.f32 0.03125, %v491_v56 }
 0x1b4   : > { %v553_v58 = vadd.f32 1e-05, %v537_v57 }
 0x1b5   : > { %v494_v59 = vpop.xlane.xlu1 %493  ;;  %v497_v60 = vpop.xlane.xlu0 %496 }
 0x1b6   : > { %4842 = vrsqrt.f32 %v553_v58  ;;  %v538_v61 = vmul.f32 0.03125, %v494_v59  ;;  %v539_v62 = vmul.f32 0.03125, %v497_v60 }
 0x1b8   : > { %v554_v63 = vadd.f32 1e-05, %v538_v61  ;;  %v555_v2 = vadd.f32 1e-05, %v539_v62 }
 0x1b9   : > { %v500_v3 = vpop.xlane.xlu1 %499  ;;  %v503_v4 = vpop.xlane.xlu0 %502 }
 0x1ba   : > { %4844 = vrsqrt.f32 %v554_v63  ;;  %v540_v5 = vmul.f32 0.03125, %v500_v3  ;;  %v541_v6 = vmul.f32 0.03125, %v503_v4 }
 0x1bb   : > { %4846 = vrsqrt.f32 %v555_v2 }
 0x1bc   : > { %v556_v7 = vadd.f32 1e-05, %v540_v5  ;;  %v557_v8 = vadd.f32 1e-05, %v541_v6 }
 0x1bd   : > { %v506_v9 = vpop.xlane.xlu1 %505  ;;  %v509_v12 = vpop.xlane.xlu0 %508 }
 0x1be   : > { %4848 = vrsqrt.f32 %v556_v7  ;;  %v542_v13 = vmul.f32 0.03125, %v506_v9  ;;  %v543_v14 = vmul.f32 0.03125, %v509_v12 }
 0x1bf   : > { %4850 = vrsqrt.f32 %v557_v8 }
 0x1c0   : > { %v4843_v15 = vpop.eup %4842  ;;  %v558_v18 = vadd.f32 1e-05, %v542_v13  ;;  %v559_v19 = vadd.f32 1e-05, %v543_v14 }
 0x1c1   : > { %v512_v22 = vpop.xlane.xlu1 %511  ;;  %v515_v16 = vpop.xlane.xlu0 %514  ;;  %v585_v26 = vmul.f32 %v4843_v15, %v5688_v36 }
 0x1c2   : > { %4852 = vrsqrt.f32 %v558_v18  ;;  %v544_v27 = vmul.f32 0.03125, %v512_v22  ;;  %v545_v30 = vmul.f32 0.03125, %v515_v16 }
 0x1c3   : > { %4854 = vrsqrt.f32 %v559_v19  ;;  %v608_v41 = vmul.f32 %v5783_v31, %v585_v26 }
 0x1c4   : > { %v4845_v32 = vpop.eup %4844  ;;  %v560_v33 = vadd.f32 1e-05, %v544_v27  ;;  %v561_v34 = vadd.f32 1e-05, %v545_v30 }
 0x1c5   : > { %v4847_v20 = vpop.eup %4846  ;;  %v518_v38 = vpop.xlane.xlu1 %517  ;;  %v586_v40 = vmul.f32 %v4845_v32, %v5696_v44  ;;  %v631_v28 = vadd.f32 %v5790_v43, %v608_v41 }
 0x1c6   : > { %v521_v39 = vpop.xlane.xlu0 %520  ;;  %4856 = vrsqrt.f32 %v560_v33  ;;  %v546_v36 = vmul.f32 0.03125, %v518_v38  ;;  %v587_v46 = vmul.f32 %v4847_v20, %v5690_v37 }
 0x1c7   : > { %v547_v42 = vmul.f32 0.03125, %v521_v39  ;;  %4858 = vrsqrt.f32 %v561_v34  ;;  %v609_v24 = vmul.f32 %v5783_v31, %v586_v40 }
 0x1c8   : > { %v4849_v48 = vpop.eup %4848  ;;  %v562_v49 = vadd.f32 1e-05, %v546_v36  ;;  %v610_v56 = vmul.f32 %v5783_v31, %v587_v46 }
 0x1c9   : > { %v563_v50 = vadd.f32 1e-05, %v547_v42  ;;  %v4851_v51 = vpop.eup %4850  ;;  %v524_v44 = vpop.xlane.xlu1 %523  ;;  %v632_v29 = vadd.f32 %v5790_v43, %v609_v24  ;;  %v588_v53 = vmul.f32 %v4849_v48, %v5698_v45 }
 0x1ca   : > { %v527_v52 = vpop.xlane.xlu0 %526  ;;  %4860 = vrsqrt.f32 %v562_v49  ;;  %v548_v57 = vmul.f32 0.03125, %v524_v44  ;;  %v589_v60 = vmul.f32 %v4851_v51, %v5707_v54  ;;  %v633_v45 = vadd.f32 %v5790_v43, %v610_v56 }
 0x1cb   : > { %v549_v37 = vmul.f32 0.03125, %v527_v52  ;;  %4862 = vrsqrt.f32 %v563_v50  ;;  %v647_v58 = vpack.c.bf16 %v632_v29, %v631_v28  ;;  %v611_v59 = vmul.f32 %v5783_v31, %v588_v53 }
 0x1cc   : > { %v4853_v61 = vpop.eup %4852  ;;  %v564_v62 = vadd.f32 1e-05, %v548_v57  ;;  %v612_v7 = vmul.f32 %v5783_v31, %v589_v60 }
 0x1cd   : > { %v565_v63 = vadd.f32 1e-05, %v549_v37  ;;  %v4855_v2 = vpop.eup %4854  ;;  %v530_v3 = vpop.xlane.xlu1 %529  ;;  %4162 = vmatprep.mubr.msk.bf16.mxu0 %vm391_vm0, %v647_v58  ;;  %v634_v5 = vadd.f32 %v5790_v43, %v611_v59  ;;  %v590_v6 = vmul.f32 %v4853_v61, %v5709_v55 }
 0x1ce   : > { %v533_v4 = vpop.xlane.xlu0 %532  ;;  %4864 = vrsqrt.f32 %v564_v62  ;;  %v550_v8 = vmul.f32 0.03125, %v530_v3  ;;  %v591_v54 = vmul.f32 %v4855_v2, %v5718_v0  ;;  %v635_v55 = vadd.f32 %v5790_v43, %v612_v7 }
 0x1cf   : > { %v551_v9 = vmul.f32 0.03125, %v533_v4  ;;  %4866 = vrsqrt.f32 %v565_v63  ;;  %v648_v12 = vpack.c.bf16 %v634_v5, %v633_v45  ;;  %v613_v13 = vmul.f32 %v5783_v31, %v590_v6  ;;  %v3915_v45 = vld [vmem:[%s7355_s5] ss:$0 sm:$0xff] }
 0x1d0   : > { %v4857_v14 = vpop.eup %4856  ;;  %v566_v15 = vadd.f32 1e-05, %v550_v8  ;;  %v614_v27 = vmul.f32 %v5783_v31, %v591_v54 }
 0x1d1   : > { %v567_v18 = vadd.f32 1e-05, %v551_v9  ;;  %v4859_v19 = vpop.eup %4858  ;;  %v536_v22 = vpop.xlane.xlu1 %535  ;;  %4163 = vmatmul.mubr.msk.bf16.vlgmr.msra.gmra.mrb[0].mxu0 %vm391_vm0, %v648_v12  ;;  %v636_v16 = vadd.f32 %v5790_v43, %v613_v13  ;;  %v592_v26 = vmul.f32 %v4857_v14, %v5721_v1 }
 0x1d2   : > { %4868 = vrsqrt.f32 %v566_v15  ;;  %v552_v0 = vmul.f32 0.03125, %v536_v22  ;;  %v593_v30 = vmul.f32 %v4859_v19, %v5730_v10  ;;  %v637_v39 = vadd.f32 %v5790_v43, %v614_v27 }
 0x1d3   : > { %4870 = vrsqrt.f32 %v567_v18  ;;  %v649_v32 = vpack.c.bf16 %v636_v16, %v635_v55  ;;  %v615_v33 = vmul.f32 %v5783_v31, %v592_v26 }
 0x1d4   : > { %v4861_v34 = vpop.eup %4860  ;;  %v568_v20 = vadd.f32 1e-05, %v552_v0  ;;  %v616_v41 = vmul.f32 %v5783_v31, %v593_v30 }
 0x1d5   : > { %v4863_v38 = vpop.eup %4862  ;;  %4166 = vmatprep.mubr.msk.bf16.mxu0 %vm391_vm0, %v649_v32  ;;  %v638_v40 = vadd.f32 %v5790_v43, %v615_v33  ;;  %v594_v1 = vmul.f32 %v4861_v34, %v5733_v11 }
 0x1d6   : > { %4872 = vrsqrt.f32 %v568_v20  ;;  %v595_v10 = vmul.f32 %v4863_v38, %v5742_v23  ;;  %v639_v48 = vadd.f32 %v5790_v43, %v616_v41 }
 0x1d7   : > { %v650_v36 = vpack.c.bf16 %v638_v40, %v637_v39  ;;  %v617_v42 = vmul.f32 %v5783_v31, %v594_v1 }
 0x1d8   : > { %v4865_v46 = vpop.eup %4864  ;;  %v618_v11 = vmul.f32 %v5783_v31, %v595_v10 }
 0x1d9   : > { %v4867_v24 = vpop.eup %4866  ;;  %4167 = vmatmul.mubr.msk.bf16.gmra.mrb[4].mxu0 %vm391_vm0, %v650_v36  ;;  %v640_v49 = vadd.f32 %v5790_v43, %v617_v42  ;;  %v596_v50 = vmul.f32 %v4865_v46, %v5745_v17 }
 0x1da   : > { %v597_v51 = vmul.f32 %v4867_v24, %v5754_v35  ;;  %v641_v29 = vadd.f32 %v5790_v43, %v618_v11 }
 0x1db   : > { %v651_v44 = vpack.c.bf16 %v640_v49, %v639_v48  ;;  %v619_v23 = vmul.f32 %v5783_v31, %v596_v50 }
 0x1dc   : > { %v4869_v52 = vpop.eup %4868  ;;  %v620_v57 = vmul.f32 %v5783_v31, %v597_v51 }
 0x1dd   : > { %v4871_v28 = vpop.eup %4870  ;;  %4170 = vmatprep.mubr.msk.bf16.mxu0 %vm391_vm0, %v651_v44  ;;  %v642_v53 = vadd.f32 %v5790_v43, %v619_v23  ;;  %v598_v56 = vmul.f32 %v4869_v52, %v5757_v21 }
 0x1de   : > { %v599_v17 = vmul.f32 %v4871_v28, %v5766_v47  ;;  %v643_v59 = vadd.f32 %v5790_v43, %v620_v57 }
 0x1df   : > { %v652_v37 = vpack.c.bf16 %v642_v53, %v641_v29  ;;  %v621_v35 = vmul.f32 %v5783_v31, %v598_v56 }
 0x1e0   : > { %v4873_v58 = vpop.eup %4872  ;;  %v622_v62 = vmul.f32 %v5783_v31, %v599_v17 }
 0x1e1   : > { %4171 = vmatmul.mubr.msk.bf16.gmra.mrb[8].mxu0 %vm391_vm0, %v652_v37  ;;  %v644_v60 = vadd.f32 %v5790_v43, %v621_v35  ;;  %v600_v61 = vmul.f32 %v4873_v58, %v5769_v25 }
 0x1e2   : > { %v645_v47 = vadd.f32 %v5790_v43, %v622_v62 }
 0x1e3   : > { %v653_v63 = vpack.c.bf16 %v644_v60, %v643_v59  ;;  %v623_v21 = vmul.f32 %v5783_v31, %v600_v61 }
 0x1e5   : > { %4174 = vmatprep.mubr.msk.bf16.mxu0 %vm391_vm0, %v653_v63  ;;  %v646_v2 = vadd.f32 %v5790_v43, %v623_v21 }
 0x1e7   : > { %v654_v3 = vpack.c.bf16 %v646_v2, %v645_v47 }
 0x1e9   : > { %4175 = vmatmul.mubr.msk.bf16.gmra.mrb[12].mxu0 %vm391_vm0, %v654_v3 }
 0x2a4   : > { %v4164_v4 = vpop.f32.mrb[0].mxu0 }
 0x2a5   : > { %v736_v25 = vpop.f32.mrb[1].mxu0  ;;  %v745_v6 = vadd.f32 %v4164_v4, %v3915_v45 }
 0x2a6   : > { %v4165_v5 = vpop.f32.mrb[2].mxu0  ;;  %v737_v31 = vadd.f32 %v3915_v45, %v736_v25 }
 0x2a7   : > { %v748_v7 = vadd.f32 %v4165_v5, %v3915_v45  ;;  %v739_v8 = vpop.f32.mrb[3].mxu0 }
 0x2a8   : > { %v740_v9 = vadd.f32 %v3915_v45, %v739_v8 }
 0x2a9   : > { %v5848_v54 = vpack.i.bf16 %v748_v7, %v745_v6  ;;  %v5850_v12 = vpack.c.bf16 %v748_v7, %v745_v6 }
 0x2aa   : > { %v5852_v43 = vpack.i.bf16 %v740_v9, %v737_v31  ;;  %v5854_v13 = vpack.c.bf16 %v740_v9, %v737_v31 }
 0x2ab   : > { %4604 = vrot.lane.b32.xlu1 %v5848_v54, %s5343_s14 }
 0x2ac   : > { %4599 = vrot.lane.b32.xlu0 %v5852_v43, %s5343_s14  ;;  %v4168_v14 = vpop.f32.mrb[4].mxu0  ;;  %4186 = vmatprep.mubr.msk.bf16.mxu1 %vm1003_vm1, %v5854_v13 }
 0x2ad   : > { %v752_v15 = vpop.f32.mrb[5].mxu0  ;;  %v761_v19 = vadd.f32 %v4168_v14, %v3915_v45 }
 0x2ae   : > { %v4169_v18 = vpop.f32.mrb[6].mxu0  ;;  %v753_v16 = vadd.f32 %v3915_v45, %v752_v15 }
 0x2af   : > { %v764_v22 = vadd.f32 %v4169_v18, %v3915_v45  ;;  %v755_v55 = vpop.f32.mrb[7].mxu0 }
 0x2b0   : > { %v756_v26 = vadd.f32 %v3915_v45, %v755_v55 }
 0x2b1   : > { %v5862_v27 = vpack.i.bf16 %v764_v22, %v761_v19  ;;  %v5864_v0 = vpack.c.bf16 %v764_v22, %v761_v19 }
 0x2b2   : > { %v5866_v30 = vpack.i.bf16 %v756_v26, %v753_v16  ;;  %v5868_v32 = vpack.c.bf16 %v756_v26, %v753_v16 }
 0x2b3   : > { %4619 = vrot.lane.b32.xlu0 %v5862_v27, %s5343_s14 }
 0x2b4   : > { %4609 = vrot.lane.b32.xlu1 %v5866_v30, %s5343_s14  ;;  %v4172_v33 = vpop.f32.mrb[8].mxu0 }
 0x2b5   : > { %v768_v34 = vpop.f32.mrb[9].mxu0  ;;  %v777_v38 = vadd.f32 %v4172_v33, %v3915_v45 }
 0x2b6   : > { %v4173_v20 = vpop.f32.mrb[10].mxu0  ;;  %v769_v1 = vadd.f32 %v3915_v45, %v768_v34 }
 0x2b7   : > { %v780_v39 = vadd.f32 %v4173_v20, %v3915_v45  ;;  %995 = vrot.lane.b32.xlu0 %v5854_v13, %s5344_s22  ;;  %v771_v40 = vpop.f32.mrb[11].mxu0 }
 0x2b8   : > { %v772_v41 = vadd.f32 %v3915_v45, %v771_v40 }
 0x2b9   : > { %v5876_v10 = vpack.i.bf16 %v780_v39, %v777_v38  ;;  %v5878_v36 = vpack.c.bf16 %v780_v39, %v777_v38 }
 0x2ba   : > { %v5880_v42 = vpack.i.bf16 %v772_v41, %v769_v1  ;;  %v5882_v46 = vpack.c.bf16 %v772_v41, %v769_v1 }
 0x2bb   : > { %4629 = vrot.lane.b32.xlu0 %v5852_v43, %s5345_s24 }
 0x2bc   : > { %4614 = vrot.lane.b32.xlu1 %v5880_v42, %s5343_s14  ;;  %v4176_v24 = vpop.f32.mrb[12].mxu0  ;;  %4202 = vmatprep.mubr.msk.bf16.mxu0 %vm1003_vm1, %v5882_v46 }
 0x2bd   : > { %v784_v48 = vpop.f32.mrb[13].mxu0  ;;  %v793_v50 = vadd.f32 %v4176_v24, %v3915_v45 }
 0x2be   : > { %v4177_v49 = vpop.f32.mrb[14].mxu0  ;;  %v785_v44 = vadd.f32 %v3915_v45, %v784_v48 }
 0x2bf   : > { %v796_v11 = vadd.f32 %v4177_v49, %v3915_v45  ;;  %v787_v51 = vpop.f32.mrb[15].mxu0 }
 0x2c0   : > { %v788_v23 = vadd.f32 %v3915_v45, %v787_v51  ;;  %4624 = vrot.lane.b32.xlu1 %v5876_v10, %s5343_s14 }
 0x2c1   : > { %v5892_v52 = vpack.i.bf16 %v796_v11, %v793_v50  ;;  %v5894_v28 = vpack.c.bf16 %v796_v11, %v793_v50 }
 0x2c2   : > { %v5896_v29 = vpack.i.bf16 %v788_v23, %v785_v44  ;;  %v5898_v53 = vpack.c.bf16 %v788_v23, %v785_v44 }
 0x2c3   : > { %4639 = vrot.lane.b32.xlu0 %v5892_v52, %s5343_s14 }
 0x2c4   : > { %4634 = vrot.lane.b32.xlu1 %v5896_v29, %s5343_s14  ;;  %s7553_s14 = sld [smem:[#allocation14_spill]] }
 0x2c7   : > { %999 = vrot.lane.b32.xlu0 %v5868_v32, %s5344_s22 }
 0x2c8   : > { %997 = vrot.lane.b32.xlu1 %v5850_v12, %s5344_s22 }
 0x2cb   : > { %4649 = vrot.lane.b32.xlu0 %v5866_v30, %s5345_s24 }
 0x2cc   : > { %4644 = vrot.lane.b32.xlu1 %v5848_v54, %s5345_s24 }
 0x2cf   : > { %1001 = vrot.lane.b32.xlu0 %v5864_v0, %s5344_s22 }
 0x2d0   : > { %1097 = vrot.lane.b32.xlu1 %v5882_v46, %s5344_s22 }
 0x2d3   : > { %4659 = vrot.lane.b32.xlu0 %v5862_v27, %s5345_s24 }
 0x2d4   : > { %4654 = vrot.lane.b32.xlu1 %v5880_v42, %s5345_s24 }
 0x2d7   : > { %1101 = vrot.lane.b32.xlu0 %v5898_v53, %s5344_s22 }
 0x2d8   : > { %1099 = vrot.lane.b32.xlu1 %v5878_v36, %s5344_s22 }
 0x2db   : > { %4669 = vrot.lane.b32.xlu0 %v5896_v29, %s5345_s24 }
 0x2dc   : > { %4664 = vrot.lane.b32.xlu1 %v5876_v10, %s5345_s24 }
 0x2df   : > { %1103 = vrot.lane.b32.xlu0 %v5894_v28, %s5344_s22 }
 0x2e3   : > { %4679 = vrot.lane.b32.xlu0 %v5892_v52, %s5345_s24  ;;  %s4004_s24 = sshll.u32 %s7553_s14, 5 }
 0x31d   : > { %v4605_v35 = vpop.permute.xlu1 %4604 }
 0x31e   : > { %v4600_v56 = vpop.permute.xlu0 %4599  ;;  %v4607_v59 = vunpack.i.h.bf16 %v4605_v35  ;;  %v4606_v60 = vunpack.i.l.bf16 %v4605_v35 }
 0x31f   : > { %v4602_v57 = vunpack.i.h.bf16 %v4600_v56  ;;  %v4601_v17 = vunpack.i.l.bf16 %v4600_v56 }
 0x320   : > { %v5942_v3 = vpack.c.bf16 %v4607_v59, %v4606_v60 }
 0x321   : > { %v5932_v37 = vpack.c.bf16 %v4602_v57, %v4601_v17 }
 0x323   : > { %1198 = vrot.lane.b32.xlu1 %v5932_v37, %s5344_s22 }
 0x325   : > { %v4620_v58 = vpop.permute.xlu0 %4619 }
 0x326   : > { %v4610_v61 = vpop.permute.xlu1 %4609  ;;  %v4622_v4 = vunpack.i.h.bf16 %v4620_v58  ;;  %v4621_v45 = vunpack.i.l.bf16 %v4620_v58 }
 0x327   : > { %v4612_v62 = vunpack.i.h.bf16 %v4610_v61  ;;  %v4611_v63 = vunpack.i.l.bf16 %v4610_v61  ;;  %4674 = vrot.lane.b32.xlu1 %v5852_v43, %s5346_s23 }
 0x328   : > { %v5952_v8 = vpack.c.bf16 %v4622_v4, %v4621_v45 }
 0x329   : > { %v996_v21 = vpop.permute.xlu0 %995  ;;  %v5938_v47 = vpack.c.bf16 %v4612_v62, %v4611_v63 }
 0x32a   : > { %4454 = vmatprep.subr.msk.bf16.mxu1 %vm1003_vm1, %v996_v21  ;;  %v1017_v2 = vsel %vm1003_vm1, %v996_v21, 0 }
 0x32b   : > { %1202 = vrot.lane.b32.xlu0 %v5938_v47, %s5344_s22  ;;  %4179 = vmatpush3.bf16.xpose.msra.mxu1 %v1017_v2 }
 0x32c   : > { %1200 = vrot.lane.b32.xlu1 %v5942_v3, %s5344_s22 }
 0x32d   : > { %v4630_v7 = vpop.permute.xlu0 %4629 }
 0x32e   : > { %v4615_v25 = vpop.permute.xlu1 %4614  ;;  %v4632_v33 = vunpack.i.h.bf16 %v4630_v7  ;;  %v4631_v34 = vunpack.i.l.bf16 %v4630_v7 }
 0x32f   : > { %v4617_v5 = vunpack.i.h.bf16 %v4615_v25  ;;  %v4616_v6 = vunpack.i.l.bf16 %v4615_v25  ;;  %4689 = vrot.lane.b32.xlu0 %v5866_v30, %s5346_s23 }
 0x330   : > { %4684 = vrot.lane.b32.xlu1 %v5848_v54, %s5346_s23  ;;  %v5981_v50 = vpack.c.bf16 %v4632_v33, %v4631_v34 }
 0x331   : > { %v5954_v31 = vpack.c.bf16 %v4617_v5, %v4616_v6 }
 0x332   : > { %v4625_v9 = vpop.permute.xlu1 %4624 }
 0x333   : > { %1204 = vrot.lane.b32.xlu0 %v5952_v8, %s5344_s22  ;;  %v4627_v14 = vunpack.i.h.bf16 %v4625_v9  ;;  %v4626_v15 = vunpack.i.l.bf16 %v4625_v9 }
 0x334   : > { %1299 = vrot.lane.b32.xlu1 %v5954_v31, %s5344_s22 }
 0x335   : > { %v4640_v43 = vpop.permute.xlu0 %4639  ;;  %v5966_v26 = vpack.c.bf16 %v4627_v14, %v4626_v15 }
 0x336   : > { %v4635_v18 = vpop.permute.xlu1 %4634  ;;  %v4642_v24 = vunpack.i.h.bf16 %v4640_v43  ;;  %v4641_v48 = vunpack.i.l.bf16 %v4640_v43 }
 0x337   : > { %v4637_v19 = vunpack.i.h.bf16 %v4635_v18  ;;  %v4636_v22 = vunpack.i.l.bf16 %v4635_v18  ;;  %4699 = vrot.lane.b32.xlu0 %v5862_v27, %s5346_s23 }
 0x338   : > { %4694 = vrot.lane.b32.xlu1 %v5880_v42, %s5346_s23  ;;  %v5993_v57 = vpack.c.bf16 %v4642_v24, %v4641_v48 }
 0x339   : > { %v1000_v54 = vpop.permute.xlu0 %999  ;;  %v5964_v55 = vpack.c.bf16 %v4637_v19, %v4636_v22 }
 0x33a   : > { %v998_v16 = vpop.permute.xlu1 %997  ;;  %v1023_v11 = vsel %vm1003_vm1, %v1000_v54, 0 }
 0x33b   : > { %4455 = vmatprep.subr.msk.bf16.mxu1 %vm1003_vm1, %v998_v16  ;;  %1303 = vrot.lane.b32.xlu0 %v5964_v55, %s5344_s22  ;;  %v1020_v30 = vsel %vm1003_vm1, %v998_v16, 0 }
 0x33c   : > { %1301 = vrot.lane.b32.xlu1 %v5966_v26, %s5344_s22  ;;  %4181 = vmatpush3.bf16.xpose.msra.mxu1 %v1020_v30 }
 0x33d   : > { %4456 = vmatprep.subr.msk.bf16.mxu1 %vm1003_vm1, %v1000_v54  ;;  %v4650_v27 = vpop.permute.xlu0 %4649 }
 0x33e   : > { %v4645_v20 = vpop.permute.xlu1 %4644  ;;  %v4652_v40 = vunpack.i.h.bf16 %v4650_v27  ;;  %v4651_v1 = vunpack.i.l.bf16 %v4650_v27 }
 0x33f   : > { %v4647_v38 = vunpack.i.h.bf16 %v4645_v20  ;;  %v4646_v39 = vunpack.i.l.bf16 %v4645_v20  ;;  %4709 = vrot.lane.b32.xlu0 %v5896_v29, %s5346_s23 }
 0x340   : > { %4704 = vrot.lane.b32.xlu1 %v5876_v10, %s5346_s23  ;;  %v5991_v44 = vpack.c.bf16 %v4652_v40, %v4651_v1 }
 0x341   : > { %v1002_v41 = vpop.permute.xlu0 %1001  ;;  %v5979_v42 = vpack.c.bf16 %v4647_v38, %v4646_v39 }
 0x342   : > { %v1098_v49 = vpop.permute.xlu1 %1097  ;;  %v1026_v61 = vsel %vm1003_vm1, %v1002_v41, 0 }
 0x343   : > { %4458 = vmatprep.subr.msk.bf16.mxu0 %vm1003_vm1, %v1098_v49  ;;  %1402 = vrot.lane.b32.xlu0 %v5979_v42, %s5344_s22  ;;  %v1118_v51 = vsel %vm1003_vm1, %v1098_v49, 0 }
 0x344   : > { %1400 = vrot.lane.b32.xlu1 %v5981_v50, %s5344_s22  ;;  %4183 = vmatpush3.bf16.xpose.msra.mxu1 %v1023_v11 }
 0x345   : > { %4195 = vmatpush3.bf16.xpose.msra.mxu0 %v1118_v51  ;;  %4457 = vmatprep.subr.msk.bf16.mxu1 %vm1003_vm1, %v1002_v41  ;;  %v4660_v10 = vpop.permute.xlu0 %4659 }
 0x346   : > { %v4662_v23 = vunpack.i.h.bf16 %v4660_v10  ;;  %v4661_v29 = vunpack.i.l.bf16 %v4660_v10  ;;  %v4655_v56 = vpop.permute.xlu1 %4654 }
 0x347   : > { %1404 = vrot.lane.b32.xlu0 %v5991_v44, %s5344_s22  ;;  %v4657_v58 = vunpack.i.h.bf16 %v4655_v56  ;;  %v4656_v59 = vunpack.i.l.bf16 %v4655_v56 }
 0x348   : > { %1305 = vrot.lane.b32.xlu1 %v5993_v57, %s5344_s22  ;;  %v5999_v17 = vpack.c.bf16 %v4662_v23, %v4661_v29 }
 0x349   : > { %v1102_v35 = vpop.permute.xlu0 %1101  ;;  %v6009_v45 = vpack.c.bf16 %v4657_v58, %v4656_v59 }
 0x34a   : > { %v1100_v60 = vpop.permute.xlu1 %1099 }
 0x34b   : > { %4459 = vmatprep.subr.msk.bf16.mxu0 %vm1003_vm1, %v1100_v60  ;;  %1406 = vrot.lane.b32.xlu0 %v5999_v17, %s5344_s22  ;;  %v1121_v62 = vsel %vm1003_vm1, %v1100_v60, 0 }
 0x34c   : > { %4714 = vrot.lane.b32.xlu1 %v5892_v52, %s5346_s23  ;;  %4185 = vmatpush3.bf16.xpose.msra.mxu1 %v1026_v61  ;;  %v1124_v52 = vsel %vm1003_vm1, %v1102_v35, 0 }
 0x34d   : > { %4197 = vmatpush3.bf16.xpose.msra.mxu0 %v1121_v62  ;;  %v4670_v63 = vpop.permute.xlu0 %4669 }
 0x34e   : > { %4460 = vmatprep.subr.msk.bf16.mxu0 %vm1003_vm1, %v1102_v35  ;;  %v4672_v21 = vunpack.i.h.bf16 %v4670_v63  ;;  %v4671_v2 = vunpack.i.l.bf16 %v4670_v63  ;;  %v4665_v4 = vpop.permute.xlu1 %4664 }
 0x34f   : > { %v4667_v25 = vunpack.i.h.bf16 %v4665_v4  ;;  %v4666_v5 = vunpack.i.l.bf16 %v4665_v4 }
 0x350   : > { %1501 = vrot.lane.b32.xlu1 %v6009_v45, %s5344_s22  ;;  %v6013_v6 = vpack.c.bf16 %v4672_v21, %v4671_v2 }
 0x351   : > { %v1104_v7 = vpop.permute.xlu0 %1103  ;;  %v6015_v9 = vpack.c.bf16 %v4667_v25, %v4666_v5 }
 0x352   : > { %1505 = vrot.lane.b32.xlu0 %v6013_v6, %s5344_s22  ;;  %v1127_v19 = vsel %vm1003_vm1, %v1104_v7, 0 }
 0x353   : > { %4187 = vmatmul.mubr.msk.bf16.vlgmr.msra.gmra.mrb[0].mxu1 %vm1003_vm1, %v5850_v12 }
 0x354   : > { %1503 = vrot.lane.b32.xlu1 %v6015_v9, %s5344_s22  ;;  %4190 = vmatprep.mubr.msk.bf16.mxu1 %vm1003_vm1, %v5868_v32 }
 0x355   : > { %4199 = vmatpush3.bf16.xpose.msra.mxu0 %v1124_v52  ;;  %v4680_v43 = vpop.permute.xlu0 %4679 }
 0x356   : > { %4461 = vmatprep.subr.msk.bf16.mxu0 %vm1003_vm1, %v1104_v7  ;;  %v4682_v14 = vunpack.i.h.bf16 %v4680_v43  ;;  %v4681_v15 = vunpack.i.l.bf16 %v4680_v43 }
 0x358   : > { %v6027_v18 = vpack.c.bf16 %v4682_v14, %v4681_v15 }
 0x35a   : > { %1507 = vrot.lane.b32.xlu0 %v6027_v18, %s5344_s22 }
 0x35b   : > { %4191 = vmatmul.mubr.msk.bf16.gmra.mrb[4].mxu1 %vm1003_vm1, %v5864_v0 }
 0x35c   : > { %4218 = vmatprep.mubr.msk.bf16.mxu1 %vm1003_vm1, %v5932_v37 }
 0x35d   : > { %4201 = vmatpush3.bf16.xpose.msra.mxu0 %v1127_v19 }
 0x364   : > { %4203 = vmatmul.mubr.msk.bf16.vlgmr.msra.gmra.mrb[16].mxu0 %vm1003_vm1, %v5878_v36 }
 0x365   : > { %4206 = vmatprep.mubr.msk.bf16.mxu0 %vm1003_vm1, %v5898_v53 }
 0x36c   : > { %4207 = vmatmul.mubr.msk.bf16.gmra.mrb[20].mxu0 %vm1003_vm1, %v5894_v28 }
 0x36d   : > { %4234 = vmatprep.mubr.msk.bf16.mxu0 %vm1003_vm1, %v5954_v31 }
 0x395   : > { %v1199_v22 = vpop.permute.xlu1 %1198 }
 0x396   : > { %4462 = vmatprep.subr.msk.bf16.mxu1 %vm1003_vm1, %v1199_v22  ;;  %v1219_v54 = vsel %vm1003_vm1, %v1199_v22, 0 }
 0x397   : > { %4211 = vmatpush3.bf16.xpose.msra.mxu1 %v1219_v54 }
 0x399   : > { %v4675_v16 = vpop.permute.xlu1 %4674 }
 0x39a   : > { %v4677_v30 = vunpack.i.h.bf16 %v4675_v16  ;;  %v4676_v27 = vunpack.i.l.bf16 %v4675_v16 }
 0x39c   : > { %v6046_v33 = vpack.c.bf16 %v4677_v30, %v4676_v27 }
 0x39d   : > { %v1203_v34 = vpop.permute.xlu0 %1202 }
 0x39e   : > { %v1201_v20 = vpop.permute.xlu1 %1200  ;;  %1602 = vrot.lane.b32.xlu1 %v6046_v33, %s5344_s22  ;;  %v1225_v23 = vsel %vm1003_vm1, %v1203_v34, 0 }
 0x39f   : > { %4463 = vmatprep.subr.msk.bf16.mxu1 %vm1003_vm1, %v1201_v20  ;;  %v1222_v38 = vsel %vm1003_vm1, %v1201_v20, 0 }
 0x3a0   : > { %4213 = vmatpush3.bf16.xpose.msra.mxu1 %v1222_v38 }
 0x3a1   : > { %4464 = vmatprep.subr.msk.bf16.mxu1 %vm1003_vm1, %v1203_v34  ;;  %v4690_v39 = vpop.permute.xlu0 %4689 }
 0x3a2   : > { %v4692_v40 = vunpack.i.h.bf16 %v4690_v39  ;;  %v4691_v1 = vunpack.i.l.bf16 %v4690_v39  ;;  %v4685_v41 = vpop.permute.xlu1 %4684 }
 0x3a3   : > { %v4687_v24 = vunpack.i.h.bf16 %v4685_v41  ;;  %v4686_v48 = vunpack.i.l.bf16 %v4685_v41 }
 0x3a4   : > { %v6053_v49 = vpack.c.bf16 %v4692_v40, %v4691_v1 }
 0x3a5   : > { %v1205_v11 = vpop.permute.xlu0 %1204  ;;  %v6055_v51 = vpack.c.bf16 %v4687_v24, %v4686_v48 }
 0x3a6   : > { %v1300_v10 = vpop.permute.xlu1 %1299  ;;  %1606 = vrot.lane.b32.xlu0 %v6053_v49, %s5344_s22  ;;  %v1228_v4 = vsel %vm1003_vm1, %v1205_v11, 0 }
 0x3a7   : > { %4466 = vmatprep.subr.msk.bf16.mxu0 %vm1003_vm1, %v1300_v10  ;;  %1604 = vrot.lane.b32.xlu1 %v6055_v51, %s5344_s22  ;;  %v1320_v29 = vsel %vm1003_vm1, %v1300_v10, 0 }
 0x3a8   : > { %4215 = vmatpush3.bf16.xpose.msra.mxu1 %v1225_v23  ;;  %4227 = vmatpush3.bf16.xpose.msra.mxu0 %v1320_v29 }
 0x3a9   : > { %4465 = vmatprep.subr.msk.bf16.mxu1 %vm1003_vm1, %v1205_v11  ;;  %v4700_v56 = vpop.permute.xlu0 %4699 }
 0x3aa   : > { %v4702_v35 = vunpack.i.h.bf16 %v4700_v56  ;;  %v4701_v58 = vunpack.i.l.bf16 %v4700_v56  ;;  %v4695_v59 = vpop.permute.xlu1 %4694  ;;  %v6213_v56 = vld [vmem:[#allocation5 + $0x18] sm:$0xff] }
 0x3ab   : > { %v4697_v60 = vunpack.i.h.bf16 %v4695_v59  ;;  %v4696_v61 = vunpack.i.l.bf16 %v4695_v59 }
 0x3ac   : > { %v6065_v62 = vpack.c.bf16 %v4702_v35, %v4701_v58 }
 0x3ad   : > { %v1304_v63 = vpop.permute.xlu0 %1303  ;;  %v6067_v21 = vpack.c.bf16 %v4697_v60, %v4696_v61 }
 0x3ae   : > { %v1302_v2 = vpop.permute.xlu1 %1301  ;;  %1608 = vrot.lane.b32.xlu0 %v6065_v62, %s5344_s22  ;;  %v1326_v16 = vsel %vm1003_vm1, %v1304_v63, 0 }
 0x3af   : > { %4467 = vmatprep.subr.msk.bf16.mxu0 %vm1003_vm1, %v1302_v2  ;;  %1703 = vrot.lane.b32.xlu1 %v6067_v21, %s5344_s22  ;;  %v1323_v25 = vsel %vm1003_vm1, %v1302_v2, 0 }
 0x3b0   : > { %4217 = vmatpush3.bf16.xpose.msra.mxu1 %v1228_v4  ;;  %4229 = vmatpush3.bf16.xpose.msra.mxu0 %v1323_v25 }
 0x3b1   : > { %4468 = vmatprep.subr.msk.bf16.mxu0 %vm1003_vm1, %v1304_v63  ;;  %v4710_v5 = vpop.permute.xlu0 %4709 }
 0x3b2   : > { %v4712_v7 = vunpack.i.h.bf16 %v4710_v5  ;;  %v4711_v52 = vunpack.i.l.bf16 %v4710_v5  ;;  %v4705_v43 = vpop.permute.xlu1 %4704 }
 0x3b3   : > { %v4707_v14 = vunpack.i.h.bf16 %v4705_v43  ;;  %v4706_v15 = vunpack.i.l.bf16 %v4705_v43 }
 0x3b4   : > { %v6077_v19 = vpack.c.bf16 %v4712_v7, %v4711_v52  ;;  %v1804_v52 = vld [vmem:[#allocation5 + $0x20] sm:$0xff] }
 0x3b5   : > { %v6079_v22 = vpack.c.bf16 %v4707_v14, %v4706_v15  ;;  %v1403_v27 = vpop.permute.xlu0 %1402  ;;  %v1801_v14 = vld [vmem:[#allocation5 + $0x8] sm:$0xff] }
 0x3b6   : > { %7449 = vst [vmem:[#allocation18_spill] sm:$0xff] %v6077_v19  ;;  %v1401_v54 = vpop.permute.xlu1 %1400  ;;  %1707 = vrot.lane.b32.xlu0 %v6077_v19, %s5344_s22  ;;  %v1424_v1 = vsel %vm1003_vm1, %v1403_v27, 0 }
 0x3b7   : > { %4470 = vmatprep.subr.msk.bf16.mxu1 %vm1003_vm1, %v1401_v54  ;;  %1705 = vrot.lane.b32.xlu1 %v6079_v22, %s5344_s22  ;;  %v1421_v30 = vsel %vm1003_vm1, %v1401_v54, 0 }
 0x3b8   : > { %4219 = vmatmul.mubr.msk.bf16.vlgmr.msra.gmra.mrb[8].mxu1 %vm1003_vm1, %v5942_v3  ;;  %4231 = vmatpush3.bf16.xpose.msra.mxu0 %v1326_v16 }
 0x3b9   : > { %4222 = vmatprep.mubr.msk.bf16.mxu1 %vm1003_vm1, %v5938_v47  ;;  %4243 = vmatpush3.bf16.xpose.msra.mxu1 %v1421_v30  ;;  %v1405_v41 = vpop.permute.xlu0 %1404 }
 0x3ba   : > { %4471 = vmatprep.subr.msk.bf16.mxu1 %vm1003_vm1, %v1403_v27  ;;  %v1306_v34 = vpop.permute.xlu1 %1305  ;;  %2633 = vrot.lane.b32.xlu0 %v5854_v13, %s5347_s21 }
 0x3bb   : > { %4469 = vmatprep.subr.msk.bf16.mxu0 %vm1003_vm1, %v1306_v34  ;;  %v1329_v40 = vsel %vm1003_vm1, %v1306_v34, 0 }
 0x3bd   : > { %v1407_v11 = vpop.permute.xlu0 %1406 }
 0x3be   : > { %v4715_v20 = vpop.permute.xlu1 %4714  ;;  %2639 = vrot.lane.b32.xlu0 %v5864_v0, %s5347_s21  ;;  %v1430_v10 = vsel %vm1003_vm1, %v1407_v11, 0 }
 0x3bf   : > { %v4717_v38 = vunpack.i.h.bf16 %v4715_v20  ;;  %v4716_v39 = vunpack.i.l.bf16 %v4715_v20 }
 0x3c0   : > { %4223 = vmatmul.mubr.msk.bf16.gmra.mrb[12].mxu1 %vm1003_vm1, %v5952_v8  ;;  %4233 = vmatpush3.bf16.xpose.msra.mxu0 %v1329_v40 }
 0x3c1   : > { %4245 = vmatpush3.bf16.xpose.msra.mxu1 %v1424_v1  ;;  %4250 = vmatprep.mubr.msk.bf16.mxu1 %vm1003_vm1, %v5981_v50  ;;  %v6104_v13 = vpack.c.bf16 %v4717_v38, %v4716_v39 }
 0x3c2   : > { %4472 = vmatprep.subr.msk.bf16.mxu1 %vm1003_vm1, %v1405_v41  ;;  %v1502_v0 = vpop.permute.xlu1 %1501  ;;  %2724 = vrot.lane.b32.xlu0 %v5878_v36, %s5347_s21  ;;  %v1427_v36 = vsel %vm1003_vm1, %v1405_v41, 0 }
 0x3c3   : > { %7450 = vst [vmem:[#allocation19_spill] sm:$0xff] %v6104_v13  ;;  %4474 = vmatprep.subr.msk.bf16.mxu0 %vm1003_vm1, %v1502_v0  ;;  %1709 = vrot.lane.b32.xlu1 %v6104_v13, %s5344_s22  ;;  %v1522_v24 = vsel %vm1003_vm1, %v1502_v0, 0  ;;  %s4009_s22 = sshll.u32 %s7552_s4, 4 }
 0x3c4   : > { %s3785_s23 = sadd.s32 %s4009_s22, %s4004_s24 }
 0x3c6   : > { %2728 = vrot.lane.b32.xlu0 %v5894_v28, %s5347_s21  ;;  %v1504_v48 = vpop.permute.xlu1 %1503  ;;  %v1506_v28 = vpop.permute.xlu0 %1505 }
 0x3c7   : > { %4235 = vmatmul.mubr.msk.bf16.vlgmr.msra.gmra.mrb[24].mxu0 %vm1003_vm1, %v5966_v26  ;;  %2635 = vrot.lane.b32.xlu1 %v5850_v12, %s5347_s21  ;;  %v1525_v12 = vsel %vm1003_vm1, %v1504_v48, 0 }
 0x3c8   : > { %4238 = vmatprep.mubr.msk.bf16.mxu0 %vm1003_vm1, %v5964_v55  ;;  %4259 = vmatpush3.bf16.xpose.msra.mxu0 %v1522_v24 }
 0x3c9   : > { %4247 = vmatpush3.bf16.xpose.msra.mxu1 %v1427_v36  ;;  %4475 = vmatprep.subr.msk.bf16.mxu0 %vm1003_vm1, %v1504_v48  ;;  %v1805_v48 = vld [vmem:[#allocation5 + $0x28] sm:$0xff] }
 0x3ca   : > { %4473 = vmatprep.subr.msk.bf16.mxu1 %vm1003_vm1, %v1407_v11  ;;  %2902 = vrot.lane.b32.xlu0 %v5966_v26, %s5347_s21 }
 0x3cb   : > { %2637 = vrot.lane.b32.xlu1 %v5868_v32, %s5347_s21  ;;  %v1528_v32 = vsel %vm1003_vm1, %v1506_v28, 0 }
 0x3ce   : > { %2906 = vrot.lane.b32.xlu0 %v5993_v57, %s5347_s21 }
 0x3cf   : > { %4239 = vmatmul.mubr.msk.bf16.gmra.mrb[28].mxu0 %vm1003_vm1, %v5993_v57  ;;  %2722 = vrot.lane.b32.xlu1 %v5882_v46, %s5347_s21  ;;  %v1508_v46 = vpop.permute.xlu0 %1507 }
 0x3d0   : > { %4261 = vmatpush3.bf16.xpose.msra.mxu0 %v1525_v12  ;;  %4266 = vmatprep.mubr.msk.bf16.mxu0 %vm1003_vm1, %v6009_v45 }
 0x3d1   : > { %4249 = vmatpush3.bf16.xpose.msra.mxu1 %v1430_v10  ;;  %4476 = vmatprep.subr.msk.bf16.mxu0 %vm1003_vm1, %v1506_v28 }
 0x3d2   : > { %3080 = vrot.lane.b32.xlu0 %v6015_v9, %s5347_s21 }
 0x3d3   : > { %2811 = vrot.lane.b32.xlu1 %v5932_v37, %s5347_s21  ;;  %v1531_v37 = vsel %vm1003_vm1, %v1508_v46, 0 }
 0x3d6   : > { %3084 = vrot.lane.b32.xlu0 %v6027_v18, %s5347_s21 }
 0x3d7   : > { %2813 = vrot.lane.b32.xlu1 %v5942_v3, %s5347_s21 }
 0x3d8   : > { %4251 = vmatmul.mubr.msk.bf16.vlgmr.msra.gmra.mrb[16].mxu1 %vm1003_vm1, %v5979_v42  ;;  %4263 = vmatpush3.bf16.xpose.msra.mxu0 %v1528_v32 }
 0x3d9   : > { %4254 = vmatprep.mubr.msk.bf16.mxu1 %vm1003_vm1, %v5991_v44  ;;  %4477 = vmatprep.subr.msk.bf16.mxu0 %vm1003_vm1, %v1508_v46 }
 0x3db   : > { %2726 = vrot.lane.b32.xlu1 %v5898_v53, %s5347_s21 }
 0x3df   : > { %2815 = vrot.lane.b32.xlu1 %v5938_v47, %s5347_s21 }
 0x3e0   : > { %4255 = vmatmul.mubr.msk.bf16.gmra.mrb[20].mxu1 %vm1003_vm1, %v5999_v17  ;;  %4265 = vmatpush3.bf16.xpose.msra.mxu0 %v1531_v37 }
 0x3e1   : > { %4282 = vmatprep.mubr.msk.bf16.mxu1 %vm1003_vm1, %v6046_v33 }
 0x3e3   : > { %2817 = vrot.lane.b32.xlu1 %v5952_v8, %s5347_s21 }
 0x3e7   : > { %4267 = vmatmul.mubr.msk.bf16.vlgmr.msra.gmra.mrb[32].mxu0 %vm1003_vm1, %v6015_v9  ;;  %2900 = vrot.lane.b32.xlu1 %v5954_v31, %s5347_s21 }
 0x3e8   : > { %4270 = vmatprep.mubr.msk.bf16.mxu0 %vm1003_vm1, %v6013_v6 }
 0x3eb   : > { %2989 = vrot.lane.b32.xlu1 %v5981_v50, %s5347_s21 }
 0x3ef   : > { %4271 = vmatmul.mubr.msk.bf16.gmra.mrb[36].mxu0 %vm1003_vm1, %v6027_v18  ;;  %2991 = vrot.lane.b32.xlu1 %v5979_v42, %s5347_s21 }
 0x3f0   : > { %4298 = vmatprep.mubr.msk.bf16.mxu0 %vm1003_vm1, %v6067_v21 }
 0x3f3   : > { %2993 = vrot.lane.b32.xlu1 %v5991_v44, %s5347_s21  ;;  %v1802_v44 = vld [vmem:[#allocation5 + $0x10] sm:$0xff] }
 0x3f7   : > { %2995 = vrot.lane.b32.xlu1 %v5999_v17, %s5347_s21  ;;  %v1800_v17 = vld [vmem:[#allocation5] sm:$0xff] }
 0x3fb   : > { %3078 = vrot.lane.b32.xlu1 %v6009_v45, %s5347_s21 }
 0x3ff   : > { %3167 = vrot.lane.b32.xlu1 %v6046_v33, %s5347_s21 }
 0x403   : > { %3169 = vrot.lane.b32.xlu1 %v6055_v51, %s5347_s21 }
 0x407   : > { %3171 = vrot.lane.b32.xlu1 %v6053_v49, %s5347_s21 }
 0x40b   : > { %3173 = vrot.lane.b32.xlu1 %v6065_v62, %s5347_s21 }
 0x40f   : > { %3256 = vrot.lane.b32.xlu1 %v6067_v21, %s5347_s21  ;;  %v1806_v21 = vld [vmem:[#allocation5 + $0x30] sm:$0xff] }
 0x410   : > { %v1603_v53 = vpop.permute.xlu1 %1602 }
 0x411   : > { %4478 = vmatprep.subr.msk.bf16.mxu1 %vm1003_vm1, %v1603_v53  ;;  %v1623_v47 = vsel %vm1003_vm1, %v1603_v53, 0 }
 0x412   : > { %4275 = vmatpush3.bf16.xpose.msra.mxu1 %v1623_v47 }
 0x413   : > { %2904 = vrot.lane.b32.xlu1 %v5964_v55, %s5347_s21 }
 0x417   : > { %3082 = vrot.lane.b32.xlu1 %v6013_v6, %s5347_s21 }
 0x418   : > { %v1607_v31 = vpop.permute.xlu0 %1606 }
 0x419   : > { %v1605_v3 = vpop.permute.xlu1 %1604  ;;  %v1629_v42 = vsel %vm1003_vm1, %v1607_v31, 0 }
 0x41a   : > { %4479 = vmatprep.subr.msk.bf16.mxu1 %vm1003_vm1, %v1605_v3  ;;  %v1626_v8 = vsel %vm1003_vm1, %v1605_v3, 0 }
 0x41b   : > { %4277 = vmatpush3.bf16.xpose.msra.mxu1 %v1626_v8 }
 0x41c   : > { %4480 = vmatprep.subr.msk.bf16.mxu1 %vm1003_vm1, %v1607_v31 }
 0x420   : > { %v1609_v55 = vpop.permute.xlu0 %1608 }
 0x421   : > { %v1704_v26 = vpop.permute.xlu1 %1703  ;;  %v1632_v35 = vsel %vm1003_vm1, %v1609_v55, 0 }
 0x422   : > { %4482 = vmatprep.subr.msk.bf16.mxu0 %vm1003_vm1, %v1704_v26  ;;  %v1724_v50 = vsel %vm1003_vm1, %v1704_v26, 0 }
 0x423   : > { %4279 = vmatpush3.bf16.xpose.msra.mxu1 %v1629_v42  ;;  %4291 = vmatpush3.bf16.xpose.msra.mxu0 %v1724_v50 }
 0x424   : > { %4481 = vmatprep.subr.msk.bf16.mxu1 %vm1003_vm1, %v1609_v55 }
 0x426   : > { %v4188_v57 = vpop.f32.mrb[0].mxu1 }
 0x427   : > { %v6207_v45 = vadd.f32 %v4188_v57, %v1802_v44  ;;  %v1062_v6 = vpop.f32.mrb[1].mxu1 }
 0x428   : > { %v4189_v9 = vpop.f32.mrb[2].mxu1  ;;  %v6209_v18 = vadd.f32 %v1800_v17, %v1062_v6  ;;  %v1708_v59 = vpop.permute.xlu0 %1707 }
 0x429   : > { %v1706_v33 = vpop.permute.xlu1 %1705  ;;  %v1065_v23 = vpop.f32.mrb[3].mxu1  ;;  %v1903_v29 = vsel %vm1896_vm2, %v6207_v45, -inf  ;;  %v6220_v60 = vadd.f32 %v4189_v9, %v6213_v56  ;;  %v1730_v43 = vsel %vm1003_vm1, %v1708_v59, 0 }
 0x42a   : > { %4483 = vmatprep.subr.msk.bf16.mxu0 %vm1003_vm1, %v1706_v33  ;;  %1904 = vmax.xlane.f32.xlu0 %v1903_v29  ;;  %v1727_v58 = vsel %vm1003_vm1, %v1706_v33, 0  ;;  %v1897_v61 = vsel %vm1896_vm2, %v6209_v18, -inf  ;;  %v6237_v30 = vadd.f32 %v1801_v14, %v1065_v23 }
 0x42b   : > { %4281 = vmatpush3.bf16.xpose.msra.mxu1 %v1632_v35  ;;  %4293 = vmatpush3.bf16.xpose.msra.mxu0 %v1727_v58  ;;  %v1906_v7 = vsel %vm1896_vm2, %v6220_v60, -inf }
 0x42c   : > { %4484 = vmatprep.subr.msk.bf16.mxu0 %vm1003_vm1, %v1708_v59  ;;  %v1900_v41 = vsel %vm1896_vm2, %v6237_v30, -inf  ;;  %v2634_v24 = vpop.permute.xlu0 %2633 }
 0x42e   : > { %v4192_v63 = vpop.f32.mrb[4].mxu1  ;;  %1898 = vmax.xlane.f32.xlu0 %v1897_v61 }
 0x42f   : > { %v1078_v2 = vpop.f32.mrb[5].mxu1  ;;  %v6224_v25 = vadd.f32 %v4192_v63, %v1806_v21 }
 0x430   : > { %v4193_v4 = vpop.f32.mrb[6].mxu1  ;;  %v6233_v15 = vadd.f32 %v1804_v52, %v1078_v2  ;;  %v2640_v33 = vpop.permute.xlu0 %2639  ;;  %v1810_v2 = vld [vmem:[#allocation5 + $0x50] sm:$0xff] }
 0x431   : > { %v1081_v5 = vpop.f32.mrb[7].mxu1  ;;  %v1915_v16 = vsel %vm1896_vm2, %v6224_v25, -inf }
 0x432   : > { %4283 = vmatmul.mubr.msk.bf16.vlgmr.msra.gmra.mrb[24].mxu1 %vm1003_vm1, %v6055_v51  ;;  %1907 = vmax.xlane.f32.xlu0 %v1906_v7  ;;  %v1807_v51 = vld [vmem:[#allocation5 + $0x38] sm:$0xff]  ;;  %v6255_v28 = vadd.f32 %v1805_v48, %v1081_v5  ;;  %v1808_v5 = vld [vmem:[#allocation5 + $0x40] sm:$0xff] }
 0x433   : > { %4286 = vmatprep.mubr.msk.bf16.mxu1 %vm1003_vm1, %v6053_v49  ;;  %4295 = vmatpush3.bf16.xpose.msra.mxu0 %v1730_v43  ;;  %v1909_v49 = vsel %vm1896_vm2, %v6233_v15, -inf  ;;  %v6244_v40 = vadd.f32 %v4193_v4, %v1807_v51  ;;  %v1811_v7 = vld [vmem:[#allocation5 + $0x58] sm:$0xff] }
 0x434   : > { %v1912_v31 = vsel %vm1896_vm2, %v6255_v28, -inf }
 0x435   : > { %v1710_v54 = vpop.permute.xlu1 %1709 }
 0x436   : > { %4485 = vmatprep.subr.msk.bf16.mxu0 %vm1003_vm1, %v1710_v54  ;;  %1916 = vmax.xlane.f32.xlu0 %v1915_v16  ;;  %v1733_v0 = vsel %vm1003_vm1, %v1710_v54, 0  ;;  %v1809_v54 = vld [vmem:[#allocation5 + $0x48] sm:$0xff] }
 0x437   : > { %v4204_v27 = vpop.f32.mrb[16].mxu0 }
 0x438   : > { %v1163_v34 = vpop.f32.mrb[17].mxu0  ;;  %v6240_v20 = vadd.f32 %v4204_v27, %v1802_v44 }
 0x439   : > { %v4205_v38 = vpop.f32.mrb[18].mxu0  ;;  %v2636_v39 = vpop.permute.xlu1 %2635  ;;  %v6251_v36 = vadd.f32 %v1800_v17, %v1163_v34 }
 0x43a   : > { %v1166_v1 = vpop.f32.mrb[19].mxu0  ;;  %4287 = vmatmul.mubr.msk.bf16.gmra.mrb[28].mxu1 %vm1003_vm1, %v6065_v62  ;;  %1910 = vmax.xlane.f32.xlu0 %v1909_v49  ;;  %v1927_v12 = vsel %vm1896_vm2, %v6240_v20, -inf  ;;  %v1918_v62 = vsel %vm1896_vm2, %v6244_v40, -inf  ;;  %v6266_v3 = vadd.f32 %v4205_v38, %v6213_v56 }
 0x43b   : > { %1901 = vmax.xlane.f32.xlu1 %v1900_v41  ;;  %4297 = vmatpush3.bf16.xpose.msra.mxu0 %v1733_v0  ;;  %v1921_v47 = vsel %vm1896_vm2, %v6251_v36, -inf  ;;  %v6276_v50 = vadd.f32 %v1801_v14, %v1166_v1  ;;  %v1814_v1 = vld [vmem:[#allocation5 + $0x70] sm:$0xff] }
 0x43c   : > { %4306 = vmatprep.subr.bf16.mxu0 %v2634_v24  ;;  %v1930_v44 = vsel %vm1896_vm2, %v6266_v3, -inf }
 0x43d   : > { %v2638_v11 = vpop.permute.xlu1 %2637  ;;  %v1924_v9 = vsel %vm1896_vm2, %v6276_v50, -inf }
 0x43e   : > { %1928 = vmax.xlane.f32.xlu0 %v1927_v12 }
 0x43f   : > { %v4208_v10 = vpop.f32.mrb[20].mxu0  ;;  %1919 = vmax.xlane.f32.xlu1 %v1918_v62 }
 0x440   : > { %v1179_v32 = vpop.f32.mrb[21].mxu0  ;;  %v6259_v46 = vadd.f32 %v4208_v10, %v1806_v21 }
 0x441   : > { %v4209_v37 = vpop.f32.mrb[22].mxu0  ;;  %v6261_v53 = vpop.permute.xlu1 %2722  ;;  %v6278_v55 = vadd.f32 %v1804_v52, %v1179_v32 }
 0x442   : > { %7451 = vst [vmem:[#allocation20_spill] sm:$0xff] %v6261_v53  ;;  %v1182_v8 = vpop.f32.mrb[23].mxu0  ;;  %4299 = vmatmul.mubr.msk.bf16.vlgmr.msra.gmra.mrb[40].mxu0 %vm1003_vm1, %v6079_v22  ;;  %1922 = vmax.xlane.f32.xlu0 %v1921_v47  ;;  %v1939_v42 = vsel %vm1896_vm2, %v6259_v46, -inf  ;;  %v6282_v17 = vadd.f32 %v4209_v37, %v1807_v51  ;;  %v6328_v32 = vpop.permute.xlu0 %2724  ;;  %v1813_v47 = vld [vmem:[#allocation5 + $0x68] sm:$0xff] }
 0x443   : > { %1913 = vmax.xlane.f32.xlu1 %v1912_v31  ;;  %4302 = vmatprep.mubr.msk.bf16.mxu0 %vm1003_vm1, %v6077_v19  ;;  %v1933_v6 = vsel %vm1896_vm2, %v6278_v55, -inf  ;;  %v6292_v29 = vadd.f32 %v1805_v48, %v1182_v8  ;;  %v1815_v48 = vld [vmem:[#allocation5 + $0x78] sm:$0xff]  ;;  %7458 = vst [vmem:[#allocation27_spill] sm:$0xff] %v6328_v32 }
 0x444   : > { %4307 = vmatpush3.bf16.msra.mxu0 %v2634_v24  ;;  %v1942_v56 = vsel %vm1896_vm2, %v6282_v17, -inf  ;;  %v1812_v24 = vld [vmem:[#allocation5 + $0x60] sm:$0xff] }
 0x445   : > { %4308 = vmatprep.subr.bf16.mxu0 %v2636_v39  ;;  %v2812_v26 = vpop.permute.xlu1 %2811  ;;  %v1936_v58 = vsel %vm1896_vm2, %v6292_v29, -inf }
 0x446   : > { %4338 = vmatprep.subr.bf16.mxu1 %v2812_v26  ;;  %1940 = vmax.xlane.f32.xlu0 %v1939_v42 }
 0x447   : > { %1931 = vmax.xlane.f32.xlu1 %v1930_v44  ;;  %4339 = vmatpush3.bf16.msra.mxu1 %v2812_v26 }
 0x448   : > { %4309 = vmatpush3.bf16.msra.mxu0 %v2636_v39 }
 0x449   : > { %4310 = vmatprep.subr.bf16.mxu0 %v2638_v11  ;;  %v2814_v57 = vpop.permute.xlu1 %2813 }
 0x44a   : > { %4303 = vmatmul.mubr.msk.bf16.gmra.mrb[44].mxu0 %vm1003_vm1, %v6104_v13  ;;  %4340 = vmatprep.subr.bf16.mxu1 %v2814_v57 }
 0x44b   : > { %1934 = vmax.xlane.f32.xlu0 %v1933_v6  ;;  %1925 = vmax.xlane.f32.xlu1 %v1924_v9 }
 0x44c   : > { %4311 = vmatpush3.bf16.msra.mxu0 %v2638_v11  ;;  %4341 = vmatpush3.bf16.msra.mxu1 %v2814_v57 }
 0x44d   : > { %4312 = vmatprep.subr.bf16.mxu0 %v2640_v33  ;;  %v6290_v23 = vpop.permute.xlu1 %2726 }
 0x44e   : > { %7452 = vst [vmem:[#allocation21_spill] sm:$0xff] %v6290_v23 }
 0x44f   : > { %1943 = vmax.xlane.f32.xlu1 %v1942_v56  ;;  %v6344_v56 = vpop.permute.xlu0 %2728 }
 0x450   : > { %4313 = vmatpush3.bf16.msra.mxu0 %v2640_v33  ;;  %7460 = vst [vmem:[#allocation29_spill] sm:$0xff] %v6344_v56 }
 0x451   : > { %4322 = vmatprep.subr.bf16.mxu0 %v6261_v53  ;;  %v2816_v35 = vpop.permute.xlu1 %2815 }
 0x452   : > { %4342 = vmatprep.subr.bf16.mxu1 %v2816_v35 }
 0x453   : > { %1937 = vmax.xlane.f32.xlu1 %v1936_v58  ;;  %4343 = vmatpush3.bf16.msra.mxu1 %v2816_v35 }
 0x455   : > { %v2818_v59 = vpop.permute.xlu1 %2817 }
 0x456   : > { %4344 = vmatprep.subr.bf16.mxu1 %v2818_v59 }
 0x457   : > { %4345 = vmatpush3.bf16.msra.mxu1 %v2818_v59 }
 0x459   : > { %v6299_v61 = vpop.permute.xlu1 %2900 }
 0x45a   : > { %7453 = vst [vmem:[#allocation22_spill] sm:$0xff] %v6299_v61 }
 0x45d   : > { %v6301_v63 = vpop.permute.xlu1 %2989 }
 0x45e   : > { %7454 = vst [vmem:[#allocation23_spill] sm:$0xff] %v6301_v63  ;;  %4370 = vmatprep.subr.bf16.mxu1 %v6301_v63 }
 0x461   : > { %v6304_v21 = vpop.permute.xlu1 %2991 }
 0x462   : > { %7455 = vst [vmem:[#allocation24_spill] sm:$0xff] %v6304_v21 }
 0x465   : > { %v6308_v16 = vpop.permute.xlu1 %2993 }
 0x466   : > { %7456 = vst [vmem:[#allocation25_spill] sm:$0xff] %v6308_v16  ;;  %v6433_v16 = vld [vmem:[#allocation5 + $0xa8] sm:$0xff] }
 0x469   : > { %v6322_v11 = vpop.permute.xlu1 %2995 }
 0x46a   : > { %7457 = vst [vmem:[#allocation26_spill] sm:$0xff] %v6322_v11 }
 0x46d   : > { %v6340_v6 = vpop.permute.xlu1 %3078 }
 0x46e   : > { %7459 = vst [vmem:[#allocation28_spill] sm:$0xff] %v6340_v6 }
 0x48b   : > { %v4220_v4 = vpop.f32.mrb[8].mxu1 }
 0x48c   : > { %v6306_v52 = vadd.f32 %v4220_v4, %v1810_v2  ;;  %v1264_v43 = vpop.f32.mrb[9].mxu1 }
 0x48d   : > { %v4221_v14 = vpop.f32.mrb[10].mxu1  ;;  %v6310_v51 = vadd.f32 %v1808_v5, %v1264_v43 }
 0x48e   : > { %v6312_v27 = vadd.f32 %v4221_v14, %v1811_v7  ;;  %v1267_v34 = vpop.f32.mrb[11].mxu1  ;;  %v1951_v38 = vsel %vm1896_vm2, %v6306_v52, -inf }
 0x48f   : > { %1952 = vmax.xlane.f32.xlu0 %v1951_v38  ;;  %v6316_v39 = vadd.f32 %v1809_v54, %v1267_v34  ;;  %v1945_v41 = vsel %vm1896_vm2, %v6310_v51, -inf }
 0x490   : > { %v1954_v49 = vsel %vm1896_vm2, %v6312_v27, -inf }
 0x491   : > { %1955 = vmax.xlane.f32.xlu1 %v1954_v49  ;;  %v1948_v10 = vsel %vm1896_vm2, %v6316_v39, -inf  ;;  %v6358_v49 = vpop.permute.xlu1 %3167 }
 0x492   : > { %7461 = vst [vmem:[#allocation30_spill] sm:$0xff] %v6358_v49 }
 0x493   : > { %1946 = vmax.xlane.f32.xlu0 %v1945_v41  ;;  %v4224_v0 = vpop.f32.mrb[12].mxu1 }
 0x494   : > { %v6324_v12 = vadd.f32 %v4224_v0, %v1814_v1  ;;  %v1280_v62 = vpop.f32.mrb[13].mxu1  ;;  %v6362_v0 = vpop.permute.xlu0 %2902 }
 0x495   : > { %1949 = vmax.xlane.f32.xlu1 %v1948_v10  ;;  %v4225_v37 = vpop.f32.mrb[14].mxu1  ;;  %v6330_v8 = vadd.f32 %v1812_v24, %v1280_v62  ;;  %7462 = vst [vmem:[#allocation31_spill] sm:$0xff] %v6362_v0 }
 0x496   : > { %v6332_v31 = vadd.f32 %v4225_v37, %v1815_v48  ;;  %v1283_v26 = vpop.f32.mrb[15].mxu1  ;;  %v1963_v42 = vsel %vm1896_vm2, %v6324_v12, -inf }
 0x497   : > { %1964 = vmax.xlane.f32.xlu0 %v1963_v42  ;;  %v6336_v44 = vadd.f32 %v1813_v47, %v1283_v26  ;;  %v1957_v33 = vsel %vm1896_vm2, %v6330_v8, -inf }
 0x498   : > { %v1966_v57 = vsel %vm1896_vm2, %v6332_v31, -inf }
 0x499   : > { %1967 = vmax.xlane.f32.xlu1 %v1966_v57  ;;  %v1960_v4 = vsel %vm1896_vm2, %v6336_v44, -inf }
 0x49a   : > { %v4236_v9 = vpop.f32.mrb[24].mxu0 }
 0x49b   : > { %v6346_v35 = vadd.f32 %v4236_v9, %v1810_v2  ;;  %1958 = vmax.xlane.f32.xlu0 %v1957_v33  ;;  %v1365_v58 = vpop.f32.mrb[25].mxu0  ;;  %v6374_v9 = vpop.permute.xlu1 %3169 }
 0x49c   : > { %v4237_v59 = vpop.f32.mrb[26].mxu0  ;;  %v6354_v38 = vadd.f32 %v1808_v5, %v1365_v58  ;;  %7463 = vst [vmem:[#allocation32_spill] sm:$0xff] %v6374_v9  ;;  %v6378_v58 = vpop.permute.xlu0 %2906 }
 0x49d   : > { %v6350_v43 = vadd.f32 %v4237_v59, %v1811_v7  ;;  %1961 = vmax.xlane.f32.xlu1 %v1960_v4  ;;  %v1368_v14 = vpop.f32.mrb[27].mxu0  ;;  %v1975_v34 = vsel %vm1896_vm2, %v6346_v35, -inf  ;;  %7464 = vst [vmem:[#allocation33_spill] sm:$0xff] %v6378_v58 }
 0x49e   : > { %v6360_v41 = vadd.f32 %v1809_v54, %v1368_v14  ;;  %v1969_v62 = vsel %vm1896_vm2, %v6354_v38, -inf }
 0x49f   : > { %1976 = vmax.xlane.f32.xlu0 %v1975_v34  ;;  %v1978_v2 = vsel %vm1896_vm2, %v6350_v43, -inf  ;;  %v6388_v34 = vld [vmem:[#allocation5 + $0x80] sm:$0xff] }
 0x4a0   : > { %v1972_v26 = vsel %vm1896_vm2, %v6360_v41, -inf }
 0x4a1   : > { %1979 = vmax.xlane.f32.xlu1 %v1978_v2  ;;  %v6392_v2 = vpop.permute.xlu1 %3171 }
 0x4a2   : > { %v4240_v7 = vpop.f32.mrb[28].mxu0  ;;  %7465 = vst [vmem:[#allocation34_spill] sm:$0xff] %v6392_v2  ;;  %v6416_v2 = vld [vmem:[#allocation5 + $0xb0] sm:$0xff] }
 0x4a3   : > { %v6366_v10 = vadd.f32 %v4240_v7, %v1814_v1  ;;  %1970 = vmax.xlane.f32.xlu0 %v1969_v62  ;;  %v1381_v5 = vpop.f32.mrb[29].mxu0 }
 0x4a4   : > { %v4241_v37 = vpop.f32.mrb[30].mxu0  ;;  %v6376_v33 = vadd.f32 %v1812_v24, %v1381_v5  ;;  %v6390_v24 = vld [vmem:[#allocation5 + $0x98] sm:$0xff]  ;;  %v6399_v5 = vpop.permute.xlu0 %3080 }
 0x4a5   : > { %v6370_v42 = vadd.f32 %v4241_v37, %v1815_v48  ;;  %1973 = vmax.xlane.f32.xlu1 %v1972_v26  ;;  %v1384_v54 = vpop.f32.mrb[31].mxu0  ;;  %v1987_v57 = vsel %vm1896_vm2, %v6366_v10, -inf  ;;  %v6384_v48 = vld [vmem:[#allocation5 + $0x90] sm:$0xff]  ;;  %7466 = vst [vmem:[#allocation35_spill] sm:$0xff] %v6399_v5  ;;  %v6401_v26 = vld [vmem:[#allocation5 + $0x88] sm:$0xff]  ;;  %v6418_v9 = vpop.permute.xlu1 %3173  ;;  %v6424_v5 = vld [vmem:[#allocation5 + $0xa0] sm:$0xff] }
 0x4a6   : > { %v6382_v59 = vadd.f32 %v1813_v47, %v1384_v54  ;;  %v1981_v4 = vsel %vm1896_vm2, %v6376_v33, -inf  ;;  %7468 = vst [vmem:[#allocation37_spill] sm:$0xff] %v6418_v9 }
 0x4a7   : > { %1988 = vmax.xlane.f32.xlu0 %v1987_v57  ;;  %v1990_v1 = vsel %vm1896_vm2, %v6370_v42, -inf }
 0x4a8   : > { %v1984_v47 = vsel %vm1896_vm2, %v6382_v59, -inf }
 0x4a9   : > { %1991 = vmax.xlane.f32.xlu1 %v1990_v1  ;;  %v6443_v19 = vpop.permute.xlu1 %3256 }
 0x4aa   : > { %7471 = vst [vmem:[#allocation40_spill] sm:$0xff] %v6443_v19 }
 0x4ab   : > { %1982 = vmax.xlane.f32.xlu0 %v1981_v4  ;;  %v4252_v14 = vpop.f32.mrb[16].mxu1 }
 0x4ac   : > { %v6395_v7 = vadd.f32 %v4252_v14, %v6384_v48  ;;  %v1466_v62 = vpop.f32.mrb[17].mxu1 }
 0x4ad   : > { %1985 = vmax.xlane.f32.xlu1 %v1984_v47  ;;  %v4253_v37 = vpop.f32.mrb[18].mxu1  ;;  %v6404_v54 = vadd.f32 %v6388_v34, %v1466_v62 }
 0x4ae   : > { %v6407_v57 = vadd.f32 %v4253_v37, %v6390_v24  ;;  %v1469_v1 = vpop.f32.mrb[19].mxu1  ;;  %v1999_v4 = vsel %vm1896_vm2, %v6395_v7, -inf  ;;  %v6422_v37 = vpop.permute.xlu0 %3084 }
 0x4af   : > { %2000 = vmax.xlane.f32.xlu0 %v1999_v4  ;;  %v6412_v14 = vadd.f32 %v6401_v26, %v1469_v1  ;;  %v1993_v62 = vsel %vm1896_vm2, %v6404_v54, -inf  ;;  %7469 = vst [vmem:[#allocation38_spill] sm:$0xff] %v6422_v37  ;;  %v6426_v4 = vld [vmem:[#allocation5 + $0xb8] sm:$0xff] }
 0x4b0   : > { %7467 = vst [vmem:[#allocation36_spill] sm:$0xff] %v6407_v57  ;;  %v2002_v47 = vsel %vm1896_vm2, %v6407_v57, -inf }
 0x4b1   : > { %2003 = vmax.xlane.f32.xlu1 %v2002_v47  ;;  %v1996_v47 = vsel %vm1896_vm2, %v6412_v14, -inf }
 0x4b3   : > { %1994 = vmax.xlane.f32.xlu0 %v1993_v62  ;;  %v4256_v49 = vpop.f32.mrb[20].mxu1 }
 0x4b4   : > { %v6429_v1 = vadd.f32 %v4256_v49, %v6416_v2  ;;  %v1482_v11 = vpop.f32.mrb[21].mxu1 }
 0x4b5   : > { %1997 = vmax.xlane.f32.xlu1 %v1996_v47  ;;  %v4257_v9 = vpop.f32.mrb[22].mxu1  ;;  %v6436_v21 = vadd.f32 %v6424_v5, %v1482_v11 }
 0x4b6   : > { %v6439_v62 = vadd.f32 %v4257_v9, %v6426_v4  ;;  %v1485_v37 = vpop.f32.mrb[23].mxu1  ;;  %v2011_v63 = vsel %vm1896_vm2, %v6429_v1, -inf }
 0x4b7   : > { %2012 = vmax.xlane.f32.xlu0 %v2011_v63  ;;  %v1905_v49 = vpop.xlane.xlu0 %1904  ;;  %v6446_v13 = vadd.f32 %v6433_v16, %v1485_v37  ;;  %v2005_v58 = vsel %vm1896_vm2, %v6436_v21, -inf }
 0x4b8   : > { %7470 = vst [vmem:[#allocation39_spill] sm:$0xff] %v6439_v62  ;;  %v2091_v47 = vsub.f32 %v6207_v45, %v1905_v49  ;;  %v2014_v11 = vsel %vm1896_vm2, %v6439_v62, -inf  ;;  %v6456_v49 = vpop.permute.xlu1 %2904 }
 0x4b9   : > { %2015 = vmax.xlane.f32.xlu1 %v2014_v11  ;;  %v2008_v37 = vsel %vm1896_vm2, %v6446_v13, -inf  ;;  %7472 = vst [vmem:[#allocation41_spill] sm:$0xff] %v6456_v49 }
 0x4ba   : > { %v2157_v6 = vmul.f32 1.442695, %v2091_v47  ;;  %v4268_v9 = vpop.f32.mrb[32].mxu0 }
 0x4bb   : > { %2006 = vmax.xlane.f32.xlu0 %v2005_v58  ;;  %v1567_v0 = vpop.f32.mrb[33].mxu0  ;;  %v1899_v63 = vpop.xlane.xlu0 %1898 }
 0x4bc   : > { %4874 = vpow2.f32 %v2157_v6  ;;  %v2089_v19 = vsub.f32 %v6209_v18, %v1899_v63  ;;  %v4269_v61 = vpop.f32.mrb[34].mxu0  ;;  %v6459_v6 = vpop.permute.xlu1 %3082 }
 0x4bd   : > { %2009 = vmax.xlane.f32.xlu1 %v2008_v37  ;;  %v1570_v45 = vpop.f32.mrb[35].mxu0  ;;  %7473 = vst [vmem:[#allocation42_spill] sm:$0xff] %v6459_v6 }
 0x4be   : > { %v2153_v11 = vmul.f32 1.442695, %v2089_v19 }
 0x4bf   : > { %v1908_v47 = vpop.xlane.xlu0 %1907 }
 0x4c0   : > { %4876 = vpow2.f32 %v2153_v11  ;;  %v2092_v56 = vsub.f32 %v6220_v60, %v1908_v47 }
 0x4c2   : > { %v2159_v23 = vmul.f32 1.442695, %v2092_v56  ;;  %v4272_v58 = vpop.f32.mrb[36].mxu0 }
 0x4c3   : > { %v1583_v32 = vpop.f32.mrb[37].mxu0  ;;  %v1917_v53 = vpop.xlane.xlu0 %1916 }
 0x4c4   : > { %4878 = vpow2.f32 %v2159_v23  ;;  %v2095_v18 = vsub.f32 %v6224_v25, %v1917_v53  ;;  %v6462_v63 = vpop.f32.mrb[38].mxu0  ;;  %v6475_v53 = vadd.f32 %v4268_v9, %v6384_v48 }
 0x4c5   : > { %v6464_v37 = vpop.f32.mrb[39].mxu0 }
 0x4c6   : > { %v6466_v62 = vpop.eup %4874  ;;  %v2165_v19 = vmul.f32 1.442695, %v2095_v18 }
 0x4c7   : > { %7474 = vst [vmem:[#allocation43_spill] sm:$0xff] %v6466_v62  ;;  %v1911_v49 = vpop.xlane.xlu0 %1910  ;;  %v2287_v60 = vsel %vm1896_vm2, %v6466_v62, 0.0 }
 0x4c8   : > { %v2093_v56 = vsub.f32 %v6233_v15, %v1911_v49  ;;  %v1902_v11 = vpop.xlane.xlu1 %1901  ;;  %2288 = vadd.xlane.f32.xlu0 %v2287_v60  ;;  %4880 = vpow2.f32 %v2165_v19  ;;  %v6482_v15 = vadd.f32 %v6388_v34, %v1567_v0  ;;  %v2023_v49 = vsel %vm1896_vm2, %v6475_v53, -inf }
 0x4c9   : > { %v2090_v47 = vsub.f32 %v6237_v30, %v1902_v11  ;;  %v6501_v11 = vadd.f32 %v4269_v61, %v6390_v24  ;;  %v6516_v24 = vadd.f32 %v6424_v5, %v1583_v32 }
 0x4ca   : > { %v6472_v23 = vpop.eup %4876  ;;  %v2161_v25 = vmul.f32 1.442695, %v2093_v56  ;;  %v2017_v60 = vsel %vm1896_vm2, %v6482_v15, -inf }
 0x4cb   : > { %v2155_v6 = vmul.f32 1.442695, %v2090_v47  ;;  %v2281_v18 = vsel %vm1896_vm2, %v6472_v23, 0.0  ;;  %v1929_v47 = vpop.xlane.xlu0 %1928  ;;  %v2026_v61 = vsel %vm1896_vm2, %v6501_v11, -inf  ;;  %v2029_v32 = vsel %vm1896_vm2, %v6516_v24, -inf }
 0x4cc   : > { %v1920_v57 = vpop.xlane.xlu1 %1919  ;;  %2282 = vadd.xlane.f32.xlu0 %v2281_v18 }
 0x4cd   : > { %4882 = vpow2.f32 %v2155_v6  ;;  %v2096_v30 = vsub.f32 %v6244_v40, %v1920_v57 }
 0x4ce   : > { %v6479_v62 = vpop.eup %4878  ;;  %4884 = vpow2.f32 %v2161_v25  ;;  %v6506_v25 = vadd.f32 %v4272_v58, %v6416_v2 }
 0x4cf   : > { %v2290_v48 = vsel %vm1896_vm2, %v6479_v62, 0.0  ;;  %v2167_v19 = vmul.f32 1.442695, %v2096_v30  ;;  %v6511_v30 = vadd.f32 %v6401_v26, %v1570_v45  ;;  %v1923_v58 = vpop.xlane.xlu0 %1922 }
 0x4d0   : > { %v1914_v9 = vpop.xlane.xlu1 %1913  ;;  %2024 = vmax.xlane.f32.xlu0 %v2023_v49  ;;  %2291 = vadd.xlane.f32.xlu1 %v2290_v48  ;;  %v2099_v49 = vsub.f32 %v6240_v20, %v1929_v47  ;;  %v2035_v2 = vsel %vm1896_vm2, %v6506_v25, -inf }
 0x4d1   : > { %v2094_v6 = vsub.f32 %v6255_v28, %v1914_v9  ;;  %4886 = vpow2.f32 %v2167_v19  ;;  %v2020_v48 = vsel %vm1896_vm2, %v6511_v30, -inf  ;;  %v2097_v19 = vsub.f32 %v6251_v36, %v1923_v58 }
 0x4d2   : > { %v6492_v56 = vpop.eup %4880  ;;  %v2173_v9 = vmul.f32 1.442695, %v2099_v49 }
 0x4d3   : > { %v2163_v40 = vmul.f32 1.442695, %v2094_v6  ;;  %v2299_v34 = vsel %vm1896_vm2, %v6492_v56, 0.0  ;;  %v2169_v6 = vmul.f32 1.442695, %v2097_v19  ;;  %v1941_v49 = vpop.xlane.xlu0 %1940 }
 0x4d4   : > { %2018 = vmax.xlane.f32.xlu0 %v2017_v60  ;;  %v1932_v45 = vpop.xlane.xlu1 %1931 }
 0x4d5   : > { %4888 = vpow2.f32 %v2163_v40  ;;  %v2100_v60 = vsub.f32 %v6266_v3, %v1932_v45  ;;  %v6535_v40 = vadd.f32 %v6462_v63, %v6426_v4  ;;  %v2103_v45 = vsub.f32 %v6259_v46, %v1941_v49 }
 0x4d6   : > { %4890 = vpow2.f32 %v2173_v9 }
 0x4d7   : > { %v6494_v0 = vpop.eup %4882  ;;  %4892 = vpow2.f32 %v2169_v6  ;;  %v2038_v3 = vsel %vm1896_vm2, %v6535_v40, -inf }
 0x4d8   : > { %v6498_v57 = vpop.eup %4884  ;;  %2300 = vadd.xlane.f32.xlu0 %v2299_v34  ;;  %v2284_v28 = vsel %vm1896_vm2, %v6494_v0, 0.0  ;;  %v1926_v34 = vpop.xlane.xlu1 %1925 }
 0x4d9   : > { %2285 = vadd.xlane.f32.xlu1 %v2284_v28  ;;  %v2293_v18 = vsel %vm1896_vm2, %v6498_v57, 0.0  ;;  %v2175_v28 = vmul.f32 1.442695, %v2100_v60  ;;  %v2098_v47 = vsub.f32 %v6276_v50, %v1926_v34  ;;  %v1935_v58 = vpop.xlane.xlu0 %1934 }
 0x4db   : > { %v6523_v26 = vpop.eup %4886  ;;  %4894 = vpow2.f32 %v2175_v28  ;;  %v2171_v4 = vmul.f32 1.442695, %v2098_v47  ;;  %v6568_v47 = vld [vmem:[#allocation5 + $0xd0] sm:$0xff] }
 0x4dc   : > { %2294 = vadd.xlane.f32.xlu0 %v2293_v18  ;;  %v2302_v20 = vsel %vm1896_vm2, %v6523_v26, 0.0  ;;  %v6542_v18 = vadd.f32 %v6433_v16, %v6464_v37 }
 0x4dd   : > { %2027 = vmax.xlane.f32.xlu1 %v2026_v61  ;;  %4896 = vpow2.f32 %v2171_v4  ;;  %v6570_v4 = vld [vmem:[#allocation5 + $0xc0] sm:$0xff] }
 0x4de   : > { %v2032_v63 = vsel %vm1896_vm2, %v6542_v18, -inf }
 0x4df   : > { %v6530_v5 = vpop.eup %4888 }
 0x4e0   : > { %2036 = vmax.xlane.f32.xlu0 %v2035_v2  ;;  %v2296_v36 = vsel %vm1896_vm2, %v6530_v5, 0.0  ;;  %v6548_v61 = vpop.eup %4890 }
 0x4e1   : > { %2021 = vmax.xlane.f32.xlu1 %v2020_v48  ;;  %7475 = vst [vmem:[#allocation44_spill] sm:$0xff] %v6548_v61  ;;  %v2311_v50 = vsel %vm1896_vm2, %v6548_v61, 0.0  ;;  %v6552_v2 = vpop.eup %4892  ;;  %v1944_v48 = vpop.xlane.xlu1 %1943 }
 0x4e2   : > { %7476 = vst [vmem:[#allocation45_spill] sm:$0xff] %v6552_v2  ;;  %v2305_v16 = vsel %vm1896_vm2, %v6552_v2, 0.0  ;;  %v2104_v6 = vsub.f32 %v6282_v17, %v1944_v48 }
 0x4e4   : > { %2030 = vmax.xlane.f32.xlu0 %v2029_v32  ;;  %v2101_v32 = vsub.f32 %v6278_v55, %v1935_v58  ;;  %v2183_v28 = vmul.f32 1.442695, %v2104_v6  ;;  %v1827_v55 = vld [vmem:[#allocation5 + $0xd8] sm:$0xff] }
 0x4e5   : > { %2303 = vadd.xlane.f32.xlu1 %v2302_v20  ;;  %v6556_v37 = vpop.eup %4894  ;;  %v2181_v20 = vmul.f32 1.442695, %v2103_v45  ;;  %v1938_v60 = vpop.xlane.xlu1 %1937 }
 0x4e6   : > { %7477 = vst [vmem:[#allocation46_spill] sm:$0xff] %v6556_v37  ;;  %v2314_v9 = vsel %vm1896_vm2, %v6556_v37, 0.0  ;;  %v2102_v46 = vsub.f32 %v6292_v29, %v1938_v60 }
 0x4e7   : > { %v6561_v19 = vpop.eup %4896  ;;  %4898 = vpow2.f32 %v2181_v20 }
 0x4e8   : > { %7478 = vst [vmem:[#allocation47_spill] sm:$0xff] %v6561_v19  ;;  %v2308_v34 = vsel %vm1896_vm2, %v6561_v19, 0.0  ;;  %v2179_v49 = vmul.f32 1.442695, %v2102_v46 }
 0x4e9   : > { %2297 = vadd.xlane.f32.xlu1 %v2296_v36  ;;  %v2177_v36 = vmul.f32 1.442695, %v2101_v32 }
 0x4eb   : > { %4900 = vpow2.f32 %v2177_v36 }
 0x4ec   : > { %4902 = vpow2.f32 %v2183_v28 }
 0x4ed   : > { %2039 = vmax.xlane.f32.xlu1 %v2038_v3  ;;  %4904 = vpow2.f32 %v2179_v49 }
 0x4f1   : > { %2033 = vmax.xlane.f32.xlu1 %v2032_v63  ;;  %v6588_v6 = vpop.eup %4898 }
 0x4f2   : > { %7482 = vst [vmem:[#allocation51_spill] sm:$0xff] %v6588_v6  ;;  %v2323_v49 = vsel %vm1896_vm2, %v6588_v6, 0.0 }
 0x4f5   : > { %2312 = vadd.xlane.f32.xlu1 %v2311_v50  ;;  %v6592_v28 = vpop.eup %4900 }
 0x4f6   : > { %7483 = vst [vmem:[#allocation52_spill] sm:$0xff] %v6592_v28 }
 0x4f9   : > { %2306 = vadd.xlane.f32.xlu1 %v2305_v16  ;;  %v1825_v16 = vld [vmem:[#allocation5 + $0xc8] sm:$0xff] }
 0x4fd   : > { %2315 = vadd.xlane.f32.xlu1 %v2314_v9 }
 0x501   : > { %2309 = vadd.xlane.f32.xlu1 %v2308_v34 }
 0x505   : > { %v4284_v3 = vpop.f32.mrb[24].mxu1 }
 0x506   : > { %v6573_v63 = vadd.f32 %v4284_v3, %v6568_v47  ;;  %v1668_v17 = vpop.f32.mrb[25].mxu1  ;;  %v1831_v3 = vld [vmem:[#allocation5 + $0xf8] sm:$0xff] }
 0x507   : > { %v4285_v50 = vpop.f32.mrb[26].mxu1  ;;  %v6576_v58 = vadd.f32 %v6570_v4, %v1668_v17 }
 0x508   : > { %v6578_v48 = vadd.f32 %v4285_v50, %v1827_v55  ;;  %v1671_v29 = vpop.f32.mrb[27].mxu1  ;;  %v2047_v45 = vsel %vm1896_vm2, %v6573_v63, -inf  ;;  %v6596_v50 = vpop.eup %4902 }
 0x509   : > { %7479 = vst [vmem:[#allocation48_spill] sm:$0xff] %v6576_v58  ;;  %2048 = vmax.xlane.f32.xlu0 %v2047_v45  ;;  %v6582_v9 = vadd.f32 %v1825_v16, %v1671_v29  ;;  %v2041_v20 = vsel %vm1896_vm2, %v6576_v58, -inf  ;;  %7484 = vst [vmem:[#allocation53_spill] sm:$0xff] %v6596_v50  ;;  %v2317_v45 = vsel %vm1896_vm2, %v6592_v28, 0.0 }
 0x50a   : > { %7480 = vst [vmem:[#allocation49_spill] sm:$0xff] %v6578_v48  ;;  %v2050_v32 = vsel %vm1896_vm2, %v6578_v48, -inf }
 0x50b   : > { %7481 = vst [vmem:[#allocation50_spill] sm:$0xff] %v6582_v9  ;;  %2051 = vmax.xlane.f32.xlu1 %v2050_v32  ;;  %v2044_v36 = vsel %vm1896_vm2, %v6582_v9, -inf  ;;  %v1829_v32 = vld [vmem:[#allocation5 + $0xe8] sm:$0xff]  ;;  %v1830_v9 = vld [vmem:[#allocation5 + $0xf0] sm:$0xff] }
 0x50d   : > { %2042 = vmax.xlane.f32.xlu0 %v2041_v20  ;;  %v4288_v60 = vpop.f32.mrb[28].mxu1  ;;  %v2326_v20 = vsel %vm1896_vm2, %v6596_v50, 0.0  ;;  %v1828_v50 = vld [vmem:[#allocation5 + $0xe0] sm:$0xff] }
 0x50e   : > { %v1684_v34 = vpop.f32.mrb[29].mxu1  ;;  %v6610_v19 = vadd.f32 %v4288_v60, %v1830_v9 }
 0x50f   : > { %2045 = vmax.xlane.f32.xlu1 %v2044_v36  ;;  %v4289_v46 = vpop.f32.mrb[30].mxu1  ;;  %v6604_v36 = vpop.eup %4904 }
 0x510   : > { %v1687_v17 = vpop.f32.mrb[31].mxu1  ;;  %v6598_v29 = vadd.f32 %v4289_v46, %v1831_v3  ;;  %7486 = vst [vmem:[#allocation55_spill] sm:$0xff] %v6604_v36 }
 0x511   : > { %2324 = vadd.xlane.f32.xlu0 %v2323_v49  ;;  %v6606_v61 = vadd.f32 %v1829_v32, %v1687_v17 }
 0x512   : > { %7485 = vst [vmem:[#allocation54_spill] sm:$0xff] %v6598_v29  ;;  %v2062_v46 = vsel %vm1896_vm2, %v6598_v29, -inf }
 0x513   : > { %2318 = vadd.xlane.f32.xlu1 %v2317_v45  ;;  %7487 = vst [vmem:[#allocation56_spill] sm:$0xff] %v6606_v61  ;;  %v2320_v45 = vsel %vm1896_vm2, %v6604_v36, 0.0  ;;  %v2056_v17 = vsel %vm1896_vm2, %v6606_v61, -inf }
 0x515   : > { %v4300_v58 = vpop.f32.mrb[40].mxu0  ;;  %2327 = vadd.xlane.f32.xlu0 %v2326_v20  ;;  %v6618_v20 = vadd.f32 %v1828_v50, %v1684_v34 }
 0x516   : > { %v1769_v6 = vpop.f32.mrb[41].mxu0  ;;  %v6630_v34 = vadd.f32 %v4300_v58, %v6568_v47 }
 0x517   : > { %v4301_v49 = vpop.f32.mrb[42].mxu0  ;;  %2063 = vmax.xlane.f32.xlu1 %v2062_v46  ;;  %v2059_v46 = vsel %vm1896_vm2, %v6610_v19, -inf }
 0x518   : > { %v1772_v28 = vpop.f32.mrb[43].mxu0  ;;  %v6614_v2 = vadd.f32 %v4301_v49, %v1827_v55  ;;  %v2071_v58 = vsel %vm1896_vm2, %v6630_v34, -inf }
 0x519   : > { %2321 = vadd.xlane.f32.xlu0 %v2320_v45  ;;  %v6622_v29 = vadd.f32 %v1825_v16, %v1772_v28  ;;  %v2053_v16 = vsel %vm1896_vm2, %v6618_v20, -inf }
 0x51a   : > { %7488 = vst [vmem:[#allocation57_spill] sm:$0xff] %v6614_v2  ;;  %v2074_v55 = vsel %vm1896_vm2, %v6614_v2, -inf }
 0x51b   : > { %2057 = vmax.xlane.f32.xlu1 %v2056_v17  ;;  %7489 = vst [vmem:[#allocation58_spill] sm:$0xff] %v6622_v29  ;;  %v2068_v2 = vsel %vm1896_vm2, %v6622_v29, -inf }
 0x51c   : > { %v1953_v48 = vpop.xlane.xlu0 %1952 }
 0x51d   : > { %v4304_v60 = vpop.f32.mrb[44].mxu0  ;;  %2060 = vmax.xlane.f32.xlu0 %v2059_v46  ;;  %v2107_v49 = vsub.f32 %v6306_v52, %v1953_v48  ;;  %v6643_v48 = vadd.f32 %v6570_v4, %v1769_v6 }
 0x51e   : > { %v6624_v37 = vpop.xlane.xlu1 %1955  ;;  %v1785_v36 = vpop.f32.mrb[45].mxu0 }
 0x51f   : > { %v4305_v45 = vpop.f32.mrb[46].mxu0  ;;  %2075 = vmax.xlane.f32.xlu1 %v2074_v55  ;;  %v2189_v52 = vmul.f32 1.442695, %v2107_v49  ;;  %v2065_v6 = vsel %vm1896_vm2, %v6643_v48, -inf }
 0x520   : > { %v6632_v17 = vpop.xlane.xlu0 %1946  ;;  %v1788_v61 = vpop.f32.mrb[47].mxu0  ;;  %v6636_v28 = vadd.f32 %v4305_v45, %v1831_v3 }
 0x521   : > { %2054 = vmax.xlane.f32.xlu0 %v2053_v16  ;;  %v6648_v16 = vadd.f32 %v1829_v32, %v1788_v61  ;;  %4906 = vpow2.f32 %v2189_v52  ;;  %v6660_v52 = vadd.f32 %v1828_v50, %v1785_v36 }
 0x522   : > { %v6638_v46 = vpop.xlane.xlu1 %1949  ;;  %v2086_v45 = vsel %vm1896_vm2, %v6636_v28, -inf }
 0x523   : > { %2069 = vmax.xlane.f32.xlu1 %v2068_v2  ;;  %v6652_v2 = vadd.f32 %v4304_v60, %v1830_v9  ;;  %v2080_v61 = vsel %vm1896_vm2, %v6648_v16, -inf }
 0x524   : > { %v1965_v47 = vpop.xlane.xlu0 %1964 }
 0x525   : > { %v2111_v55 = vsub.f32 %v6324_v12, %v1965_v47  ;;  %2072 = vmax.xlane.f32.xlu0 %v2071_v58  ;;  %v2083_v60 = vsel %vm1896_vm2, %v6652_v2, -inf }
 0x526   : > { %v1968_v3 = vpop.xlane.xlu1 %1967 }
 0x527   : > { %v2197_v29 = vmul.f32 1.442695, %v2111_v55  ;;  %2087 = vmax.xlane.f32.xlu1 %v2086_v45  ;;  %v2112_v32 = vsub.f32 %v6332_v31, %v1968_v3 }
 0x528   : > { %v1959_v4 = vpop.xlane.xlu0 %1958 }
 0x529   : > { %v2109_v49 = vsub.f32 %v6330_v8, %v1959_v4  ;;  %2066 = vmax.xlane.f32.xlu0 %v2065_v6  ;;  %4908 = vpow2.f32 %v2197_v29  ;;  %v2199_v8 = vmul.f32 1.442695, %v2112_v32  ;;  %v2077_v29 = vsel %vm1896_vm2, %v6660_v52, -inf }
 0x52a   : > { %v1962_v12 = vpop.xlane.xlu1 %1961 }
 0x52b   : > { %v2193_v47 = vmul.f32 1.442695, %v2109_v49  ;;  %2081 = vmax.xlane.f32.xlu1 %v2080_v61  ;;  %v2110_v55 = vsub.f32 %v6336_v44, %v1962_v12  ;;  %v6669_v31 = vpop.eup %4906 }
 0x52c   : > { %v1977_v9 = vpop.xlane.xlu0 %1976  ;;  %v2335_v6 = vsel %vm1896_vm2, %v6669_v31, 0.0 }
 0x52d   : > { %2084 = vmax.xlane.f32.xlu0 %v2083_v60  ;;  %4910 = vpow2.f32 %v2193_v47  ;;  %v2195_v36 = vmul.f32 1.442695, %v2110_v55  ;;  %v2115_v3 = vsub.f32 %v6346_v35, %v1977_v9 }
 0x52e   : > { %v6664_v58 = vpop.xlane.xlu1 %1979  ;;  %4912 = vpow2.f32 %v2199_v8 }
 0x52f   : > { %4914 = vpow2.f32 %v2195_v36  ;;  %v2205_v12 = vmul.f32 1.442695, %v2115_v3 }
 0x530   : > { %v1971_v45 = vpop.xlane.xlu0 %1970 }
 0x531   : > { %2078 = vmax.xlane.f32.xlu0 %v2077_v29  ;;  %v2113_v61 = vsub.f32 %v6354_v38, %v1971_v45  ;;  %4916 = vpow2.f32 %v2205_v12 }
 0x532   : > { %v6671_v50 = vpop.xlane.xlu1 %1973 }
 0x533   : > { %v6676_v49 = vpop.eup %4908  ;;  %v2201_v35 = vmul.f32 1.442695, %v2113_v61 }
 0x534   : > { %v1989_v4 = vpop.xlane.xlu0 %1988  ;;  %v2347_v47 = vsel %vm1896_vm2, %v6676_v49, 0.0 }
 0x535   : > { %2336 = vadd.xlane.f32.xlu0 %v2335_v6  ;;  %v2119_v9 = vsub.f32 %v6366_v10, %v1989_v4  ;;  %4918 = vpow2.f32 %v2201_v35 }
 0x536   : > { %v6678_v44 = vpop.xlane.xlu1 %1991 }
 0x537   : > { %v6683_v60 = vpop.eup %4910  ;;  %v2213_v29 = vmul.f32 1.442695, %v2119_v9 }
 0x538   : > { %v1983_v32 = vpop.xlane.xlu0 %1982  ;;  %v2341_v55 = vsel %vm1896_vm2, %v6683_v60, 0.0  ;;  %v6692_v38 = vpop.eup %4912 }
 0x539   : > { %2348 = vadd.xlane.f32.xlu0 %v2347_v47  ;;  %v2117_v36 = vsub.f32 %v6376_v33, %v1983_v32  ;;  %v2350_v3 = vsel %vm1896_vm2, %v6692_v38, 0.0  ;;  %v6697_v10 = vpop.eup %4914  ;;  %4920 = vpow2.f32 %v2213_v29 }
 0x53a   : > { %v6686_v8 = vpop.xlane.xlu1 %1985  ;;  %v2344_v61 = vsel %vm1896_vm2, %v6697_v10, 0.0 }
 0x53b   : > { %v6704_v47 = vpop.eup %4916 }
 0x53c   : > { %3258 = vrot.lane.b32.xlu1 %v6079_v22, %s5347_s21  ;;  %v2001_v45 = vpop.xlane.xlu0 %2000  ;;  %v2209_v22 = vmul.f32 1.442695, %v2117_v36  ;;  %v2359_v9 = vsel %vm1896_vm2, %v6704_v47, 0.0 }
 0x53d   : > { %2342 = vadd.xlane.f32.xlu0 %v2341_v55  ;;  %v2123_v6 = vsub.f32 %v6395_v7, %v2001_v45  ;;  %v2105_v7 = vsub.f32 %v6310_v51, %v6632_v17 }
 0x53e   : > { %v6699_v4 = vpop.xlane.xlu1 %2003  ;;  %4922 = vpow2.f32 %v2209_v22 }
 0x53f   : > { %v2221_v33 = vmul.f32 1.442695, %v2123_v6  ;;  %v6709_v55 = vpop.eup %4918  ;;  %v2185_v6 = vmul.f32 1.442695, %v2105_v7 }
 0x540   : > { %v1995_v12 = vpop.xlane.xlu0 %1994 }
 0x541   : > { %2351 = vadd.xlane.f32.xlu0 %v2350_v3  ;;  %v2121_v32 = vsub.f32 %v6404_v54, %v1995_v12  ;;  %4924 = vpow2.f32 %v2221_v33  ;;  %v2353_v3 = vsel %vm1896_vm2, %v6709_v55, 0.0  ;;  %v2108_v54 = vsub.f32 %v6312_v27, %v6624_v37 }
 0x542   : > { %v1998_v35 = vpop.xlane.xlu1 %1997 }
 0x543   : > { %v2217_v29 = vmul.f32 1.442695, %v2121_v32  ;;  %v2122_v36 = vsub.f32 %v6412_v14, %v1998_v35  ;;  %v6716_v22 = vpop.eup %4920  ;;  %v2191_v32 = vmul.f32 1.442695, %v2108_v54  ;;  %v2106_v35 = vsub.f32 %v6316_v39, %v6638_v46 }
 0x544   : > { %v2013_v45 = vpop.xlane.xlu0 %2012  ;;  %v2371_v14 = vsel %vm1896_vm2, %v6716_v22, 0.0  ;;  %v2114_v54 = vsub.f32 %v6360_v41, %v6671_v50 }
 0x545   : > { %2345 = vadd.xlane.f32.xlu0 %v2344_v61  ;;  %4926 = vpow2.f32 %v2217_v29  ;;  %v2219_v61 = vmul.f32 1.442695, %v2122_v36  ;;  %v2127_v51 = vsub.f32 %v6429_v1, %v2013_v45  ;;  %v2187_v29 = vmul.f32 1.442695, %v2106_v35 }
 0x546   : > { %v6720_v12 = vpop.xlane.xlu1 %2015  ;;  %4928 = vpow2.f32 %v2185_v6  ;;  %v2116_v36 = vsub.f32 %v6350_v43, %v6664_v58 }
 0x547   : > { %4930 = vpow2.f32 %v2219_v61  ;;  %v2229_v27 = vmul.f32 1.442695, %v2127_v51  ;;  %v2120_v51 = vsub.f32 %v6370_v42, %v6678_v44 }
 0x548   : > { %v2007_v17 = vpop.xlane.xlu0 %2006  ;;  %v6725_v33 = vpop.eup %4922  ;;  %4932 = vpow2.f32 %v2191_v32  ;;  %v2207_v61 = vmul.f32 1.442695, %v2116_v36 }
 0x549   : > { %2360 = vadd.xlane.f32.xlu0 %v2359_v9  ;;  %v2125_v37 = vsub.f32 %v6436_v21, %v2007_v17  ;;  %v2365_v1 = vsel %vm1896_vm2, %v6725_v33, 0.0  ;;  %4934 = vpow2.f32 %v2229_v27  ;;  %v2215_v41 = vmul.f32 1.442695, %v2120_v51 }
 0x54a   : > { %v2010_v9 = vpop.xlane.xlu1 %2009  ;;  %4936 = vpow2.f32 %v2187_v29 }
 0x54b   : > { %v6732_v7 = vpop.eup %4924  ;;  %v2126_v39 = vsub.f32 %v6446_v13, %v2010_v9 }
 0x54c   : > { %v2383_v21 = vsel %vm1896_vm2, %v6732_v7, 0.0 }
 0x54d   : > { %2354 = vadd.xlane.f32.xlu0 %v2353_v3  ;;  %v2225_v3 = vmul.f32 1.442695, %v2125_v37  ;;  %v2227_v43 = vmul.f32 1.442695, %v2126_v39 }
 0x54f   : > { %v6739_v46 = vpop.eup %4926  ;;  %4938 = vpow2.f32 %v2225_v3 }
 0x550   : > { %v6745_v58 = vpop.eup %4928  ;;  %v2377_v13 = vsel %vm1896_vm2, %v6739_v46, 0.0  ;;  %4940 = vpow2.f32 %v2207_v61 }
 0x551   : > { %2372 = vadd.xlane.f32.xlu0 %v2371_v14  ;;  %v6749_v17 = vpop.eup %4930  ;;  %v2203_v14 = vmul.f32 1.442695, %v2114_v54  ;;  %4942 = vpow2.f32 %v2227_v43  ;;  %v2329_v42 = vsel %vm1896_vm2, %v6745_v58, 0.0 }
 0x552   : > { %v6754_v44 = vpop.eup %4932  ;;  %v2380_v27 = vsel %vm1896_vm2, %v6749_v17, 0.0 }
 0x553   : > { %v6758_v37 = vpop.eup %4934  ;;  %4944 = vpow2.f32 %v2203_v14  ;;  %v2338_v36 = vsel %vm1896_vm2, %v6754_v44, 0.0 }
 0x554   : > { %4946 = vpow2.f32 %v2215_v41  ;;  %v6765_v3 = vpop.eup %4936 }
 0x555   : > { %2366 = vadd.xlane.f32.xlu0 %v2365_v1  ;;  %v2289_v45 = vpop.xlane.xlu0 %2288 }
 0x559   : > { %2384 = vadd.xlane.f32.xlu0 %v2383_v21  ;;  %v2283_v6 = vpop.xlane.xlu0 %2282  ;;  %v2395_v21 = vsel %vm1896_vm2, %v6758_v37, 0.0  ;;  %v6769_v54 = vpop.eup %4938 }
 0x55a   : > { %v6775_v43 = vpop.eup %4940 }
 0x55b   : > { %v6781_v41 = vpop.eup %4942 }
 0x55d   : > { %2378 = vadd.xlane.f32.xlu0 %v2377_v13  ;;  %v2025_v32 = vpop.xlane.xlu0 %2024  ;;  %v2292_v1 = vpop.xlane.xlu1 %2291  ;;  %v7491_v13 = vld [vmem:[#allocation39_spill] sm:$0xff] }
 0x55e   : > { %v2131_v50 = vsub.f32 %v6475_v53, %v2025_v32  ;;  %v2118_v53 = vsub.f32 %v6382_v59, %v6686_v8  ;;  %v2128_v14 = vsub.f32 %v7491_v13, %v6720_v12  ;;  %v2389_v32 = vsel %vm1896_vm2, %v6769_v54, 0.0 }
 0x560   : > { %v2237_v35 = vmul.f32 1.442695, %v2131_v50  ;;  %2330 = vadd.xlane.f32.xlu1 %v2329_v42  ;;  %v2211_v8 = vmul.f32 1.442695, %v2118_v53  ;;  %v6783_v42 = vpop.eup %4944  ;;  %v2231_v12 = vmul.f32 1.442695, %v2128_v14 }
 0x561   : > { %2381 = vadd.xlane.f32.xlu0 %v2380_v27  ;;  %v2019_v9 = vpop.xlane.xlu0 %2018  ;;  %v6787_v27 = vpop.eup %4946 }
 0x562   : > { %v2129_v29 = vsub.f32 %v6482_v15, %v2019_v9  ;;  %4948 = vpow2.f32 %v2237_v35  ;;  %v7490_v15 = vld [vmem:[#allocation36_spill] sm:$0xff]  ;;  %v2362_v35 = vsel %vm1896_vm2, %v6775_v43, 0.0  ;;  %v2392_v9 = vsel %vm1896_vm2, %v6781_v41, 0.0 }
 0x563   : > { %4950 = vrcp.f32 %v2289_v45  ;;  %v2124_v61 = vsub.f32 %v7490_v15, %v6699_v4  ;;  %v2332_v45 = vsel %vm1896_vm2, %v6765_v3, 0.0  ;;  %v2356_v15 = vsel %vm1896_vm2, %v6783_v42, 0.0 }
 0x564   : > { %v2233_v39 = vmul.f32 1.442695, %v2129_v29  ;;  %2339 = vadd.xlane.f32.xlu1 %v2338_v36  ;;  %4952 = vrcp.f32 %v2292_v1 }
 0x565   : > { %2396 = vadd.xlane.f32.xlu0 %v2395_v21  ;;  %v2301_v59 = vpop.xlane.xlu0 %2300  ;;  %4954 = vrcp.f32 %v2283_v6  ;;  %v2223_v6 = vmul.f32 1.442695, %v2124_v61 }
 0x566   : > { %v2286_v51 = vpop.xlane.xlu1 %2285  ;;  %4956 = vpow2.f32 %v2233_v39 }
 0x567   : > { %4958 = vrcp.f32 %v2286_v51 }
 0x568   : > { %2333 = vadd.xlane.f32.xlu1 %v2332_v45  ;;  %4960 = vpow2.f32 %v2211_v8 }
 0x569   : > { %2390 = vadd.xlane.f32.xlu0 %v2389_v32  ;;  %v2295_v4 = vpop.xlane.xlu0 %2294  ;;  %4962 = vpow2.f32 %v2223_v6 }
 0x56a   : > { %v2028_v50 = vpop.xlane.xlu1 %2027  ;;  %4964 = vpow2.f32 %v2231_v12  ;;  %v2374_v12 = vsel %vm1896_vm2, %v6787_v27, 0.0 }
 0x56b   : > { %v2132_v1 = vsub.f32 %v6501_v11, %v2028_v50  ;;  %4966 = vrcp.f32 %v2301_v59 }
 0x56c   : > { %2363 = vadd.xlane.f32.xlu1 %v2362_v35  ;;  %v6791_v53 = vpop.eup %4948 }
 0x56d   : > { %2393 = vadd.xlane.f32.xlu0 %v2392_v9  ;;  %v2037_v29 = vpop.xlane.xlu0 %2036  ;;  %v4951_v36 = vpop.eup %4950  ;;  %v2407_v45 = vsel %vm1896_vm2, %v6791_v53, 0.0  ;;  %v2239_v11 = vmul.f32 1.442695, %v2132_v1 }
 0x56e   : > { %v2135_v39 = vsub.f32 %v6506_v25, %v2037_v29  ;;  %v2022_v21 = vpop.xlane.xlu1 %2021  ;;  %v4953_v8 = vpop.eup %4952  ;;  %v7492_v29 = vld [vmem:[#allocation43_spill] sm:$0xff] }
 0x56f   : > { %v4955_v61 = vpop.eup %4954  ;;  %v2540_v25 = vmul.f32 %v4953_v8, %v6479_v62  ;;  %v2130_v6 = vsub.f32 %v6511_v30, %v2022_v21 }
 0x570   : > { %v2245_v51 = vmul.f32 1.442695, %v2135_v39  ;;  %2357 = vadd.xlane.f32.xlu1 %v2356_v15  ;;  %v6799_v13 = vpop.eup %4956  ;;  %v2537_v9 = vmul.f32 %v4955_v61, %v6472_v23  ;;  %v2539_v39 = vmul.f32 %v4951_v36, %v7492_v29  ;;  %v7493_v36 = vld [vmem:[#allocation20_spill] sm:$0xff]  ;;  %v7494_v61 = vld [vmem:[#allocation27_spill] sm:$0xff] }
 0x571   : > { %2408 = vadd.xlane.f32.xlu0 %v2407_v45  ;;  %v2031_v14 = vpop.xlane.xlu0 %2030  ;;  %v4959_v32 = vpop.eup %4958  ;;  %v2401_v62 = vsel %vm1896_vm2, %v6799_v13, 0.0 }
 0x572   : > { %4968 = vpow2.f32 %v2245_v51  ;;  %v2133_v50 = vsub.f32 %v6516_v24, %v2031_v14  ;;  %v2304_v35 = vpop.xlane.xlu1 %2303  ;;  %v2538_v59 = vmul.f32 %v4959_v32, %v6494_v0  ;;  %v6808_v1 = vpop.eup %4960  ;;  %v2602_v24 = vpack.c.bf16 %v2540_v25, %v2539_v39 }
 0x573   : > { %4970 = vrcp.f32 %v2295_v4  ;;  %v2235_v4 = vmul.f32 1.442695, %v2130_v6  ;;  %v2368_v23 = vsel %vm1896_vm2, %v6808_v1, 0.0  ;;  %v6816_v0 = vpop.eup %4962 }
 0x574   : > { %v2241_v15 = vmul.f32 1.442695, %v2133_v50  ;;  %4972 = vrcp.f32 %v2304_v35  ;;  %2375 = vadd.xlane.f32.xlu1 %v2374_v12  ;;  %v2601_v30 = vpack.c.bf16 %v2538_v59, %v2537_v9  ;;  %v6820_v8 = vpop.eup %4964  ;;  %v2386_v14 = vsel %vm1896_vm2, %v6816_v0, 0.0  ;;  %v7496_v12 = vld [vmem:[#allocation21_spill] sm:$0xff] }
 0x575   : > { %4974 = vpow2.f32 %v2239_v11  ;;  %2402 = vadd.xlane.f32.xlu0 %v2401_v62  ;;  %v4967_v45 = vpop.eup %4966  ;;  %v2398_v29 = vsel %vm1896_vm2, %v6820_v8, 0.0 }
 0x576   : > { %4976 = vpow2.f32 %v2241_v15  ;;  %v2298_v21 = vpop.xlane.xlu1 %2297  ;;  %4314 = vmatprep.mubr.msk.bf16.mxu0 %vm1896_vm2, %v2601_v30 }
 0x577   : > { %4978 = vrcp.f32 %v2298_v21  ;;  %4315 = vmatmul.mubr.msk.bf16.vlgmr.msra.gmra.mrb[48].mxu0 %vm1896_vm2, %v2602_v24 }
 0x578   : > { %2369 = vadd.xlane.f32.xlu1 %v2368_v23  ;;  %4323 = vmatpush3.bf16.msra.mxu0 %v7493_v36  ;;  %4980 = vpow2.f32 %v2235_v4  ;;  %v7497_v4 = vld [vmem:[#allocation29_spill] sm:$0xff] }
 0x579   : > { %4324 = vmatprep.subr.bf16.mxu0 %v7494_v61 }
 0x57a   : > { %v2040_v51 = vpop.xlane.xlu1 %2039 }
 0x57b   : > { %v2136_v11 = vsub.f32 %v6535_v40, %v2040_v51 }
 0x57c   : > { %v6826_v32 = vpop.eup %4968  ;;  %2387 = vadd.xlane.f32.xlu1 %v2386_v14  ;;  %4325 = vmatpush3.bf16.msra.mxu0 %v7494_v61  ;;  %v2543_v61 = vmul.f32 %v4967_v45, %v6492_v56  ;;  %v7498_v14 = vld [vmem:[#allocation22_spill] sm:$0xff] }
 0x57d   : > { %7495 = vst [vmem:[#allocation36_spill] sm:$0xff] %v6826_v32  ;;  %v4971_v25 = vpop.eup %4970  ;;  %v2247_v6 = vmul.f32 1.442695, %v2136_v11  ;;  %v2419_v50 = vsel %vm1896_vm2, %v6826_v32, 0.0  ;;  %4326 = vmatprep.subr.bf16.mxu0 %v7496_v12 }
 0x57e   : > { %v4973_v35 = vpop.eup %4972  ;;  %v2034_v9 = vpop.xlane.xlu1 %2033  ;;  %2420 = vadd.xlane.f32.xlu0 %v2419_v50 }
 0x57f   : > { %v6832_v59 = vpop.eup %4974  ;;  %4982 = vpow2.f32 %v2247_v6  ;;  %v2134_v40 = vsub.f32 %v6542_v18, %v2034_v9  ;;  %v2544_v24 = vmul.f32 %v4973_v35, %v6523_v26  ;;  %v2541_v18 = vmul.f32 %v4971_v25, %v6498_v57 }
 0x580   : > { %v6837_v39 = vpop.eup %4976  ;;  %2399 = vadd.xlane.f32.xlu1 %v2398_v29  ;;  %4327 = vmatpush3.bf16.msra.mxu0 %v7496_v12  ;;  %v2410_v36 = vsel %vm1896_vm2, %v6832_v59, 0.0 }
 0x581   : > { %v4979_v15 = vpop.eup %4978  ;;  %v2243_v62 = vmul.f32 1.442695, %v2134_v40  ;;  %v2413_v30 = vsel %vm1896_vm2, %v6837_v39, 0.0  ;;  %4328 = vmatprep.subr.bf16.mxu0 %v7497_v4  ;;  %v2604_v26 = vpack.c.bf16 %v2544_v24, %v2543_v61  ;;  %v7500_v24 = vld [vmem:[#allocation46_spill] sm:$0xff]  ;;  %v7502_v61 = vld [vmem:[#allocation45_spill] sm:$0xff] }
 0x582   : > { %v2313_v21 = vpop.xlane.xlu1 %2312  ;;  %2414 = vadd.xlane.f32.xlu0 %v2413_v30  ;;  %v2542_v23 = vmul.f32 %v4979_v15, %v6530_v5  ;;  %v6849_v51 = vpop.eup %4980 }
 0x583   : > { %4984 = vpow2.f32 %v2243_v62  ;;  %v2404_v5 = vsel %vm1896_vm2, %v6849_v51, 0.0 }
 0x584   : > { %2411 = vadd.xlane.f32.xlu1 %v2410_v36  ;;  %v2603_v11 = vpack.c.bf16 %v2542_v23, %v2541_v18  ;;  %4329 = vmatpush3.bf16.msra.mxu0 %v7497_v4  ;;  %v7501_v23 = vld [vmem:[#allocation49_spill] sm:$0xff] }
 0x585   : > { %4354 = vmatprep.subr.bf16.mxu0 %v7498_v14 }
 0x586   : > { %4318 = vmatprep.mubr.msk.bf16.mxu0 %vm1896_vm2, %v2603_v11  ;;  %v2307_v57 = vpop.xlane.xlu1 %2306 }
 0x587   : > { %4319 = vmatmul.mubr.msk.bf16.gmra.mrb[52].mxu0 %vm1896_vm2, %v2604_v26  ;;  %v7503_v26 = vld [vmem:[#allocation47_spill] sm:$0xff] }
 0x588   : > { %2405 = vadd.xlane.f32.xlu1 %v2404_v5  ;;  %v7504_v5 = vld [vmem:[#allocation44_spill] sm:$0xff] }
 0x589   : > { %v6857_v25 = vpop.eup %4982 }
 0x58a   : > { %v2316_v56 = vpop.xlane.xlu1 %2315  ;;  %v2422_v45 = vsel %vm1896_vm2, %v6857_v25, 0.0 }
 0x58b   : > { %4986 = vrcp.f32 %v2316_v56 }
 0x58c   : > { %2423 = vadd.xlane.f32.xlu1 %v2422_v45  ;;  %4988 = vrcp.f32 %v2307_v57 }
 0x58d   : > { %v6861_v6 = vpop.eup %4984  ;;  %4990 = vrcp.f32 %v2313_v21 }
 0x58e   : > { %7499 = vst [vmem:[#allocation39_spill] sm:$0xff] %v6861_v6  ;;  %v2310_v50 = vpop.xlane.xlu1 %2309  ;;  %v2416_v35 = vsel %vm1896_vm2, %v6861_v6, 0.0 }
 0x58f   : > { %4992 = vrcp.f32 %v2310_v50  ;;  %v7505_v50 = vld [vmem:[#allocation48_spill] sm:$0xff] }
 0x590   : > { %2417 = vadd.xlane.f32.xlu1 %v2416_v35 }
 0x595   : > { %v4987_v12 = vpop.eup %4986 }
 0x596   : > { %v2049_v9 = vpop.xlane.xlu0 %2048  ;;  %v4989_v40 = vpop.eup %4988  ;;  %v2548_v4 = vmul.f32 %v4987_v12, %v7500_v24  ;;  %v7506_v12 = vld [vmem:[#allocation50_spill] sm:$0xff] }
 0x597   : > { %v2139_v29 = vsub.f32 %v6573_v63, %v2049_v9  ;;  %v4991_v15 = vpop.eup %4990  ;;  %v2545_v11 = vmul.f32 %v4989_v40, %v7502_v61 }
 0x598   : > { %v2052_v62 = vpop.xlane.xlu1 %2051  ;;  %v2547_v56 = vmul.f32 %v4991_v15, %v7504_v5  ;;  %v7511_v5 = vld [vmem:[#allocation33_spill] sm:$0xff] }
 0x599   : > { %v4993_v30 = vpop.eup %4992  ;;  %v2253_v18 = vmul.f32 1.442695, %v2139_v29  ;;  %v2140_v36 = vsub.f32 %v7501_v23, %v2052_v62  ;;  %v7509_v23 = vld [vmem:[#allocation41_spill] sm:$0xff] }
 0x59a   : > { %v2043_v21 = vpop.xlane.xlu0 %2042  ;;  %v2546_v57 = vmul.f32 %v4993_v30, %v7503_v26  ;;  %v2606_v32 = vpack.c.bf16 %v2548_v4, %v2547_v56  ;;  %v7507_v30 = vld [vmem:[#allocation31_spill] sm:$0xff] }
 0x59b   : > { %4994 = vpow2.f32 %v2253_v18  ;;  %v2255_v45 = vmul.f32 1.442695, %v2140_v36  ;;  %v2137_v35 = vsub.f32 %v7505_v50, %v2043_v21 }
 0x59c   : > { %v2046_v63 = vpop.xlane.xlu1 %2045  ;;  %v2605_v9 = vpack.c.bf16 %v2546_v57, %v2545_v11 }
 0x59d   : > { %4996 = vpow2.f32 %v2255_v45  ;;  %v2249_v6 = vmul.f32 1.442695, %v2137_v35  ;;  %v2138_v29 = vsub.f32 %v7506_v12, %v2046_v63  ;;  %v7512_v63 = vld [vmem:[#allocation56_spill] sm:$0xff] }
 0x59e   : > { %4330 = vmatprep.mubr.msk.bf16.mxu0 %vm1896_vm2, %v2605_v9  ;;  %v2325_v62 = vpop.xlane.xlu0 %2324 }
 0x59f   : > { %4998 = vpow2.f32 %v2249_v6  ;;  %v2251_v40 = vmul.f32 1.442695, %v2138_v29  ;;  %4331 = vmatmul.mubr.msk.bf16.vlgmr.msra.gmra.mrb[56].mxu0 %vm1896_vm2, %v2606_v32  ;;  %v7510_v6 = vld [vmem:[#allocation54_spill] sm:$0xff] }
 0x5a0   : > { %4355 = vmatpush3.bf16.msra.mxu0 %v7498_v14  ;;  %v2319_v15 = vpop.xlane.xlu1 %2318 }
 0x5a1   : > { %5000 = vpow2.f32 %v2251_v40  ;;  %4356 = vmatprep.subr.bf16.mxu0 %v7507_v30 }
 0x5a2   : > { %v2328_v24 = vpop.xlane.xlu0 %2327 }
 0x5a3   : > { %5002 = vrcp.f32 %v2328_v24 }
 0x5a4   : > { %4357 = vmatpush3.bf16.msra.mxu0 %v7507_v30  ;;  %v2064_v4 = vpop.xlane.xlu1 %2063  ;;  %5004 = vrcp.f32 %v2319_v15 }
 0x5a5   : > { %v6878_v18 = vpop.eup %4994  ;;  %4358 = vmatprep.subr.bf16.mxu0 %v7509_v23  ;;  %v2144_v36 = vsub.f32 %v7510_v6, %v2064_v4  ;;  %5006 = vrcp.f32 %v2325_v62  ;;  %v7513_v62 = vld [vmem:[#allocation28_spill] sm:$0xff] }
 0x5a6   : > { %7508 = vst [vmem:[#allocation43_spill] sm:$0xff] %v6878_v18  ;;  %v2322_v32 = vpop.xlane.xlu0 %2321  ;;  %v2431_v14 = vsel %vm1896_vm2, %v6878_v18, 0.0 }
 0x5a7   : > { %v6884_v21 = vpop.eup %4996  ;;  %v2263_v61 = vmul.f32 1.442695, %v2144_v36  ;;  %5008 = vrcp.f32 %v2322_v32  ;;  %2432 = vadd.xlane.f32.xlu0 %v2431_v14  ;;  %v7514_v14 = vld [vmem:[#allocation58_spill] sm:$0xff] }
 0x5a8   : > { %4359 = vmatpush3.bf16.msra.mxu0 %v7509_v23  ;;  %v2058_v11 = vpop.xlane.xlu1 %2057  ;;  %v2434_v26 = vsel %vm1896_vm2, %v6884_v21, 0.0 }
 0x5a9   : > { %v6889_v57 = vpop.eup %4998  ;;  %5010 = vpow2.f32 %v2263_v61  ;;  %4360 = vmatprep.subr.bf16.mxu0 %v7511_v5  ;;  %2435 = vadd.xlane.f32.xlu1 %v2434_v26  ;;  %v2142_v9 = vsub.f32 %v7512_v63, %v2058_v11  ;;  %v7515_v11 = vld [vmem:[#allocation53_spill] sm:$0xff] }
 0x5aa   : > { %v2061_v56 = vpop.xlane.xlu0 %2060  ;;  %v2425_v45 = vsel %vm1896_vm2, %v6889_v57, 0.0 }
 0x5ab   : > { %v6894_v50 = vpop.eup %5000  ;;  %v2143_v35 = vsub.f32 %v6610_v19, %v2061_v56  ;;  %2426 = vadd.xlane.f32.xlu0 %v2425_v45  ;;  %v2259_v23 = vmul.f32 1.442695, %v2142_v9  ;;  %v7516_v56 = vld [vmem:[#allocation52_spill] sm:$0xff] }
 0x5ac   : > { %4361 = vmatpush3.bf16.msra.mxu0 %v7511_v5  ;;  %v2076_v12 = vpop.xlane.xlu1 %2075  ;;  %v2428_v30 = vsel %vm1896_vm2, %v6894_v50, 0.0 }
 0x5ad   : > { %v2261_v29 = vmul.f32 1.442695, %v2143_v35  ;;  %4386 = vmatprep.subr.bf16.mxu0 %v7513_v62  ;;  %v5003_v40 = vpop.eup %5002  ;;  %v7517_v35 = vld [vmem:[#allocation55_spill] sm:$0xff] }
 0x5ae   : > { %v2055_v15 = vpop.xlane.xlu0 %2054  ;;  %v5005_v24 = vpop.eup %5004  ;;  %v2552_v26 = vmul.f32 %v5003_v40, %v7515_v11 }
 0x5af   : > { %5012 = vpow2.f32 %v2261_v29  ;;  %v2141_v4 = vsub.f32 %v6618_v20, %v2055_v15  ;;  %2429 = vadd.xlane.f32.xlu0 %v2428_v30  ;;  %v5007_v19 = vpop.eup %5006  ;;  %v2549_v45 = vmul.f32 %v5005_v24, %v7516_v56  ;;  %v7518_v15 = vld [vmem:[#allocation51_spill] sm:$0xff] }
 0x5b0   : > { %v2070_v6 = vpop.xlane.xlu1 %2069  ;;  %v2551_v9 = vmul.f32 %v5007_v19, %v7518_v15  ;;  %v7519_v19 = vld [vmem:[#allocation57_spill] sm:$0xff] }
 0x5b1   : > { %v5009_v36 = vpop.eup %5008  ;;  %v2257_v32 = vmul.f32 1.442695, %v2141_v4  ;;  %v2146_v61 = vsub.f32 %v7514_v14, %v2070_v6 }
 0x5b2   : > { %v2073_v5 = vpop.xlane.xlu0 %2072  ;;  %v2550_v63 = vmul.f32 %v5009_v36, %v7517_v35  ;;  %v2608_v24 = vpack.c.bf16 %v2552_v26, %v2551_v9 }
 0x5b3   : > { %v6907_v18 = vpop.eup %5010  ;;  %5014 = vpow2.f32 %v2257_v32  ;;  %v2267_v29 = vmul.f32 1.442695, %v2146_v61  ;;  %v2147_v20 = vsub.f32 %v6630_v34, %v2073_v5 }
 0x5b4   : > { %5016 = vpow2.f32 %v2259_v23  ;;  %v2088_v30 = vpop.xlane.xlu1 %2087  ;;  %v2446_v4 = vsel %vm1896_vm2, %v6907_v18, 0.0  ;;  %v2607_v6 = vpack.c.bf16 %v2550_v63, %v2549_v45  ;;  %v2148_v23 = vsub.f32 %v7519_v19, %v2076_v12 }
 0x5b5   : > { %5018 = vpow2.f32 %v2267_v29  ;;  %v2269_v40 = vmul.f32 1.442695, %v2147_v20  ;;  %2447 = vadd.xlane.f32.xlu1 %v2446_v4 }
 0x5b6   : > { %4334 = vmatprep.mubr.msk.bf16.mxu0 %vm1896_vm2, %v2607_v6  ;;  %v2067_v36 = vpop.xlane.xlu0 %2066 }
 0x5b7   : > { %v2145_v32 = vsub.f32 %v6643_v48, %v2067_v36  ;;  %4335 = vmatmul.mubr.msk.bf16.gmra.mrb[60].mxu0 %vm1896_vm2, %v2608_v24  ;;  %5020 = vpow2.f32 %v2269_v40  ;;  %v2271_v48 = vmul.f32 1.442695, %v2148_v23  ;;  %v2152_v40 = vsub.f32 %v6636_v28, %v2088_v30 }
 0x5b8   : > { %v2082_v34 = vpop.xlane.xlu1 %2081 }
 0x5b9   : > { %v6916_v14 = vpop.eup %5012  ;;  %v2265_v61 = vmul.f32 1.442695, %v2145_v32  ;;  %v2150_v11 = vsub.f32 %v6648_v16, %v2082_v34  ;;  %v2279_v23 = vmul.f32 1.442695, %v2152_v40 }
 0x5ba   : > { %v2085_v5 = vpop.xlane.xlu0 %2084  ;;  %v2443_v26 = vsel %vm1896_vm2, %v6916_v14, 0.0 }
 0x5bb   : > { %v2275_v56 = vmul.f32 1.442695, %v2150_v11  ;;  %2444 = vadd.xlane.f32.xlu0 %v2443_v26  ;;  %5022 = vpow2.f32 %v2265_v61  ;;  %v2151_v35 = vsub.f32 %v6652_v2, %v2085_v5 }
 0x5bd   : > { %v6922_v45 = vpop.eup %5014  ;;  %5024 = vpow2.f32 %v2275_v56  ;;  %v2277_v15 = vmul.f32 1.442695, %v2151_v35 }
 0x5be   : > { %v6925_v63 = vpop.eup %5016  ;;  %v2079_v12 = vpop.xlane.xlu0 %2078  ;;  %v2437_v29 = vsel %vm1896_vm2, %v6922_v45, 0.0  ;;  %5026 = vpow2.f32 %v2271_v48 }
 0x5bf   : > { %v6929_v16 = vpop.eup %5018  ;;  %2438 = vadd.xlane.f32.xlu0 %v2437_v29  ;;  %v2149_v9 = vsub.f32 %v6660_v52, %v2079_v12  ;;  %v2440_v2 = vsel %vm1896_vm2, %v6925_v63, 0.0  ;;  %5028 = vpow2.f32 %v2277_v15 }
 0x5c0   : > { %7520 = vst [vmem:[#allocation20_spill] sm:$0xff] %v6929_v16  ;;  %v2452_v20 = vsel %vm1896_vm2, %v6929_v16, 0.0 }
 0x5c1   : > { %2453 = vadd.xlane.f32.xlu1 %v2452_v20  ;;  %v6936_v6 = vpop.eup %5020  ;;  %v2273_v24 = vmul.f32 1.442695, %v2149_v9  ;;  %v7527_v9 = vld [vmem:[#allocation19_spill] sm:$0xff] }
 0x5c2   : > { %v2337_v4 = vpop.xlane.xlu0 %2336  ;;  %7521 = vst [vmem:[#allocation27_spill] sm:$0xff] %v6936_v6  ;;  %v2455_v34 = vsel %vm1896_vm2, %v6936_v6, 0.0 }
 0x5c3   : > { %2441 = vadd.xlane.f32.xlu0 %v2440_v2  ;;  %5030 = vpow2.f32 %v2273_v24 }
 0x5c4   : > { %5032 = vpow2.f32 %v2279_v23 }
 0x5c5   : > { %v6939_v36 = vpop.eup %5022  ;;  %5034 = vrcp.f32 %v2337_v4 }
 0x5c6   : > { %v2349_v32 = vpop.xlane.xlu0 %2348  ;;  %v2449_v28 = vsel %vm1896_vm2, %v6939_v36, 0.0 }
 0x5c7   : > { %v6943_v19 = vpop.eup %5024  ;;  %2456 = vadd.xlane.f32.xlu0 %v2455_v34 }
 0x5c8   : > { %7522 = vst [vmem:[#allocation21_spill] sm:$0xff] %v6943_v19  ;;  %v2464_v52 = vsel %vm1896_vm2, %v6943_v19, 0.0  ;;  %v6949_v30 = vpop.eup %5026 }
 0x5c9   : > { %2465 = vadd.xlane.f32.xlu1 %v2464_v52  ;;  %7523 = vst [vmem:[#allocation29_spill] sm:$0xff] %v6949_v30  ;;  %v2458_v5 = vsel %vm1896_vm2, %v6949_v30, 0.0  ;;  %v6953_v26 = vpop.eup %5028  ;;  %v6967_v52 = vpop.permute.xlu1 %3258 }
 0x5ca   : > { %v2343_v61 = vpop.xlane.xlu0 %2342  ;;  %7524 = vst [vmem:[#allocation22_spill] sm:$0xff] %v6953_v26  ;;  %v2467_v48 = vsel %vm1896_vm2, %v6953_v26, 0.0 }
 0x5cb   : > { %2450 = vadd.xlane.f32.xlu0 %v2449_v28 }
 0x5cd   : > { %v6957_v35 = vpop.eup %5030 }
 0x5ce   : > { %v2352_v11 = vpop.xlane.xlu0 %2351  ;;  %7525 = vst [vmem:[#allocation46_spill] sm:$0xff] %v6957_v35  ;;  %v2461_v29 = vsel %vm1896_vm2, %v6957_v35, 0.0  ;;  %v6961_v20 = vpop.eup %5032 }
 0x5cf   : > { %2459 = vadd.xlane.f32.xlu0 %v2458_v5  ;;  %7526 = vst [vmem:[#allocation49_spill] sm:$0xff] %v6961_v20  ;;  %v2470_v2 = vsel %vm1896_vm2, %v6961_v20, 0.0  ;;  %v5035_v20 = vpop.eup %5034 }
 0x5d2   : > { %v2346_v56 = vpop.xlane.xlu0 %2345 }
 0x5d3   : > { %2468 = vadd.xlane.f32.xlu0 %v2467_v48  ;;  %v7528_v48 = vld [vmem:[#allocation18_spill] sm:$0xff]  ;;  %5036 = vrcp.f32 %v2346_v56 }
 0x5d6   : > { %v2361_v12 = vpop.xlane.xlu0 %2360 }
 0x5d7   : > { %2462 = vadd.xlane.f32.xlu0 %v2461_v29 }
 0x5da   : > { %v2355_v15 = vpop.xlane.xlu0 %2354  ;;  %3262 = vrot.lane.b32.xlu1 %v7527_v9, %s5347_s21 }
 0x5db   : > { %2471 = vadd.xlane.f32.xlu0 %v2470_v2 }
 0x5dd   : > { %v5037_v4 = vpop.eup %5036 }
 0x5de   : > { %v2373_v40 = vpop.xlane.xlu0 %2372 }
 0x5e2   : > { %v2367_v24 = vpop.xlane.xlu0 %2366 }
 0x5e6   : > { %v2385_v34 = vpop.xlane.xlu0 %2384 }
 0x5ea   : > { %v2379_v23 = vpop.xlane.xlu0 %2378 }
 0x5ed   : > { %v2331_v28 = vpop.xlane.xlu1 %2330 }
 0x5ee   : > { %v2382_v5 = vpop.xlane.xlu0 %2381 }
 0x5f1   : > { %3260 = vrot.lane.b32.xlu0 %v7528_v48, %s5347_s21  ;;  %v2340_v29 = vpop.xlane.xlu1 %2339  ;;  %s4005_s21 = sshll.u32 %s3785_s23, 7 }
 0x5f2   : > { %5038 = vrcp.f32 %v2340_v29  ;;  %v6971_v2 = vpop.xlane.xlu0 %2396 }
 0x5f3   : > { %5040 = vrcp.f32 %v2331_v28 }
 0x5f4   : > { %5042 = vrcp.f32 %v2343_v61 }
 0x5f5   : > { %v2334_v9 = vpop.xlane.xlu1 %2333 }
 0x5f6   : > { %5044 = vrcp.f32 %v2334_v9  ;;  %v2391_v48 = vpop.xlane.xlu0 %2390 }
 0x5f7   : > { %5046 = vrcp.f32 %v2349_v32 }
 0x5f8   : > { %5048 = vrcp.f32 %v2352_v11 }
 0x5f9   : > { %v2364_v26 = vpop.xlane.xlu1 %2363  ;;  %5050 = vrcp.f32 %v2361_v12 }
 0x5fa   : > { %5052 = vrcp.f32 %v2364_v26  ;;  %v2558_v26 = vmul.f32 %v5037_v4, %v6697_v10  ;;  %v2394_v35 = vpop.xlane.xlu0 %2393  ;;  %v7529_v10 = vld [vmem:[#allocation23_spill] sm:$0xff] }
 0x5fb   : > { %5054 = vrcp.f32 %v2355_v15  ;;  %v2555_v15 = vmul.f32 %v5035_v20, %v6669_v31 }
 0x5fc   : > { %v5039_v19 = vpop.eup %5038  ;;  %5056 = vrcp.f32 %v2382_v5 }
 0x5fd   : > { %v2358_v6 = vpop.xlane.xlu1 %2357  ;;  %v5041_v56 = vpop.eup %5040  ;;  %v2556_v29 = vmul.f32 %v5039_v19, %v6754_v44 }
 0x5fe   : > { %5058 = vrcp.f32 %v2358_v6  ;;  %v5043_v28 = vpop.eup %5042  ;;  %v2553_v32 = vmul.f32 %v5041_v56, %v6745_v58  ;;  %v2409_v4 = vpop.xlane.xlu0 %2408 }
 0x5ff   : > { %5060 = vrcp.f32 %v2379_v23  ;;  %v2557_v6 = vmul.f32 %v5043_v28, %v6683_v60  ;;  %v2610_v16 = vpack.c.bf16 %v2556_v29, %v2555_v15  ;;  %v7533_v15 = vld [vmem:[#allocation35_spill] sm:$0xff] }
 0x600   : > { %v5045_v61 = vpop.eup %5044 }
 0x601   : > { %v2376_v9 = vpop.xlane.xlu1 %2375  ;;  %v2554_v11 = vmul.f32 %v5045_v61, %v6765_v3  ;;  %v5047_v12 = vpop.eup %5046  ;;  %v2611_v3 = vpack.c.bf16 %v2558_v26, %v2557_v6 }
 0x602   : > { %v5049_v5 = vpop.eup %5048  ;;  %5062 = vrcp.f32 %v2376_v9  ;;  %v2559_v61 = vmul.f32 %v5047_v12, %v6676_v49 }
 0x603   : > { %v2609_v30 = vpack.c.bf16 %v2554_v11, %v2553_v32  ;;  %v5051_v23 = vpop.eup %5050  ;;  %5064 = vrcp.f32 %v2367_v24  ;;  %v7530_v24 = vld [vmem:[#allocation24_spill] sm:$0xff] }
 0x604   : > { %v5053_v44 = vpop.eup %5052  ;;  %5066 = vrcp.f32 %v2373_v40  ;;  %v2563_v28 = vmul.f32 %v5051_v23, %v6704_v47 }
 0x605   : > { %4346 = vmatprep.mubr.msk.bf16.mxu1 %vm1896_vm2, %v2609_v30  ;;  %v2370_v58 = vpop.xlane.xlu1 %2369  ;;  %v5055_v19 = vpop.eup %5054  ;;  %v2564_v20 = vmul.f32 %v5053_v44, %v6775_v43  ;;  %v2560_v30 = vmul.f32 %v5049_v5, %v6692_v38  ;;  %v7531_v38 = vld [vmem:[#allocation25_spill] sm:$0xff] }
 0x606   : > { %5068 = vrcp.f32 %v2370_v58  ;;  %4347 = vmatmul.mubr.msk.bf16.vlgmr.msra.gmra.mrb[32].mxu1 %vm1896_vm2, %v2610_v16  ;;  %v5057_v31 = vpop.eup %5056  ;;  %v2561_v16 = vmul.f32 %v5055_v19, %v6709_v55  ;;  %v7534_v19 = vld [vmem:[#allocation42_spill] sm:$0xff] }
 0x607   : > { %5070 = vrcp.f32 %v2394_v35  ;;  %4371 = vmatpush3.bf16.msra.mxu1 %v7529_v10  ;;  %4350 = vmatprep.mubr.msk.bf16.mxu1 %vm1896_vm2, %v2611_v3  ;;  %v2614_v29 = vpack.c.bf16 %v2564_v20, %v2563_v28 }
 0x608   : > { %v5059_v60 = vpop.eup %5058  ;;  %5072 = vrcp.f32 %v2385_v34  ;;  %4372 = vmatprep.subr.bf16.mxu1 %v7530_v24  ;;  %v2570_v34 = vmul.f32 %v5057_v31, %v6749_v17  ;;  %v2403_v17 = vpop.xlane.xlu0 %2402  ;;  %v7535_v31 = vld [vmem:[#allocation30_spill] sm:$0xff] }
 0x609   : > { %v5061_v40 = vpop.eup %5060  ;;  %5074 = vrcp.f32 %v2391_v48  ;;  %v2388_v56 = vpop.xlane.xlu1 %2387  ;;  %v2562_v35 = vmul.f32 %v5059_v60, %v6783_v42  ;;  %v2612_v48 = vpack.c.bf16 %v2560_v30, %v2559_v61 }
 0x60a   : > { %5076 = vrcp.f32 %v2388_v56  ;;  %v2569_v9 = vmul.f32 %v5061_v40, %v6739_v46  ;;  %v7532_v46 = vld [vmem:[#allocation26_spill] sm:$0xff] }
 0x60b   : > { %4373 = vmatpush3.bf16.msra.mxu1 %v7530_v24  ;;  %v2613_v43 = vpack.c.bf16 %v2562_v35, %v2561_v16  ;;  %v7536_v40 = vld [vmem:[#allocation38_spill] sm:$0xff]  ;;  %v7538_v16 = vld [vmem:[#allocation40_spill] sm:$0xff] }
 0x60c   : > { %4374 = vmatprep.subr.bf16.mxu1 %v7531_v38  ;;  %v5063_v32 = vpop.eup %5062  ;;  %v2617_v49 = vpack.c.bf16 %v2570_v34, %v2569_v9  ;;  %v2421_v3 = vpop.xlane.xlu0 %2420 }
 0x60d   : > { %4362 = vmatprep.mubr.msk.bf16.mxu0 %vm1896_vm2, %v2613_v43  ;;  %v2400_v55 = vpop.xlane.xlu1 %2399  ;;  %v5065_v42 = vpop.eup %5064  ;;  %v2568_v26 = vmul.f32 %v5063_v32, %v6787_v27 }
 0x60e   : > { %5078 = vrcp.f32 %v2400_v55  ;;  %4351 = vmatmul.mubr.msk.bf16.gmra.mrb[36].mxu1 %vm1896_vm2, %v2612_v48  ;;  %4363 = vmatmul.mubr.msk.bf16.vlgmr.msra.gmra.mrb[64].mxu0 %vm1896_vm2, %v2614_v29  ;;  %v5067_v47 = vpop.eup %5066  ;;  %v2565_v6 = vmul.f32 %v5065_v42, %v6725_v33  ;;  %v7539_v29 = vld [vmem:[#allocation34_spill] sm:$0xff] }
 0x60f   : > { %4375 = vmatpush3.bf16.msra.mxu1 %v7531_v38  ;;  %4387 = vmatpush3.bf16.msra.mxu0 %v7513_v62  ;;  %5080 = vrcp.f32 %v6971_v2  ;;  %v2567_v62 = vmul.f32 %v5067_v47, %v6716_v22 }
 0x610   : > { %v5069_v11 = vpop.eup %5068  ;;  %4376 = vmatprep.subr.bf16.mxu1 %v7532_v46  ;;  %4378 = vmatprep.mubr.msk.bf16.mxu1 %vm1896_vm2, %v2617_v49  ;;  %v2415_v56 = vpop.xlane.xlu0 %2414 }
 0x611   : > { %v5071_v12 = vpop.eup %5070  ;;  %4388 = vmatprep.subr.bf16.mxu0 %v7533_v15  ;;  %v2412_v5 = vpop.xlane.xlu1 %2411  ;;  %v2566_v23 = vmul.f32 %v5069_v11, %v6808_v1  ;;  %v2616_v33 = vpack.c.bf16 %v2568_v26, %v2567_v62  ;;  %v7541_v11 = vld [vmem:[#allocation39_spill] sm:$0xff]  ;;  %v7542_v26 = vld [vmem:[#allocation36_spill] sm:$0xff] }
 0x612   : > { %v5073_v44 = vpop.eup %5072  ;;  %5082 = vrcp.f32 %v2412_v5  ;;  %v2574_v1 = vmul.f32 %v5071_v12, %v6781_v41 }
 0x613   : > { %v5075_v58 = vpop.eup %5074  ;;  %4377 = vmatpush3.bf16.msra.mxu1 %v7532_v46  ;;  %4389 = vmatpush3.bf16.msra.mxu0 %v7533_v15  ;;  %v2615_v2 = vpack.c.bf16 %v2566_v23, %v2565_v6  ;;  %5084 = vrcp.f32 %v2403_v17  ;;  %v2571_v10 = vmul.f32 %v5073_v44, %v6732_v7 }
 0x614   : > { %v5077_v27 = vpop.eup %5076  ;;  %4390 = vmatprep.subr.bf16.mxu0 %v7534_v19  ;;  %4402 = vmatprep.subr.bf16.mxu1 %v7535_v31  ;;  %5086 = vrcp.f32 %v2409_v4  ;;  %v2573_v20 = vmul.f32 %v5075_v58, %v6769_v54  ;;  %v7537_v54 = vld [vmem:[#allocation32_spill] sm:$0xff] }
 0x615   : > { %v2572_v22 = vmul.f32 %v5077_v27, %v6816_v0  ;;  %4366 = vmatprep.mubr.msk.bf16.mxu0 %vm1896_vm2, %v2615_v2  ;;  %v2406_v60 = vpop.xlane.xlu1 %2405 }
 0x616   : > { %5088 = vrcp.f32 %v2406_v60  ;;  %4367 = vmatmul.mubr.msk.bf16.gmra.mrb[68].mxu0 %vm1896_vm2, %v2616_v33  ;;  %v2619_v41 = vpack.c.bf16 %v2574_v1, %v2573_v20 }
 0x617   : > { %v2618_v24 = vpack.c.bf16 %v2572_v22, %v2571_v10  ;;  %4391 = vmatpush3.bf16.msra.mxu0 %v7534_v19 }
 0x618   : > { %v5079_v30 = vpop.eup %5078  ;;  %4392 = vmatprep.subr.bf16.mxu0 %v7536_v40 }
 0x619   : > { %4379 = vmatmul.mubr.msk.bf16.vlgmr.msra.gmra.mrb[40].mxu1 %vm1896_vm2, %v2618_v24  ;;  %v2424_v7 = vpop.xlane.xlu1 %2423  ;;  %v5081_v0 = vpop.eup %5080  ;;  %v2576_v4 = vmul.f32 %v5079_v30, %v6820_v8 }
 0x61a   : > { %4403 = vmatpush3.bf16.msra.mxu1 %v7535_v31  ;;  %4382 = vmatprep.mubr.msk.bf16.mxu1 %vm1896_vm2, %v2619_v41  ;;  %5090 = vrcp.f32 %v2424_v7  ;;  %v2575_v61 = vmul.f32 %v5081_v0, %v6758_v37  ;;  %v7540_v37 = vld [vmem:[#allocation37_spill] sm:$0xff]  ;;  %v7543_v31 = vld [vmem:[#allocation43_spill] sm:$0xff] }
 0x61b   : > { %4393 = vmatpush3.bf16.msra.mxu0 %v7536_v40  ;;  %4404 = vmatprep.subr.bf16.mxu1 %v7537_v54  ;;  %5092 = vrcp.f32 %v2415_v56 }
 0x61c   : > { %4418 = vmatprep.subr.bf16.mxu0 %v7538_v16  ;;  %v5083_v35 = vpop.eup %5082  ;;  %5094 = vrcp.f32 %v2421_v3  ;;  %v2620_v38 = vpack.c.bf16 %v2576_v4, %v2575_v61 }
 0x61d   : > { %v2418_v28 = vpop.xlane.xlu1 %2417  ;;  %v5085_v34 = vpop.eup %5084  ;;  %v2580_v9 = vmul.f32 %v5083_v35, %v6832_v59 }
 0x61e   : > { %4405 = vmatpush3.bf16.msra.mxu1 %v7537_v54  ;;  %5096 = vrcp.f32 %v2418_v28  ;;  %v5087_v43 = vpop.eup %5086  ;;  %v2577_v8 = vmul.f32 %v5085_v34, %v6799_v13 }
 0x61f   : > { %4406 = vmatprep.subr.bf16.mxu1 %v7539_v29  ;;  %v2579_v55 = vmul.f32 %v5087_v43, %v6791_v53 }
 0x620   : > { %v5089_v48 = vpop.eup %5088 }
 0x621   : > { %4383 = vmatmul.mubr.msk.bf16.gmra.mrb[44].mxu1 %vm1896_vm2, %v2620_v38  ;;  %v2578_v32 = vmul.f32 %v5089_v48, %v6849_v51  ;;  %v2622_v49 = vpack.c.bf16 %v2580_v9, %v2579_v55 }
 0x622   : > { %4407 = vmatpush3.bf16.msra.mxu1 %v7539_v29 }
 0x623   : > { %4408 = vmatprep.subr.bf16.mxu1 %v7540_v37  ;;  %v2621_v42 = vpack.c.bf16 %v2578_v32, %v2577_v8 }
 0x624   : > { %v5091_v47 = vpop.eup %5090 }
 0x625   : > { %4394 = vmatprep.mubr.msk.bf16.mxu0 %vm1896_vm2, %v2621_v42  ;;  %v5093_v17 = vpop.eup %5092  ;;  %v2584_v53 = vmul.f32 %v5091_v47, %v6857_v25 }
 0x626   : > { %4409 = vmatpush3.bf16.msra.mxu1 %v7540_v37  ;;  %4395 = vmatmul.mubr.msk.bf16.vlgmr.msra.gmra.mrb[72].mxu0 %vm1896_vm2, %v2622_v49  ;;  %v5095_v59 = vpop.eup %5094  ;;  %v2581_v51 = vmul.f32 %v5093_v17, %v6837_v39  ;;  %v7544_v37 = vld [vmem:[#allocation20_spill] sm:$0xff] }
 0x627   : > { %4419 = vmatpush3.bf16.msra.mxu0 %v7538_v16  ;;  %v2583_v12 = vmul.f32 %v5095_v59, %v7542_v26 }
 0x628   : > { %v5097_v13 = vpop.eup %5096  ;;  %4420 = vmatprep.subr.bf16.mxu0 %v6967_v52 }
 0x629   : > { %v2582_v46 = vmul.f32 %v5097_v13, %v7541_v11  ;;  %v2624_v5 = vpack.c.bf16 %v2584_v53, %v2583_v12  ;;  %v7545_v11 = vld [vmem:[#allocation29_spill] sm:$0xff]  ;;  %v7547_v12 = vld [vmem:[#allocation27_spill] sm:$0xff] }
 0x62b   : > { %4421 = vmatpush3.bf16.msra.mxu0 %v6967_v52  ;;  %v2623_v15 = vpack.c.bf16 %v2582_v46, %v2581_v51 }
 0x62d   : > { %4398 = vmatprep.mubr.msk.bf16.mxu0 %vm1896_vm2, %v2623_v15 }
 0x62e   : > { %4399 = vmatmul.mubr.msk.bf16.gmra.mrb[76].mxu0 %vm1896_vm2, %v2624_v5 }
 0x634   : > { %v2433_v6 = vpop.xlane.xlu0 %2432 }
 0x636   : > { %v2436_v23 = vpop.xlane.xlu1 %2435 }
 0x637   : > { %5098 = vrcp.f32 %v2436_v23 }
 0x638   : > { %v2427_v44 = vpop.xlane.xlu0 %2426 }
 0x639   : > { %5100 = vrcp.f32 %v2427_v44 }
 0x63a   : > { %5102 = vrcp.f32 %v2433_v6  ;;  %v7548_v6 = vld [vmem:[#allocation21_spill] sm:$0xff] }
 0x63c   : > { %v2430_v25 = vpop.xlane.xlu0 %2429 }
 0x63d   : > { %5104 = vrcp.f32 %v2430_v25 }
 0x641   : > { %v5099_v39 = vpop.eup %5098 }
 0x642   : > { %v2588_v52 = vmul.f32 %v5099_v39, %v6884_v21  ;;  %v2448_v24 = vpop.xlane.xlu1 %2447 }
 0x643   : > { %v5101_v62 = vpop.eup %5100 }
 0x644   : > { %v5103_v58 = vpop.eup %5102  ;;  %v2585_v27 = vmul.f32 %v5101_v62, %v6889_v57 }
 0x645   : > { %v2587_v33 = vmul.f32 %v5103_v58, %v7543_v31 }
 0x647   : > { %v5105_v3 = vpop.eup %5104  ;;  %v2626_v10 = vpack.c.bf16 %v2588_v52, %v2587_v33 }
 0x648   : > { %v2445_v2 = vpop.xlane.xlu0 %2444  ;;  %v2586_v19 = vmul.f32 %v5105_v3, %v6894_v50 }
 0x649   : > { %5106 = vrcp.f32 %v2445_v2  ;;  %v7549_v2 = vld [vmem:[#allocation49_spill] sm:$0xff] }
 0x64a   : > { %v2625_v1 = vpack.c.bf16 %v2586_v19, %v2585_v27  ;;  %v7052_v22 = vpop.f32.mrb[48].mxu0  ;;  %v7550_v19 = vld [vmem:[#allocation22_spill] sm:$0xff] }
 0x64b   : > { %v7054_v60 = vpop.f32.mrb[49].mxu0 }
 0x64c   : > { %v2439_v20 = vpop.xlane.xlu0 %2438  ;;  %4410 = vmatprep.mubr.msk.bf16.mxu1 %vm1896_vm2, %v2625_v1  ;;  %v7057_v30 = vpop.f32.mrb[50].mxu0 }
 0x64d   : > { %4411 = vmatmul.mubr.msk.bf16.vlgmr.msra.gmra.mrb[48].mxu1 %vm1896_vm2, %v2626_v10  ;;  %v7060_v21 = vpop.f32.mrb[51].mxu0  ;;  %5108 = vrcp.f32 %v2439_v20 }
 0x64e   : > { %5110 = vrcp.f32 %v2448_v24  ;;  %v2454_v50 = vpop.xlane.xlu1 %2453 }
 0x650   : > { %v2442_v57 = vpop.xlane.xlu0 %2441 }
 0x651   : > { %5112 = vrcp.f32 %v2442_v57 }
 0x652   : > { %5114 = vrcp.f32 %v2454_v50 }
 0x653   : > { %v5107_v41 = vpop.eup %5106 }
 0x654   : > { %v2457_v40 = vpop.xlane.xlu0 %2456  ;;  %v2591_v35 = vmul.f32 %v5107_v41, %v6916_v14 }
 0x656   : > { %v2466_v55 = vpop.xlane.xlu1 %2465 }
 0x657   : > { %v5109_v7 = vpop.eup %5108 }
 0x658   : > { %v2451_v56 = vpop.xlane.xlu0 %2450  ;;  %v5111_v0 = vpop.eup %5110  ;;  %v2589_v34 = vmul.f32 %v5109_v7, %v6922_v45 }
 0x659   : > { %5116 = vrcp.f32 %v2451_v56  ;;  %v2592_v38 = vmul.f32 %v5111_v0, %v6907_v18 }
 0x65a   : > { %v7062_v54 = vpop.f32.mrb[52].mxu0  ;;  %v3263_v53 = vpop.permute.xlu1 %3262 }
 0x65b   : > { %v5113_v4 = vpop.eup %5112  ;;  %v7064_v16 = vpop.f32.mrb[53].mxu0  ;;  %v2628_v9 = vpack.c.bf16 %v2592_v38, %v2591_v35 }
 0x65c   : > { %v7067_v28 = vpop.f32.mrb[54].mxu0  ;;  %v2460_v61 = vpop.xlane.xlu0 %2459  ;;  %v2590_v43 = vmul.f32 %v5113_v4, %v6925_v63 }
 0x65d   : > { %v7071_v29 = vpop.f32.mrb[55].mxu0  ;;  %v5115_v32 = vpop.eup %5114  ;;  %5118 = vrcp.f32 %v2460_v61 }
 0x65e   : > { %v2627_v48 = vpack.c.bf16 %v2590_v43, %v2589_v34  ;;  %5120 = vrcp.f32 %v2457_v40  ;;  %v2594_v42 = vmul.f32 %v5115_v32, %v7544_v37 }
 0x65f   : > { %5122 = vrcp.f32 %v2466_v55 }
 0x660   : > { %v2469_v8 = vpop.xlane.xlu0 %2468  ;;  %4414 = vmatprep.mubr.msk.bf16.mxu1 %vm1896_vm2, %v2627_v48 }
 0x661   : > { %4415 = vmatmul.mubr.msk.bf16.gmra.mrb[52].mxu1 %vm1896_vm2, %v2628_v9 }
 0x663   : > { %v5117_v14 = vpop.eup %5116 }
 0x664   : > { %v2463_v45 = vpop.xlane.xlu0 %2462  ;;  %v2593_v63 = vmul.f32 %v5117_v14, %v6939_v36  ;;  %v7546_v36 = vld [vmem:[#allocation46_spill] sm:$0xff] }
 0x665   : > { %5124 = vrcp.f32 %v2463_v45 }
 0x666   : > { %v2629_v18 = vpack.c.bf16 %v2594_v42, %v2593_v63 }
 0x667   : > { %v5119_v47 = vpop.eup %5118 }
 0x668   : > { %v2472_v49 = vpop.xlane.xlu0 %2471  ;;  %4426 = vmatprep.mubr.msk.bf16.mxu0 %vm1896_vm2, %v2629_v18  ;;  %v5121_v59 = vpop.eup %5120  ;;  %v2596_v46 = vmul.f32 %v5119_v47, %v7545_v11 }
 0x669   : > { %5126 = vrcp.f32 %v2472_v49  ;;  %v5123_v13 = vpop.eup %5122  ;;  %v2595_v15 = vmul.f32 %v5121_v59, %v7547_v12 }
 0x66a   : > { %5128 = vrcp.f32 %v2469_v8  ;;  %v2598_v23 = vmul.f32 %v5123_v13, %v7548_v6 }
 0x66b   : > { %v2630_v44 = vpack.c.bf16 %v2596_v46, %v2595_v15 }
 0x66c   : > { %v3261_v17 = vpop.permute.xlu0 %3260 }
 0x66d   : > { %4422 = vmatprep.subr.bf16.mxu0 %v3261_v17 }
 0x66e   : > { %4423 = vmatpush3.bf16.msra.mxu0 %v3261_v17 }
 0x66f   : > { %v5125_v51 = vpop.eup %5124  ;;  %4424 = vmatprep.subr.bf16.mxu0 %v3263_v53 }
 0x670   : > { %v2597_v26 = vmul.f32 %v5125_v51, %v7546_v36 }
 0x672   : > { %v7082_v5 = vpop.f32.mrb[56].mxu0  ;;  %4425 = vmatpush3.bf16.msra.mxu0 %v3263_v53  ;;  %v2631_v58 = vpack.c.bf16 %v2598_v23, %v2597_v26  ;;  %v4840_v53 = vld [vmem:[%s7356_s6] sm:$0xff]  }
 0x673   : > { %v7085_v25 = vpop.f32.mrb[57].mxu0  ;;  %v5127_v39 = vpop.eup %5126  ;;  %4434 = vmatprep.subr.bf16.mxu1 %v4840_v53 }
 0x674   : > { %v7087_v62 = vpop.f32.mrb[58].mxu0  ;;  %v5129_v52 = vpop.eup %5128  ;;  %v2600_v27 = vmul.f32 %v5127_v39, %v7549_v2  ;;  %4435 = vmatpush3.bf16.msra.mxu1 %v4840_v53 }
 0x675   : > { %v7089_v3 = vpop.f32.mrb[59].mxu0  ;;  %4427 = vmatmul.mubr.msk.bf16.vlgmr.msra.gmra.mrb[80].mxu0 %vm1896_vm2, %v2630_v44  ;;  %v2599_v31 = vmul.f32 %v5129_v52, %v7550_v19 }
 0x676   : > { %4430 = vmatprep.mubr.msk.bf16.mxu0 %vm1896_vm2, %v2631_v58 }
 0x677   : > { %v2632_v33 = vpack.c.bf16 %v2600_v27, %v2599_v31 }
 0x67d   : > { %4431 = vmatmul.mubr.msk.bf16.gmra.mrb[84].mxu0 %vm1896_vm2, %v2632_v33 }
 0x68a   : > { %v7096_v1 = vpop.f32.mrb[60].mxu0 }
 0x68b   : > { %v7098_v10 = vpop.f32.mrb[61].mxu0 }
 0x68c   : > { %v7100_v20 = vpop.f32.mrb[62].mxu0 }
 0x68d   : > { %v7102_v24 = vpop.f32.mrb[63].mxu0 }
 0x6d9   : > { %v4348_v57 = vpop.f32.mrb[32].mxu1 }
 0x6da   : > { %v2869_v50 = vpop.f32.mrb[33].mxu1 }
 0x6db   : > { %v4349_v40 = vpop.f32.mrb[34].mxu1 }
 0x6dc   : > { %v4718_v41 = vpack.i.bf16 %v4349_v40, %v4348_v57  ;;  %v2872_v56 = vpop.f32.mrb[35].mxu1 }
 0x6dd   : > { %v4723_v7 = vpack.i.bf16 %v2872_v56, %v2869_v50  ;;  %v4841_v50 = vld [vmem:[%s7356_s6 + $0x8] sm:$0xff]  }
 0x6de   : > { %4719 = vrot.lane.b32.xlu1 %v4718_v41, %s5348_s8  ;;  %4436 = vmatprep.subr.bf16.mxu1 %v4841_v50 }
 0x6df   : > { %4724 = vrot.lane.b32.xlu0 %v4723_v7, %s5348_s8  ;;  %4437 = vmatpush3.bf16.msra.mxu1 %v4841_v50 }
 0x6e1   : > { %v4352_v0 = vpop.f32.mrb[36].mxu1  ;;  %v4364_v4 = vpop.f32.mrb[64].mxu0 }
 0x6e2   : > { %v2885_v35 = vpop.f32.mrb[37].mxu1  ;;  %v2958_v61 = vpop.f32.mrb[65].mxu0 }
 0x6e3   : > { %v4353_v34 = vpop.f32.mrb[38].mxu1  ;;  %v4365_v43 = vpop.f32.mrb[66].mxu0 }
 0x6e4   : > { %v4728_v38 = vpack.i.bf16 %v4353_v34, %v4352_v0  ;;  %v4738_v48 = vpack.i.bf16 %v4365_v43, %v4364_v4  ;;  %v2888_v9 = vpop.f32.mrb[39].mxu1  ;;  %v2961_v8 = vpop.f32.mrb[67].mxu0 }
 0x6e5   : > { %v4733_v32 = vpack.i.bf16 %v2888_v9, %v2885_v35  ;;  %v4743_v55 = vpack.i.bf16 %v2961_v8, %v2958_v61 }
 0x6e6   : > { %4729 = vrot.lane.b32.xlu1 %v4728_v38, %s5348_s8 }
 0x6e7   : > { %4734 = vrot.lane.b32.xlu0 %v4733_v32, %s5348_s8 }
 0x6e9   : > { %v4368_v14 = vpop.f32.mrb[68].mxu0 }
 0x6ea   : > { %4739 = vrot.lane.b32.xlu1 %v4738_v48, %s5348_s8  ;;  %v2974_v45 = vpop.f32.mrb[69].mxu0 }
 0x6eb   : > { %4744 = vrot.lane.b32.xlu0 %v4743_v55, %s5348_s8  ;;  %v4369_v63 = vpop.f32.mrb[70].mxu0 }
 0x6ec   : > { %v4803_v37 = vpack.i.bf16 %v4369_v63, %v4368_v14  ;;  %v2977_v42 = vpop.f32.mrb[71].mxu0  ;;  %v4380_v18 = vpop.f32.mrb[40].mxu1 }
 0x6ed   : > { %v4798_v49 = vpack.i.bf16 %v2977_v42, %v2974_v45  ;;  %v3047_v47 = vpop.f32.mrb[41].mxu1 }
 0x6ee   : > { %v4381_v17 = vpop.f32.mrb[42].mxu1 }
 0x6ef   : > { %v4748_v59 = vpack.i.bf16 %v4381_v17, %v4380_v18  ;;  %v3050_v13 = vpop.f32.mrb[43].mxu1 }
 0x6f0   : > { %v4753_v51 = vpack.i.bf16 %v3050_v13, %v3047_v47 }
 0x6f1   : > { %4749 = vrot.lane.b32.xlu1 %v4748_v59, %s5349_s27 }
 0x6f2   : > { %4754 = vrot.lane.b32.xlu0 %v4753_v51, %s5349_s27 }
 0x6f4   : > { %v4384_v11 = vpop.f32.mrb[44].mxu1 }
 0x6f5   : > { %v3063_v46 = vpop.f32.mrb[45].mxu1 }
 0x6f6   : > { %v4385_v36 = vpop.f32.mrb[46].mxu1 }
 0x6f7   : > { %v4758_v26 = vpack.i.bf16 %v4385_v36, %v4384_v11  ;;  %v3066_v12 = vpop.f32.mrb[47].mxu1 }
 0x6f8   : > { %v4763_v15 = vpack.i.bf16 %v3066_v12, %v3063_v46 }
 0x6f9   : > { %4759 = vrot.lane.b32.xlu1 %v4758_v26, %s5349_s27  ;;  %v4396_v6 = vpop.f32.mrb[72].mxu0 }
 0x6fa   : > { %4764 = vrot.lane.b32.xlu0 %v4763_v15, %s5349_s27  ;;  %v3136_v23 = vpop.f32.mrb[73].mxu0 }
 0x6fb   : > { %v4397_v44 = vpop.f32.mrb[74].mxu0 }
 0x6fc   : > { %v4783_v39 = vpack.i.bf16 %v4397_v44, %v4396_v6  ;;  %v3139_v58 = vpop.f32.mrb[75].mxu0 }
 0x6fd   : > { %v4778_v52 = vpack.i.bf16 %v3139_v58, %v3136_v23 }
 0x701   : > { %v4400_v2 = vpop.f32.mrb[76].mxu0 }
 0x702   : > { %v3152_v27 = vpop.f32.mrb[77].mxu0 }
 0x703   : > { %v4401_v19 = vpop.f32.mrb[78].mxu0 }
 0x704   : > { %v4823_v31 = vpack.i.bf16 %v4401_v19, %v4400_v2  ;;  %v3155_v33 = vpop.f32.mrb[79].mxu0 }
 0x705   : > { %v4818_v57 = vpack.i.bf16 %v3155_v33, %v3152_v27 }
 0x720   : > { %v4412_v40 = vpop.f32.mrb[48].mxu1 }
 0x721   : > { %v3225_v41 = vpop.f32.mrb[49].mxu1 }
 0x722   : > { %v4413_v56 = vpop.f32.mrb[50].mxu1 }
 0x723   : > { %v4768_v7 = vpack.i.bf16 %v4413_v56, %v4412_v40  ;;  %v3228_v0 = vpop.f32.mrb[51].mxu1 }
 0x724   : > { %v4773_v4 = vpack.i.bf16 %v3228_v0, %v3225_v41 }
 0x725   : > { %4769 = vrot.lane.b32.xlu1 %v4768_v7, %s5350_s15 }
 0x726   : > { %4774 = vrot.lane.b32.xlu0 %v4773_v4, %s5350_s15 }
 0x729   : > { %4784 = vrot.lane.b32.xlu1 %v4783_v39, %s5349_s27 }
 0x72a   : > { %4779 = vrot.lane.b32.xlu0 %v4778_v52, %s5349_s27 }
 0x734   : > { %v4416_v35 = vpop.f32.mrb[52].mxu1 }
 0x735   : > { %v3241_v61 = vpop.f32.mrb[53].mxu1 }
 0x736   : > { %v4417_v34 = vpop.f32.mrb[54].mxu1 }
 0x737   : > { %v4788_v43 = vpack.i.bf16 %v4417_v34, %v4416_v35  ;;  %v3244_v38 = vpop.f32.mrb[55].mxu1 }
 0x738   : > { %v4793_v48 = vpack.i.bf16 %v3244_v38, %v3241_v61 }
 0x739   : > { %4789 = vrot.lane.b32.xlu1 %v4788_v43, %s5350_s15 }
 0x73a   : > { %4794 = vrot.lane.b32.xlu0 %v4793_v48, %s5350_s15 }
 0x73d   : > { %4804 = vrot.lane.b32.xlu1 %v4803_v37, %s5348_s8 }
 0x73e   : > { %4799 = vrot.lane.b32.xlu0 %v4798_v49, %s5348_s8 }
 0x748   : > { %v4428_v9 = vpop.f32.mrb[80].mxu0 }
 0x749   : > { %v3314_v8 = vpop.f32.mrb[81].mxu0 }
 0x74a   : > { %v4429_v32 = vpop.f32.mrb[82].mxu0 }
 0x74b   : > { %v4808_v55 = vpack.i.bf16 %v4429_v32, %v4428_v9  ;;  %v3317_v14 = vpop.f32.mrb[83].mxu0 }
 0x74c   : > { %v4813_v45 = vpack.i.bf16 %v3317_v14, %v3314_v8 }
 0x74d   : > { %4809 = vrot.lane.b32.xlu1 %v4808_v55, %s5350_s15 }
 0x74e   : > { %4814 = vrot.lane.b32.xlu0 %v4813_v45, %s5350_s15 }
 0x750   : > { %v4432_v63 = vpop.f32.mrb[84].mxu0  ;;  %v4720_v17 = vpop.permute.xlu1 %4719 }
 0x751   : > { %4824 = vrot.lane.b32.xlu1 %v4823_v31, %s5349_s27  ;;  %v3330_v42 = vpop.f32.mrb[85].mxu0  ;;  %v4725_v59 = vpop.permute.xlu0 %4724  ;;  %v4722_v26 = vunpack.i.h.bf16 %v4720_v17  ;;  %v4721_v12 = vunpack.i.l.bf16 %v4720_v17 }
 0x752   : > { %4819 = vrot.lane.b32.xlu0 %v4818_v57, %s5349_s27  ;;  %v4433_v18 = vpop.f32.mrb[86].mxu0  ;;  %v4727_v6 = vunpack.i.h.bf16 %v4725_v59  ;;  %v4726_v23 = vunpack.i.l.bf16 %v4725_v59 }
 0x753   : > { %v4833_v37 = vpack.i.bf16 %v4433_v18, %v4432_v63  ;;  %v3333_v47 = vpop.f32.mrb[87].mxu0  ;;  %v3540_v27 = vsel %vm1003_vm1, %v7057_v30, %v4722_v26  ;;  %v3539_v19 = vsel %vm1003_vm1, %v7052_v22, %v4721_v12 }
 0x754   : > { %v4828_v49 = vpack.i.bf16 %v3333_v47, %v3330_v42  ;;  %v3538_v33 = vsel %vm1003_vm1, %v7060_v21, %v4727_v6  ;;  %v3537_v57 = vsel %vm1003_vm1, %v7054_v60, %v4726_v23 }
 0x755   : > { %4834 = vrot.lane.b32.xlu1 %v4833_v37, %s5350_s15 }
 0x756   : > { %4829 = vrot.lane.b32.xlu0 %v4828_v49, %s5350_s15  ;;  %s7286_s15 = scalar_lea.hbm %s7555_s7, %s4005_s21 }
 0x758   : > { %v4730_v13 = vpop.permute.xlu1 %4729 }
 0x759   : > { %v4735_v53 = vpop.permute.xlu0 %4734  ;;  %v4732_v38 = vunpack.i.h.bf16 %v4730_v13  ;;  %v4731_v48 = vunpack.i.l.bf16 %v4730_v13 }
 0x75a   : > { %v4737_v8 = vunpack.i.h.bf16 %v4735_v53  ;;  %v4736_v32 = vunpack.i.l.bf16 %v4735_v53 }
 0x75b   : > { %v3544_v18 = vsel %vm1003_vm1, %v7067_v28, %v4732_v38  ;;  %v3543_v37 = vsel %vm1003_vm1, %v7062_v54, %v4731_v48 }
 0x75c   : > { %v7134_v51 = vpop.permute.xlu1 %4739  ;;  %v3542_v49 = vsel %vm1003_vm1, %v7071_v29, %v4737_v8  ;;  %v3541_v17 = vsel %vm1003_vm1, %v7064_v16, %v4736_v32 }
 0x75d   : > { %v7136_v11 = vpop.permute.xlu0 %4744 }
 0x763   : > { %v4750_v46 = vpop.permute.xlu1 %4749 }
 0x764   : > { %v4755_v36 = vpop.permute.xlu0 %4754  ;;  %v4752_v39 = vunpack.i.h.bf16 %v4750_v46  ;;  %v4751_v58 = vunpack.i.l.bf16 %v4750_v46 }
 0x765   : > { %v4757_v52 = vunpack.i.h.bf16 %v4755_v36  ;;  %v4756_v2 = vunpack.i.l.bf16 %v4755_v36 }
 0x766   : > { %v3556_v56 = vsel %vm3553_vm3, %v3539_v19, %v4751_v58  ;;  %v3557_v7 = vsel %vm3553_vm3, %v3540_v27, %v4752_v39  ;;  %v4742_v39 = vunpack.i.h.bf16 %v7134_v51  ;;  %v4741_v58 = vunpack.i.l.bf16 %v7134_v51 }
 0x767   : > { %v3555_v4 = vsel %vm3553_vm3, %v3538_v33, %v4757_v52  ;;  %v3554_v22 = vsel %vm3553_vm3, %v3537_v57, %v4756_v2  ;;  %v4747_v52 = vunpack.i.h.bf16 %v7136_v11  ;;  %v4746_v27 = vunpack.i.l.bf16 %v7136_v11 }
 0x76b   : > { %v4760_v15 = vpop.permute.xlu1 %4759 }
 0x76c   : > { %v4765_v44 = vpop.permute.xlu0 %4764  ;;  %v4762_v14 = vunpack.i.h.bf16 %v4760_v15  ;;  %v4761_v45 = vunpack.i.l.bf16 %v4760_v15 }
 0x76d   : > { %v4767_v63 = vunpack.i.h.bf16 %v4765_v44  ;;  %v4766_v42 = vunpack.i.l.bf16 %v4765_v44 }
 0x76e   : > { %v3560_v46 = vsel %vm3553_vm3, %v3543_v37, %v4761_v45  ;;  %v3561_v36 = vsel %vm3553_vm3, %v3544_v18, %v4762_v14 }
 0x76f   : > { %v3559_v28 = vsel %vm3553_vm3, %v3542_v49, %v4767_v63  ;;  %v3558_v54 = vsel %vm3553_vm3, %v3541_v17, %v4766_v42 }
 0x797   : > { %v4770_v31 = vpop.permute.xlu1 %4769 }
 0x798   : > { %v4772_v50 = vunpack.i.h.bf16 %v4770_v31  ;;  %v4771_v40 = vunpack.i.l.bf16 %v4770_v31  ;;  %v4775_v41 = vpop.permute.xlu0 %4774 }
 0x799   : > { %v4777_v0 = vunpack.i.h.bf16 %v4775_v41  ;;  %v4776_v30 = vunpack.i.l.bf16 %v4775_v41  ;;  %v3547_v41 = vsel %vm1003_vm1, %v7082_v5, %v4741_v58 }
 0x79a   : > { %v3573_v35 = vsel %vm3570_vm4, %v3556_v56, %v4771_v40  ;;  %v3574_v21 = vsel %vm3570_vm4, %v3557_v7, %v4772_v50  ;;  %v3548_v40 = vsel %vm1003_vm1, %v7087_v62, %v4742_v39  ;;  %v3546_v56 = vsel %vm1003_vm1, %v7089_v3, %v4747_v52  ;;  %v5130_v52 = vld [vmem:[%s5613_s20 + $0x20] sm:$0xff] }
 0x79b   : > { %v3588_v61 = vpack.c.bf16 %v3574_v21, %v3573_v35  ;;  %v3572_v60 = vsel %vm3570_vm4, %v3555_v4, %v4777_v0  ;;  %v3571_v34 = vsel %vm3570_vm4, %v3554_v22, %v4776_v30  ;;  %v4785_v9 = vpop.permute.xlu1 %4784  ;;  %v3545_v7 = vsel %vm1003_vm1, %v7085_v25, %v4746_v27 }
 0x79c   : > { %v3587_v43 = vpack.c.bf16 %v3572_v60, %v3571_v34  ;;  %v4780_v55 = vpop.permute.xlu0 %4779  ;;  %v4786_v19 = vunpack.i.l.bf16 %v4785_v9  ;;  %v4787_v33 = vunpack.i.h.bf16 %v4785_v9 }
 0x79d   : > { %v4782_v57 = vunpack.i.h.bf16 %v4780_v55  ;;  %v4781_v50 = vunpack.i.l.bf16 %v4780_v55 }
 0x79e   : > { %4438 = vmatprep.mubr.msk.bf16.mxu1 %vm391_vm0, %v3587_v43  ;;  %v3564_v11 = vsel %vm3553_vm3, %v3547_v41, %v4786_v19  ;;  %v3565_v22 = vsel %vm3553_vm3, %v3548_v40, %v4787_v33  ;;  %v5133_v41 = vld [vmem:[%s5613_s20 + $0x10] sm:$0xff] }
 0x79f   : > { %4439 = vmatmul.mubr.msk.bf16.vlgmr.msra.gmra.mrb[56].mxu1 %vm391_vm0, %v3588_v61  ;;  %v3563_v35 = vsel %vm3553_vm3, %v3546_v56, %v4782_v57  ;;  %v3562_v5 = vsel %vm3553_vm3, %v3545_v7, %v4781_v50  ;;  %v5132_v50 = vld [vmem:[%s5613_s20 + $0x30] sm:$0xff] }
 0x7ab   : > { %v4790_v47 = vpop.permute.xlu1 %4789 }
 0x7ac   : > { %v4792_v59 = vunpack.i.h.bf16 %v4790_v47  ;;  %v4791_v13 = vunpack.i.l.bf16 %v4790_v47  ;;  %v4795_v53 = vpop.permute.xlu0 %4794 }
 0x7ad   : > { %v4797_v26 = vunpack.i.h.bf16 %v4795_v53  ;;  %v4796_v12 = vunpack.i.l.bf16 %v4795_v53 }
 0x7ae   : > { %v3577_v15 = vsel %vm3570_vm4, %v3560_v46, %v4791_v13  ;;  %v3578_v29 = vsel %vm3570_vm4, %v3561_v36, %v4792_v59 }
 0x7af   : > { %v3590_v6 = vpack.c.bf16 %v3578_v29, %v3577_v15  ;;  %v3576_v16 = vsel %vm3570_vm4, %v3559_v28, %v4797_v26  ;;  %v3575_v23 = vsel %vm3570_vm4, %v3558_v54, %v4796_v12  ;;  %v4805_v2 = vpop.permute.xlu1 %4804 }
 0x7b0   : > { %v3589_v44 = vpack.c.bf16 %v3576_v16, %v3575_v23  ;;  %v4800_v31 = vpop.permute.xlu0 %4799  ;;  %v4807_v61 = vunpack.i.h.bf16 %v4805_v2  ;;  %v4806_v34 = vunpack.i.l.bf16 %v4805_v2 }
 0x7b1   : > { %v4802_v9 = vunpack.i.h.bf16 %v4800_v31  ;;  %v4801_v8 = vunpack.i.l.bf16 %v4800_v31  ;;  %v5131_v31 = vld [vmem:[%s5613_s20] sm:$0xff] }
 0x7b2   : > { %4442 = vmatprep.mubr.msk.bf16.mxu1 %vm391_vm0, %v3589_v44  ;;  %v3552_v18 = vsel %vm1003_vm1, %v7100_v20, %v4807_v61  ;;  %v3551_v37 = vsel %vm1003_vm1, %v7096_v1, %v4806_v34  ;;  %v5137_v34 = vld [vmem:[%s5613_s20 + $0x50] sm:$0xff] }
 0x7b3   : > { %4443 = vmatmul.mubr.msk.bf16.gmra.mrb[60].mxu1 %vm391_vm0, %v3590_v6  ;;  %v3550_v49 = vsel %vm1003_vm1, %v7102_v24, %v4802_v9  ;;  %v3549_v17 = vsel %vm1003_vm1, %v7098_v10, %v4801_v8  ;;  %v7217_v6 = vld [vmem:[%s7551_s16] ss:$0 sm:$0xff]  ;;  %s5351_s16 = smov [#allocation8]  }
 0x7b4   : > { %s5236_s4 = sshll.u32 %s5351_s16, 4  ;;  %s5237_s4 = int_to_ptr.vmem [resolvable:$false] %s5236_s4 }
 0x7b5   : > { %p5239_p11 = scmp.lt.s32.totalorder %s7291_s30, %s5237_s4 }
 0x7bf   : > { %v4810_v51 = vpop.permute.xlu1 %4809 }
 0x7c0   : > { %v4812_v0 = vunpack.i.h.bf16 %v4810_v51  ;;  %v4811_v30 = vunpack.i.l.bf16 %v4810_v51  ;;  %v4815_v4 = vpop.permute.xlu0 %4814 }
 0x7c1   : > { %v4817_v62 = vunpack.i.h.bf16 %v4815_v4  ;;  %v4816_v21 = vunpack.i.l.bf16 %v4815_v4  ;;  %v5134_v4 = vld [vmem:[%s5613_s20 + $0x60] sm:$0xff] }
 0x7c2   : > { %v3581_v3 = vsel %vm3570_vm4, %v3564_v11, %v4811_v30  ;;  %v3582_v60 = vsel %vm3570_vm4, %v3565_v22, %v4812_v0 }
 0x7c3   : > { %v3592_v25 = vpack.c.bf16 %v3582_v60, %v3581_v3  ;;  %v3580_v43 = vsel %vm3570_vm4, %v3563_v35, %v4817_v62  ;;  %v3579_v38 = vsel %vm3570_vm4, %v3562_v5, %v4816_v21  ;;  %v4825_v48 = vpop.permute.xlu1 %4824  ;;  %v5135_v21 = vld [vmem:[%s5613_s20 + $0x40] sm:$0xff]  ;;  %v5136_v3 = vld [vmem:[%s5613_s20 + $0x70] sm:$0xff] }
 0x7c4   : > { %v3591_v32 = vpack.c.bf16 %v3580_v43, %v3579_v38  ;;  %v4820_v55 = vpop.permute.xlu0 %4819  ;;  %v4827_v14 = vunpack.i.h.bf16 %v4825_v48  ;;  %v4826_v45 = vunpack.i.l.bf16 %v4825_v48 }
 0x7c5   : > { %v4822_v63 = vunpack.i.h.bf16 %v4820_v55  ;;  %v4821_v42 = vunpack.i.l.bf16 %v4820_v55 }
 0x7c6   : > { %4446 = vmatprep.mubr.msk.bf16.mxu1 %vm391_vm0, %v3591_v32  ;;  %v3568_v46 = vsel %vm3553_vm3, %v3551_v37, %v4826_v45  ;;  %v3569_v36 = vsel %vm3553_vm3, %v3552_v18, %v4827_v14  ;;  %v5138_v32 = vld [vmem:[%s5613_s20 + $0x28] sm:$0xff]  ;;  %v5140_v37 = vld [vmem:[%s5613_s20 + $0x38] sm:$0xff] }
 0x7c7   : > { %v4835_v47 = vpop.permute.xlu1 %4834  ;;  %4447 = vmatmul.mubr.msk.bf16.gmra.mrb[64].mxu1 %vm391_vm0, %v3592_v25  ;;  %v3567_v1 = vsel %vm3553_vm3, %v3550_v49, %v4822_v63  ;;  %v3566_v12 = vsel %vm3553_vm3, %v3549_v17, %v4821_v42  ;;  %v5139_v63 = vld [vmem:[%s5613_s20 + $0x8] sm:$0xff]  ;;  %v5141_v49 = vld [vmem:[%s5613_s20 + $0x18] sm:$0xff] }
 0x7c8   : > { %v4837_v59 = vunpack.i.h.bf16 %v4835_v47  ;;  %v4836_v13 = vunpack.i.l.bf16 %v4835_v47  ;;  %v4830_v53 = vpop.permute.xlu0 %4829 }
 0x7c9   : > { %v4832_v20 = vunpack.i.h.bf16 %v4830_v53  ;;  %v4831_v26 = vunpack.i.l.bf16 %v4830_v53 }
 0x7ca   : > { %v3585_v28 = vsel %vm3570_vm4, %v3568_v46, %v4836_v13  ;;  %v3586_v24 = vsel %vm3570_vm4, %v3569_v36, %v4837_v59 }
 0x7cb   : > { %v3594_v54 = vpack.c.bf16 %v3586_v24, %v3585_v28  ;;  %v3584_v10 = vsel %vm3570_vm4, %v3567_v1, %v4832_v20  ;;  %v3583_v15 = vsel %vm3570_vm4, %v3566_v12, %v4831_v26  ;;  %v5142_v20 = vld [vmem:[%s5613_s20 + $0x68] sm:$0xff] }
 0x7cc   : > { %v3593_v29 = vpack.c.bf16 %v3584_v10, %v3583_v15  ;;  %v5143_v28 = vld [vmem:[%s5613_s20 + $0x48] sm:$0xff]  ;;  %v5144_v10 = vld [vmem:[%s5613_s20 + $0x78] sm:$0xff] }
 0x7ce   : > { %4450 = vmatprep.mubr.msk.bf16.mxu1 %vm391_vm0, %v3593_v29  ;;  %v5145_v29 = vld [vmem:[%s5613_s20 + $0x58] sm:$0xff]  ;;  %s5238_s20 = scalar_lea.vmem %s5237_s4, 4096 }
 0x7cf   : > { %4451 = vmatmul.mubr.msk.bf16.gmra.mrb[68].mxu1 %vm391_vm0, %v3594_v54  ;;  %p5240_p13 = scmp.lt.s32.totalorder %s5238_s20, %s5232_s19 }
 0x7d1   : > { %p5241_p3 = por %p5240_p13, %p5239_p11 }
 0x7d3   : > { %p5242_p7 = pnand %p5241_p3, %p5235_p6 }
 0x872   : > { %v4440_v16 = vpop.f32.mrb[56].mxu1 }
 0x873   : > { %v3685_v23 = vadd.f32 %v4440_v16, %v7217_v6  ;;  %v3676_v44 = vpop.f32.mrb[57].mxu1 }
 0x874   : > { %v3677_v39 = vadd.f32 %v7217_v6, %v3676_v44  ;;  %v4441_v58 = vpop.f32.mrb[58].mxu1 }
 0x875   : > { %v3743_v2 = vadd.f32 %v5130_v52, %v3685_v23  ;;  %v3688_v27 = vadd.f32 %v4441_v58, %v7217_v6  ;;  %v3679_v19 = vpop.f32.mrb[59].mxu1 }
 0x876   : > { %v3739_v33 = vadd.f32 %v5131_v31, %v3677_v39  ;;  %v3680_v57 = vadd.f32 %v7217_v6, %v3679_v19 }
 0x877   : > { %3759 = vst.msk [vmem:[%s7227_s25 + $0x20] sm:$0xff] %vm391_vm0, %v3743_v2  ;;  %v3745_v40 = vadd.f32 %v5132_v50, %v3688_v27 }
 0x878   : > { %3755 = vst.msk [vmem:[%s7227_s25] sm:$0xff] %vm391_vm0, %v3739_v33  ;;  %v3741_v56 = vadd.f32 %v5133_v41, %v3680_v57 }
 0x879   : > { %3761 = vst.msk [vmem:[%s7227_s25 + $0x30] sm:$0xff] %vm391_vm0, %v3745_v40 }
 0x87a   : > { %3757 = vst.msk [vmem:[%s7227_s25 + $0x10] sm:$0xff] %vm391_vm0, %v3741_v56 }
 0x886   : > { %v4444_v51 = vpop.f32.mrb[60].mxu1 }
 0x887   : > { %v3701_v7 = vadd.f32 %v4444_v51, %v7217_v6  ;;  %v3692_v11 = vpop.f32.mrb[61].mxu1 }
 0x888   : > { %v3693_v0 = vadd.f32 %v7217_v6, %v3692_v11  ;;  %v4445_v30 = vpop.f32.mrb[62].mxu1 }
 0x889   : > { %v3751_v22 = vadd.f32 %v5134_v4, %v3701_v7  ;;  %v3704_v35 = vadd.f32 %v4445_v30, %v7217_v6  ;;  %v3695_v62 = vpop.f32.mrb[63].mxu1 }
 0x88a   : > { %v3747_v5 = vadd.f32 %v5135_v21, %v3693_v0  ;;  %v3696_v61 = vadd.f32 %v7217_v6, %v3695_v62 }
 0x88b   : > { %3767 = vst.msk [vmem:[%s7227_s25 + $0x60] sm:$0xff] %vm391_vm0, %v3751_v22  ;;  %v3753_v60 = vadd.f32 %v5136_v3, %v3704_v35 }
 0x88c   : > { %3763 = vst.msk [vmem:[%s7227_s25 + $0x40] sm:$0xff] %vm391_vm0, %v3747_v5  ;;  %v3749_v25 = vadd.f32 %v5137_v34, %v3696_v61 }
 0x88d   : > { %3769 = vst.msk [vmem:[%s7227_s25 + $0x70] sm:$0xff] %vm391_vm0, %v3753_v60 }
 0x88e   : > { %3765 = vst.msk [vmem:[%s7227_s25 + $0x50] sm:$0xff] %vm391_vm0, %v3749_v25 }
 0x89a   : > { %v4448_v43 = vpop.f32.mrb[64].mxu1 }
 0x89b   : > { %v3717_v38 = vadd.f32 %v4448_v43, %v7217_v6  ;;  %v3708_v48 = vpop.f32.mrb[65].mxu1 }
 0x89c   : > { %v3709_v9 = vadd.f32 %v7217_v6, %v3708_v48  ;;  %v4449_v8 = vpop.f32.mrb[66].mxu1 }
 0x89d   : > { %v3744_v55 = vadd.f32 %v5138_v32, %v3717_v38  ;;  %v3720_v14 = vadd.f32 %v4449_v8, %v7217_v6  ;;  %v3711_v45 = vpop.f32.mrb[67].mxu1 }
 0x89e   : > { %v3740_v42 = vadd.f32 %v5139_v63, %v3709_v9  ;;  %v3712_v18 = vadd.f32 %v7217_v6, %v3711_v45 }
 0x89f   : > { %3760 = vst.msk [vmem:[%s7227_s25 + $0x28] sm:$0xff] %vm391_vm0, %v3744_v55  ;;  %v3746_v47 = vadd.f32 %v5140_v37, %v3720_v14 }
 0x8a0   : > { %3756 = vst.msk [vmem:[%s7227_s25 + $0x8] sm:$0xff] %vm391_vm0, %v3740_v42  ;;  %v3742_v17 = vadd.f32 %v5141_v49, %v3712_v18 }
 0x8a1   : > { %3762 = vst.msk [vmem:[%s7227_s25 + $0x38] sm:$0xff] %vm391_vm0, %v3746_v47 }
 0x8a2   : > { %3758 = vst.msk [vmem:[%s7227_s25 + $0x18] sm:$0xff] %vm391_vm0, %v3742_v17  ;;  %v4452_v59 = vpop.f32.mrb[68].mxu1 }
 0x8a3   : > { %v3733_v13 = vadd.f32 %v4452_v59, %v7217_v6  ;;  %v3724_v53 = vpop.f32.mrb[69].mxu1 }
 0x8a4   : > { %v3725_v46 = vadd.f32 %v7217_v6, %v3724_v53  ;;  %v4453_v36 = vpop.f32.mrb[70].mxu1 }
 0x8a5   : > { %v3752_v26 = vadd.f32 %v5142_v20, %v3733_v13  ;;  %v3736_v1 = vadd.f32 %v4453_v36, %v7217_v6  ;;  %v3727_v12 = vpop.f32.mrb[71].mxu1 }
 0x8a6   : > { %v3748_v24 = vadd.f32 %v5143_v28, %v3725_v46  ;;  %v3728_v54 = vadd.f32 %v7217_v6, %v3727_v12 }
 0x8a7   : > { %3768 = vst.msk [vmem:[%s7227_s25 + $0x68] sm:$0xff] %vm391_vm0, %v3752_v26  ;;  %v3754_v15 = vadd.f32 %v5144_v10, %v3736_v1 }
 0x8a8   : > { %3764 = vst.msk [vmem:[%s7227_s25 + $0x48] sm:$0xff] %vm391_vm0, %v3748_v24  ;;  %v3750_v16 = vadd.f32 %v5145_v29, %v3728_v54 }
 0x8a9   : > { %3770 = vst.msk [vmem:[%s7227_s25 + $0x78] sm:$0xff] %vm391_vm0, %v3754_v15 }
 0x8aa   : > { %3766 = vst.msk [vmem:[%s7227_s25 + $0x58] sm:$0xff] %vm391_vm0, %v3750_v16 }
 0x8ab   : > { %5245 = shalt.err (!%p5242_p7)
}
 0x8ac   : > { %s5246_s25 = scalar_lea.hbm %s7286_s15, 2048  ;;  %s5250_s24 = scalar_lea.hbm %s7555_s7, 8192 }
 0x8ad   : > { %p5247_p12 = scmp.ne.s32.totalorder %s7286_s15, %s5246_s25  ;;  %p5251_p5 = scmp.lt.u32.totalorder %s7286_s15, %s7555_s7 }
 0x8ae   : > { %p5252_p9 = scmp.lt.u32.totalorder %s5250_s24, %s5246_s25  ;;  %p5254_p4 = scmp.lt.u32.totalorder %s5246_s25, %s7286_s15 }
 0x8af   : > { %p5248_p1 = pnand %p5247_p12, %p5543_p8 }
 0x8b0   : > { %p5253_p0 = por %p5252_p9, %p5251_p5 }
 0x8b1   : > { %p5249_p2 = pneg %p5248_p1 }
 0x8b2   : > { %p5255_p10 = por %p5254_p4, %p5253_p0 }
 0x8b4   : > { %p5256_p6 = pnand %p5255_p10, %p5249_p2 }
 0x8b6   : > { %5259 = shalt.err (!%p5256_p6)
}
 0x8b7   : > { %s5352_s27 = smov 128  }
 0x8b8   : > { %4496 = dma.vmem_to_hbm [thread:$0]  (%p5543_p8), %s7291_s30, 2048, %s7286_s15, %s3772_s17, %s5352_s27, %s5352_s27, %s5348_s8  }
 0x8b9 PF: > { %s7556_s18 = sld [smem:[#allocation12_spill]]  ;;  %s7557_s19 = sld [smem:[#allocation15_spill]] }
 0x8ba   : > { %p4518_p11 = scmp.ge.s32.totalorder %s5334_s12, 2 }
 0x8bf   : > { %s3803_s16 = sand.u32 1, %s7556_s18   ;;  %p7558_p13 = scmp.ne.s32.totalorder %s7557_s19, 0 }
 0x8c0   : > { %s3804_s4 = scalar_lea.sflag [#allocation4], %s3803_s16 }
 0x8c1   : > { %p4510_p3 = pnand %p4518_p11, %p7558_p13 }
 0x8c3   : > { %5301 = dma.done.wait (!%p4510_p3), %s3804_s4, 2048  }
 0x8c4   : > { %5303 = vsyncadd (!%p4510_p3), %s3804_s4, 4294965248  ;;  %s25_s12 = sadd.s32 1, %s5334_s12   ;;  %s7559_s26 = sld [smem:[#allocation16_spill]] }
 0x8c5   : > { %p22_p7 = scmp.ge.s32.totalorder %s25_s12, 6   ;;  %s7560_s27 = smov %s5310_s28 }
 0x8c6   : > { %s7561_s28 = smov %s5314_s29  ;;  %s7562_s29 = smov %s5556_s1 }
 0x8c7   : > { %s7563_s30 = smov %s5326_s10  ;;  %s7564_s9 = smov %s5330_s11 }
 0x8c8   : > { %s7566_s11 = smov %s7572_s13  ;;  %24 = sbr.rel (!%p22_p7) target bundleno = 13 (0xd), region = 105 }
 0x8ca   : > { %s7565_s10 = smov %s7559_s26 }
 0x8cf   :  { %3809 = vsyncpa [#allocation3], 1 }
 0x8d0   :  { %3811 = vsyncpa [#allocation3 + $0x1], 1 }
 0x8d1   :  { %3812 = vsyncpa [#allocation6], 1 }
 0x8d2   :  { %3813 = vsyncpa [#allocation4], 1 }
 0x8d3   :  { %3815 = vsyncpa [#allocation4 + $0x1], 1 }

</bundles_post_ra>
